<compile_context>
chip_gen: v7x
topology: tpu7x:2x2x1
jax: 0.10.0
libtpu: 0.0.40
codegen_flags: <defaults>
</compile_context>

<pallas_src>
import jax
import jax.numpy as jnp
from jax.experimental import pallas as pl
from jax.experimental.pallas import tpu as pltpu

_HIGHEST = jax.lax.Precision.HIGHEST   # full-f32 MXU passes (pl.dot's non-tf32 path)


def _ds_out_kernel(x_ref, pool_ref, r_ref, s_ref, g_ref, bln_ref,
                   m1_ref, b1_ref, m2_ref, b2_ref, m3_ref, b3_ref, out_ref):
    f32 = jnp.float32

    def mm(a, b):
        return jnp.dot(a, b, precision=_HIGHEST, preferred_element_type=f32)

    # ---- LayerNorm over channels (eps=1e-5) in the lane-dense (H, W*C) layout.
    # `pool` broadcasts the per-pixel channel mean back to every channel slot,
    # so mean and (biased) variance are one tiny MXU matmul each.
    x = x_ref[0]                                        # (H, W*C)
    pool = pool_ref[...]
    mean = mm(x, pool)
    xc = x - mean
    var = mm(xc * xc, pool)
    xn = xc * jax.lax.rsqrt(var + 1e-5) * g_ref[...] + bln_ref[...]

    # ---- 3x3 'same' conv as 3 banded matmuls (one per vertical tap).  Each
    # band matrix folds the 3 horizontal taps + channel contraction + zero
    # padding along W, so K = W*C / W2*C instead of 4 and there is no scratch.
    def band_conv(rows_prev, rows_cur, rows_next, m_ref, bias_ref):
        acc = mm(rows_prev, m_ref[0])
        acc = acc + mm(rows_cur, m_ref[1])
        acc = acc + mm(rows_next, m_ref[2])
        return acc + bias_ref[...]                      # single hoisted bias add

    # ---- nearest 2x upsample: LN commutes with it, so LN ran on the 4x
    # smaller tile.  H-upsample and the +-1 row shifts conv1 needs are the
    # three 0/1 matrices in r_ref; the W-upsample is folded into m1.
    rows_p = mm(r_ref[0], xn)                           # upsampled rows y-1 (zero top)
    rows_c = mm(r_ref[1], xn)                           # upsampled rows y
    rows_n = mm(r_ref[2], xn)                           # upsampled rows y+1 (zero bottom)
    h = jnp.maximum(band_conv(rows_p, rows_c, rows_n, m1_ref, b1_ref), 0.0)   # (H2, W2*C)

    # conv2 / conv3: +-1 row shifts via tiny 0/1 shift matmuls -> every
    # intermediate stays in registers (no VMEM scratch round trip, no
    # sublane-unaligned ops); the extra (H2,H2)x(H2,W2*C) matmuls are noise.
    h_p, h_n = mm(s_ref[0], h), mm(s_ref[1], h)
    h = jnp.maximum(band_conv(h_p, h, h_n, m2_ref, b2_ref), 0.0)              # (H2, W2*C)

    h_p, h_n = mm(s_ref[0], h), mm(s_ref[1], h)
    out_ref[0] = jax.nn.sigmoid(band_conv(h_p, h, h_n, m3_ref, b3_ref))       # (H2, W2)


def _band_weights(w, w_out, *, fold_w_upsample=False):
    """Fold dx taps + channel contraction + zero 'same' padding along W (and
    optionally the nearest W-upsample) into per-dy band matrices.

    w: (3, 3, Cin, Cout) HWIO.  Returns (3, W_in*Cin, w_out*Cout) where
    W_in = w_out // 2 if fold_w_upsample else w_out.
    """
    kh, kw, cin, cout = w.shape
    xo = jnp.arange(w_out)
    dx = jnp.arange(kw)
    src = xo[None, :] + dx[:, None] - (kw // 2)              # (kw, w_out) source col
    valid = (src >= 0) & (src < w_out)                       # 'same' zero padding
    if fold_w_upsample:
        w_in = w_out // 2
        src = src // 2                                       # nearest-neighbour source
    else:
        w_in = w_out
    src = jnp.where(valid, src, -1)
    ind = (jnp.arange(w_in)[None, :, None] == src[:, None, :]).astype(w.dtype)  # (kw, w_in, w_out)
    band = jnp.einsum('bXx,dbio->dXixo', ind, w, precision=_HIGHEST)             # (kh, w_in, cin, w_out, cout)
    return band.reshape(kh, w_in * cin, w_out * cout)


def ds_out_forward(x_nchw, params):
    f32 = jnp.float32
    B, C, H, W = x_nchw.shape
    H2, W2 = 2 * H, 2 * W

    # NCHW -> (B, H, W*C) channels-fastest rows.  This is the *pre-upsample*
    # tensor (layout glue only, 4x smaller than the upsampled image).
    x_rows = jnp.transpose(x_nchw, (0, 2, 3, 1)).reshape(B, H, W * C).astype(f32)

    gamma = params["gamma"].reshape(-1).astype(f32)
    beta = params["beta"].reshape(-1).astype(f32)
    w1, b1 = params["w1"].astype(f32), params["b1"].reshape(-1).astype(f32)
    w2, b2 = params["w2"].astype(f32), params["b2"].reshape(-1).astype(f32)
    w3, b3 = params["w3"].astype(f32), params["b3"].reshape(-1).astype(f32)

    # Per-pixel channel-mean pooling matrix: (x @ pool)[., X*C+c] = mean_c' x[., X*C+c'].
    idx = jnp.arange(W * C)
    pool = (idx[:, None] // C == idx[None, :] // C).astype(f32) / C          # (W*C, W*C)

    # Nearest H-upsample (and its +-1 row-shifted variants, with zero boundary
    # rows) as 0/1 matrices: output row y2 reads input row (y2+d)//2.
    y2 = jnp.arange(H2)[:, None]
    y1 = jnp.arange(H)[None, :]
    r_stack = jnp.stack([
        (y1 == (y2 - 1) // 2) & (y2 >= 1),          # rows y2-1
        (y1 == y2 // 2),                            # rows y2
        (y1 == (y2 + 1) // 2) & (y2 <= H2 - 2),     # rows y2+1
    ]).astype(f32)                                  # (3, H2, H)

    # +-1 row shift matrices (zero boundary rows) for the conv2/conv3 inputs.
    i2 = jnp.arange(H2)[:, None]
    j2 = jnp.arange(H2)[None, :]
    s_stack = jnp.stack([(j2 == i2 - 1), (j2 == i2 + 1)]).astype(f32)        # (2, H2, H2)

    # Banded conv weights; conv1 additionally folds the nearest W-upsample.
    m1 = _band_weights(w1, W2, fold_w_upsample=True)    # (3, W*C,  W2*C)
    m2 = _band_weights(w2, W2)                          # (3, W2*C, W2*C)
    m3 = _band_weights(w3, W2)                          # (3, W2*C, W2)

    g_row = jnp.tile(gamma, W)[None, :]                 # (1, W*C)
    bln_row = jnp.tile(beta, W)[None, :]
    b1_row = jnp.tile(b1, W2)[None, :]                  # (1, W2*C)
    b2_row = jnp.tile(b2, W2)[None, :]
    b3_row = jnp.tile(b3, W2)[None, :]                  # (1, W2)

    out = pl.pallas_call(
        _ds_out_kernel,
        out_shape=jax.ShapeDtypeStruct((B, H2, W2), f32),
        grid_spec=pltpu.PrefetchScalarGridSpec(
            num_scalar_prefetch=0,
            grid=(B,),
            in_specs=[
                pl.BlockSpec((1, H, W * C), lambda b: (b, 0, 0)),        # x rows (pre-upsample)
                pl.BlockSpec((W * C, W * C), lambda b: (0, 0)),          # channel-mean pool
                pl.BlockSpec((3, H2, H), lambda b: (0, 0, 0)),           # H-upsample (+-1 rows)
                pl.BlockSpec((2, H2, H2), lambda b: (0, 0, 0)),          # row shift matrices
                pl.BlockSpec((1, W * C), lambda b: (0, 0)),              # LN gamma row
                pl.BlockSpec((1, W * C), lambda b: (0, 0)),              # LN beta row
                pl.BlockSpec((3, W * C, W2 * C), lambda b: (0, 0, 0)),   # conv1 band weights
                pl.BlockSpec((1, W2 * C), lambda b: (0, 0)),             # conv1 bias row
                pl.BlockSpec((3, W2 * C, W2 * C), lambda b: (0, 0, 0)),  # conv2 band weights
                pl.BlockSpec((1, W2 * C), lambda b: (0, 0)),             # conv2 bias row
                pl.BlockSpec((3, W2 * C, W2), lambda b: (0, 0, 0)),      # conv3 band weights
                pl.BlockSpec((1, W2), lambda b: (0, 0)),                 # conv3 bias row
            ],
            out_specs=pl.BlockSpec((1, H2, W2), lambda b: (b, 0, 0)),
        ),
        compiler_params=pltpu.CompilerParams(dimension_semantics=("parallel",)),
    )(x_rows, pool, r_stack, s_stack, g_row, bln_row,
      m1, b1_row, m2, b2_row, m3, b3_row)

    return out[:, None, :, :]     # PyTorch NCHW convention: (B, 1, 2H, 2W)


def ds_out_reference(x_nchw, params):
    """Plain-JAX reference (test only), mirrors the PyTorch module."""
    f32 = jnp.float32
    x = x_nchw.astype(f32)
    x = jnp.repeat(jnp.repeat(x, 2, axis=2), 2, axis=3)          # nearest 2x, NCHW
    x = jnp.transpose(x, (0, 2, 3, 1))                           # NHWC
    mean = jnp.mean(x, axis=-1, keepdims=True)
    var = jnp.mean((x - mean) ** 2, axis=-1, keepdims=True)
    x = (x - mean) * jax.lax.rsqrt(var + 1e-5)
    x = x * params["gamma"].reshape(-1) + params["beta"].reshape(-1)

    def conv(h, w, b):
        o = jax.lax.conv_general_dilated(
            h, w.astype(f32), window_strides=(1, 1), padding="SAME",
            dimension_numbers=("NHWC", "HWIO", "NHWC"), precision=_HIGHEST)
        return o + b.reshape(-1)

    h = jax.nn.relu(conv(x, params["w1"], params["b1"]))
    h = jax.nn.relu(conv(h, params["w2"], params["b2"]))
    o = jax.nn.sigmoid(conv(h, params["w3"], params["b3"]))
    return jnp.transpose(o, (0, 3, 1, 2))                        # (B, 1, 2H, 2W)


def init_params(key, in_channels):
    C = in_channels
    ks = jax.random.split(key, 8)
    wscale = 1.0 / (3.0 * (C ** 0.5))
    return {
        "gamma": jax.random.uniform(ks[0], (1, C), jnp.float32, 0.5, 1.5),
        "beta":  jax.random.normal(ks[1], (1, C), jnp.float32) * 0.1,
        "w1": jax.random.normal(ks[2], (3, 3, C, C), jnp.float32) * wscale,   # HWIO
        "b1": jax.random.normal(ks[3], (1, C), jnp.float32) * 0.05,
        "w2": jax.random.normal(ks[4], (3, 3, C, C), jnp.float32) * wscale,
        "b2": jax.random.normal(ks[5], (1, C), jnp.float32) * 0.05,
        "w3": jax.random.normal(ks[6], (3, 3, C, 1), jnp.float32) * wscale,
        "b3": jax.random.normal(ks[7], (1, 1), jnp.float32) * 0.05,
    }


if __name__ == "__main__":
    key = jax.random.PRNGKey(0)
    k_x, k_p = jax.random.split(key)

    B, C, H, W = 2, 4, 16, 16
    x = jax.random.normal(k_x, (B, C, H, W), jnp.float32)
    params = init_params(k_p, C)

    fwd = jax.jit(ds_out_forward)
    out = jax.block_until_ready(fwd(x, params))

    assert out.shape == (B, 1, 2 * H, 2 * W), out.shape
    assert bool(jnp.all(jnp.isfinite(out)))
    assert bool(jnp.all((out >= 0.0) & (out <= 1.0)))            # sigmoid range

    # Numerical check vs. a plain-XLA reference.  Tolerance is loose enough to
    # absorb MXU pass-precision differences, tight enough to catch any
    # structural error (wrong tap/band mapping would be off by O(0.1)).
    ref = ds_out_reference(x, params)
    assert bool(jnp.allclose(out, ref, atol=5e-3, rtol=5e-3)), \
        float(jnp.max(jnp.abs(out - ref)))

    print("KERNEL_OK")
</pallas_src>

<mosaic_0001>
module attributes {stable_mosaic.version = 11 : i64} {
  func.func @_ds_out_kernel(%arg0: i32, %arg1: memref<1x16x64xf32, #tpu.memory_space<vmem>>, %arg2: memref<64x64xf32, #tpu.memory_space<vmem>>, %arg3: memref<3x32x16xf32, #tpu.memory_space<vmem>>, %arg4: memref<2x32x32xf32, #tpu.memory_space<vmem>>, %arg5: memref<1x64xf32, #tpu.memory_space<vmem>>, %arg6: memref<1x64xf32, #tpu.memory_space<vmem>>, %arg7: memref<3x64x128xf32, #tpu.memory_space<vmem>>, %arg8: memref<1x128xf32, #tpu.memory_space<vmem>>, %arg9: memref<3x128x128xf32, #tpu.memory_space<vmem>>, %arg10: memref<1x128xf32, #tpu.memory_space<vmem>>, %arg11: memref<3x128x32xf32, #tpu.memory_space<vmem>>, %arg12: memref<1x32xf32, #tpu.memory_space<vmem>>, %arg13: memref<1x32x32xf32, #tpu.memory_space<vmem>>) attributes {dimension_semantics = [#tpu.dimension_semantics<parallel>], iteration_bounds = array<i64: 2>, scalar_prefetch = 0 : i64, scratch_operands = 0 : i64, tpu.core_type = #tpu.core_type<tc>, window_params = [{transform_indices = @transform_0, window_bounds = array<i64: 1, 16, 64>}, {pipeline_mode = #tpu.pipeline_mode<synchronous>, transform_indices = @transform_1, window_bounds = array<i64: 64, 64>}, {pipeline_mode = #tpu.pipeline_mode<synchronous>, transform_indices = @transform_2, window_bounds = array<i64: 3, 32, 16>}, {pipeline_mode = #tpu.pipeline_mode<synchronous>, transform_indices = @transform_3, window_bounds = array<i64: 2, 32, 32>}, {pipeline_mode = #tpu.pipeline_mode<synchronous>, transform_indices = @transform_4, window_bounds = array<i64: 1, 64>}, {pipeline_mode = #tpu.pipeline_mode<synchronous>, transform_indices = @transform_5, window_bounds = array<i64: 1, 64>}, {pipeline_mode = #tpu.pipeline_mode<synchronous>, transform_indices = @transform_6, window_bounds = array<i64: 3, 64, 128>}, {pipeline_mode = #tpu.pipeline_mode<synchronous>, transform_indices = @transform_7, window_bounds = array<i64: 1, 128>}, {pipeline_mode = #tpu.pipeline_mode<synchronous>, transform_indices = @transform_8, window_bounds = array<i64: 3, 128, 128>}, {pipeline_mode = #tpu.pipeline_mode<synchronous>, transform_indices = @transform_9, window_bounds = array<i64: 1, 128>}, {pipeline_mode = #tpu.pipeline_mode<synchronous>, transform_indices = @transform_10, window_bounds = array<i64: 3, 128, 32>}, {pipeline_mode = #tpu.pipeline_mode<synchronous>, transform_indices = @transform_11, window_bounds = array<i64: 1, 32>}, {transform_indices = @transform_12, window_bounds = array<i64: 1, 32, 32>}]} {
    %c0 = arith.constant 0 : index
    %c0_0 = arith.constant 0 : index
    %c0_1 = arith.constant 0 : index
    %0 = vector.load %arg1[%c0, %c0_0, %c0_1] : memref<1x16x64xf32, #tpu.memory_space<vmem>>, vector<1x16x64xf32>
    %1 = vector.shape_cast %0 : vector<1x16x64xf32> to vector<16x64xf32>
    %c0_2 = arith.constant 0 : index
    %c0_3 = arith.constant 0 : index
    %2 = vector.load %arg2[%c0_2, %c0_3] : memref<64x64xf32, #tpu.memory_space<vmem>>, vector<64x64xf32>
    %cst = arith.constant dense<0.000000e+00> : vector<16x64xf32>
    %3 = tpu.matmul %1, %2, %cst {dimension_numbers = #tpu.dot_dimension_numbers<[1], [0], [0], [1], [0, 0, 1, 1], [], []>, precision = #tpu.contract_precision<fp32>} : vector<16x64xf32>, vector<64x64xf32>, vector<16x64xf32> -> vector<16x64xf32>
    %4 = arith.subf %1, %3 : vector<16x64xf32>
    %5 = arith.mulf %4, %4 : vector<16x64xf32>
    %cst_4 = arith.constant dense<0.000000e+00> : vector<16x64xf32>
    %6 = tpu.matmul %5, %2, %cst_4 {dimension_numbers = #tpu.dot_dimension_numbers<[1], [0], [0], [1], [0, 0, 1, 1], [], []>, precision = #tpu.contract_precision<fp32>} : vector<16x64xf32>, vector<64x64xf32>, vector<16x64xf32> -> vector<16x64xf32>
    %cst_5 = arith.constant 9.99999974E-6 : f32
    %7 = vector.broadcast %cst_5 : f32 to vector<16x64xf32>
    %8 = arith.addf %6, %7 : vector<16x64xf32>
    %9 = math.rsqrt %8 : vector<16x64xf32>
    %10 = arith.mulf %4, %9 : vector<16x64xf32>
    %c0_6 = arith.constant 0 : index
    %c0_7 = arith.constant 0 : index
    %11 = vector.load %arg5[%c0_6, %c0_7] : memref<1x64xf32, #tpu.memory_space<vmem>>, vector<1x64xf32>
    %12 = vector.broadcast %11 : vector<1x64xf32> to vector<16x64xf32>
    %13 = arith.mulf %10, %12 : vector<16x64xf32>
    %c0_8 = arith.constant 0 : index
    %c0_9 = arith.constant 0 : index
    %14 = vector.load %arg6[%c0_8, %c0_9] : memref<1x64xf32, #tpu.memory_space<vmem>>, vector<1x64xf32>
    %15 = vector.broadcast %14 : vector<1x64xf32> to vector<16x64xf32>
    %16 = arith.addf %13, %15 : vector<16x64xf32>
    %c0_10 = arith.constant 0 : index
    %c0_11 = arith.constant 0 : index
    %c0_12 = arith.constant 0 : index
    %17 = vector.load %arg3[%c0_10, %c0_11, %c0_12] : memref<3x32x16xf32, #tpu.memory_space<vmem>>, vector<1x32x16xf32>
    %18 = vector.shape_cast %17 : vector<1x32x16xf32> to vector<32x16xf32>
    %cst_13 = arith.constant dense<0.000000e+00> : vector<32x64xf32>
    %19 = tpu.matmul %18, %16, %cst_13 {dimension_numbers = #tpu.dot_dimension_numbers<[1], [0], [0], [1], [0, 0, 1, 1], [], []>, precision = #tpu.contract_precision<fp32>} : vector<32x16xf32>, vector<16x64xf32>, vector<32x64xf32> -> vector<32x64xf32>
    %c1 = arith.constant 1 : index
    %c0_14 = arith.constant 0 : index
    %c0_15 = arith.constant 0 : index
    %20 = vector.load %arg3[%c1, %c0_14, %c0_15] : memref<3x32x16xf32, #tpu.memory_space<vmem>>, vector<1x32x16xf32>
    %21 = vector.shape_cast %20 : vector<1x32x16xf32> to vector<32x16xf32>
    %cst_16 = arith.constant dense<0.000000e+00> : vector<32x64xf32>
    %22 = tpu.matmul %21, %16, %cst_16 {dimension_numbers = #tpu.dot_dimension_numbers<[1], [0], [0], [1], [0, 0, 1, 1], [], []>, precision = #tpu.contract_precision<fp32>} : vector<32x16xf32>, vector<16x64xf32>, vector<32x64xf32> -> vector<32x64xf32>
    %c2 = arith.constant 2 : index
    %c0_17 = arith.constant 0 : index
    %c0_18 = arith.constant 0 : index
    %23 = vector.load %arg3[%c2, %c0_17, %c0_18] : memref<3x32x16xf32, #tpu.memory_space<vmem>>, vector<1x32x16xf32>
    %24 = vector.shape_cast %23 : vector<1x32x16xf32> to vector<32x16xf32>
    %cst_19 = arith.constant dense<0.000000e+00> : vector<32x64xf32>
    %25 = tpu.matmul %24, %16, %cst_19 {dimension_numbers = #tpu.dot_dimension_numbers<[1], [0], [0], [1], [0, 0, 1, 1], [], []>, precision = #tpu.contract_precision<fp32>} : vector<32x16xf32>, vector<16x64xf32>, vector<32x64xf32> -> vector<32x64xf32>
    %c0_20 = arith.constant 0 : index
    %c0_21 = arith.constant 0 : index
    %c0_22 = arith.constant 0 : index
    %26 = vector.load %arg7[%c0_20, %c0_21, %c0_22] : memref<3x64x128xf32, #tpu.memory_space<vmem>>, vector<1x64x128xf32>
    %27 = vector.shape_cast %26 : vector<1x64x128xf32> to vector<64x128xf32>
    %cst_23 = arith.constant dense<0.000000e+00> : vector<32x128xf32>
    %28 = tpu.matmul %19, %27, %cst_23 {dimension_numbers = #tpu.dot_dimension_numbers<[1], [0], [0], [1], [0, 0, 1, 1], [], []>, precision = #tpu.contract_precision<fp32>} : vector<32x64xf32>, vector<64x128xf32>, vector<32x128xf32> -> vector<32x128xf32>
    %c1_24 = arith.constant 1 : index
    %c0_25 = arith.constant 0 : index
    %c0_26 = arith.constant 0 : index
    %29 = vector.load %arg7[%c1_24, %c0_25, %c0_26] : memref<3x64x128xf32, #tpu.memory_space<vmem>>, vector<1x64x128xf32>
    %30 = vector.shape_cast %29 : vector<1x64x128xf32> to vector<64x128xf32>
    %cst_27 = arith.constant dense<0.000000e+00> : vector<32x128xf32>
    %31 = tpu.matmul %22, %30, %cst_27 {dimension_numbers = #tpu.dot_dimension_numbers<[1], [0], [0], [1], [0, 0, 1, 1], [], []>, precision = #tpu.contract_precision<fp32>} : vector<32x64xf32>, vector<64x128xf32>, vector<32x128xf32> -> vector<32x128xf32>
    %32 = arith.addf %28, %31 : vector<32x128xf32>
    %c2_28 = arith.constant 2 : index
    %c0_29 = arith.constant 0 : index
    %c0_30 = arith.constant 0 : index
    %33 = vector.load %arg7[%c2_28, %c0_29, %c0_30] : memref<3x64x128xf32, #tpu.memory_space<vmem>>, vector<1x64x128xf32>
    %34 = vector.shape_cast %33 : vector<1x64x128xf32> to vector<64x128xf32>
    %cst_31 = arith.constant dense<0.000000e+00> : vector<32x128xf32>
    %35 = tpu.matmul %25, %34, %cst_31 {dimension_numbers = #tpu.dot_dimension_numbers<[1], [0], [0], [1], [0, 0, 1, 1], [], []>, precision = #tpu.contract_precision<fp32>} : vector<32x64xf32>, vector<64x128xf32>, vector<32x128xf32> -> vector<32x128xf32>
    %36 = arith.addf %32, %35 : vector<32x128xf32>
    %c0_32 = arith.constant 0 : index
    %c0_33 = arith.constant 0 : index
    %37 = vector.load %arg8[%c0_32, %c0_33] : memref<1x128xf32, #tpu.memory_space<vmem>>, vector<1x128xf32>
    %38 = vector.broadcast %37 : vector<1x128xf32> to vector<32x128xf32>
    %39 = arith.addf %36, %38 : vector<32x128xf32>
    %cst_34 = arith.constant 0.000000e+00 : f32
    %40 = vector.broadcast %cst_34 : f32 to vector<32x128xf32>
    %41 = arith.maximumf %39, %40 : vector<32x128xf32>
    %c0_35 = arith.constant 0 : index
    %c0_36 = arith.constant 0 : index
    %c0_37 = arith.constant 0 : index
    %42 = vector.load %arg4[%c0_35, %c0_36, %c0_37] : memref<2x32x32xf32, #tpu.memory_space<vmem>>, vector<1x32x32xf32>
    %43 = vector.shape_cast %42 : vector<1x32x32xf32> to vector<32x32xf32>
    %cst_38 = arith.constant dense<0.000000e+00> : vector<32x128xf32>
    %44 = tpu.matmul %43, %41, %cst_38 {dimension_numbers = #tpu.dot_dimension_numbers<[1], [0], [0], [1], [0, 0, 1, 1], [], []>, precision = #tpu.contract_precision<fp32>} : vector<32x32xf32>, vector<32x128xf32>, vector<32x128xf32> -> vector<32x128xf32>
    %c1_39 = arith.constant 1 : index
    %c0_40 = arith.constant 0 : index
    %c0_41 = arith.constant 0 : index
    %45 = vector.load %arg4[%c1_39, %c0_40, %c0_41] : memref<2x32x32xf32, #tpu.memory_space<vmem>>, vector<1x32x32xf32>
    %46 = vector.shape_cast %45 : vector<1x32x32xf32> to vector<32x32xf32>
    %cst_42 = arith.constant dense<0.000000e+00> : vector<32x128xf32>
    %47 = tpu.matmul %46, %41, %cst_42 {dimension_numbers = #tpu.dot_dimension_numbers<[1], [0], [0], [1], [0, 0, 1, 1], [], []>, precision = #tpu.contract_precision<fp32>} : vector<32x32xf32>, vector<32x128xf32>, vector<32x128xf32> -> vector<32x128xf32>
    %c0_43 = arith.constant 0 : index
    %c0_44 = arith.constant 0 : index
    %c0_45 = arith.constant 0 : index
    %48 = vector.load %arg9[%c0_43, %c0_44, %c0_45] : memref<3x128x128xf32, #tpu.memory_space<vmem>>, vector<1x128x128xf32>
    %49 = vector.shape_cast %48 : vector<1x128x128xf32> to vector<128x128xf32>
    %cst_46 = arith.constant dense<0.000000e+00> : vector<32x128xf32>
    %50 = tpu.matmul %44, %49, %cst_46 {dimension_numbers = #tpu.dot_dimension_numbers<[1], [0], [0], [1], [0, 0, 1, 1], [], []>, precision = #tpu.contract_precision<fp32>} : vector<32x128xf32>, vector<128x128xf32>, vector<32x128xf32> -> vector<32x128xf32>
    %c1_47 = arith.constant 1 : index
    %c0_48 = arith.constant 0 : index
    %c0_49 = arith.constant 0 : index
    %51 = vector.load %arg9[%c1_47, %c0_48, %c0_49] : memref<3x128x128xf32, #tpu.memory_space<vmem>>, vector<1x128x128xf32>
    %52 = vector.shape_cast %51 : vector<1x128x128xf32> to vector<128x128xf32>
    %cst_50 = arith.constant dense<0.000000e+00> : vector<32x128xf32>
    %53 = tpu.matmul %41, %52, %cst_50 {dimension_numbers = #tpu.dot_dimension_numbers<[1], [0], [0], [1], [0, 0, 1, 1], [], []>, precision = #tpu.contract_precision<fp32>} : vector<32x128xf32>, vector<128x128xf32>, vector<32x128xf32> -> vector<32x128xf32>
    %54 = arith.addf %50, %53 : vector<32x128xf32>
    %c2_51 = arith.constant 2 : index
    %c0_52 = arith.constant 0 : index
    %c0_53 = arith.constant 0 : index
    %55 = vector.load %arg9[%c2_51, %c0_52, %c0_53] : memref<3x128x128xf32, #tpu.memory_space<vmem>>, vector<1x128x128xf32>
    %56 = vector.shape_cast %55 : vector<1x128x128xf32> to vector<128x128xf32>
    %cst_54 = arith.constant dense<0.000000e+00> : vector<32x128xf32>
    %57 = tpu.matmul %47, %56, %cst_54 {dimension_numbers = #tpu.dot_dimension_numbers<[1], [0], [0], [1], [0, 0, 1, 1], [], []>, precision = #tpu.contract_precision<fp32>} : vector<32x128xf32>, vector<128x128xf32>, vector<32x128xf32> -> vector<32x128xf32>
    %58 = arith.addf %54, %57 : vector<32x128xf32>
    %c0_55 = arith.constant 0 : index
    %c0_56 = arith.constant 0 : index
    %59 = vector.load %arg10[%c0_55, %c0_56] : memref<1x128xf32, #tpu.memory_space<vmem>>, vector<1x128xf32>
    %60 = vector.broadcast %59 : vector<1x128xf32> to vector<32x128xf32>
    %61 = arith.addf %58, %60 : vector<32x128xf32>
    %cst_57 = arith.constant 0.000000e+00 : f32
    %62 = vector.broadcast %cst_57 : f32 to vector<32x128xf32>
    %63 = arith.maximumf %61, %62 : vector<32x128xf32>
    %c0_58 = arith.constant 0 : index
    %c0_59 = arith.constant 0 : index
    %c0_60 = arith.constant 0 : index
    %64 = vector.load %arg4[%c0_58, %c0_59, %c0_60] : memref<2x32x32xf32, #tpu.memory_space<vmem>>, vector<1x32x32xf32>
    %65 = vector.shape_cast %64 : vector<1x32x32xf32> to vector<32x32xf32>
    %cst_61 = arith.constant dense<0.000000e+00> : vector<32x128xf32>
    %66 = tpu.matmul %65, %63, %cst_61 {dimension_numbers = #tpu.dot_dimension_numbers<[1], [0], [0], [1], [0, 0, 1, 1], [], []>, precision = #tpu.contract_precision<fp32>} : vector<32x32xf32>, vector<32x128xf32>, vector<32x128xf32> -> vector<32x128xf32>
    %c1_62 = arith.constant 1 : index
    %c0_63 = arith.constant 0 : index
    %c0_64 = arith.constant 0 : index
    %67 = vector.load %arg4[%c1_62, %c0_63, %c0_64] : memref<2x32x32xf32, #tpu.memory_space<vmem>>, vector<1x32x32xf32>
    %68 = vector.shape_cast %67 : vector<1x32x32xf32> to vector<32x32xf32>
    %cst_65 = arith.constant dense<0.000000e+00> : vector<32x128xf32>
    %69 = tpu.matmul %68, %63, %cst_65 {dimension_numbers = #tpu.dot_dimension_numbers<[1], [0], [0], [1], [0, 0, 1, 1], [], []>, precision = #tpu.contract_precision<fp32>} : vector<32x32xf32>, vector<32x128xf32>, vector<32x128xf32> -> vector<32x128xf32>
    %c0_66 = arith.constant 0 : index
    %c0_67 = arith.constant 0 : index
    %c0_68 = arith.constant 0 : index
    %70 = vector.load %arg11[%c0_66, %c0_67, %c0_68] : memref<3x128x32xf32, #tpu.memory_space<vmem>>, vector<1x128x32xf32>
    %71 = vector.shape_cast %70 : vector<1x128x32xf32> to vector<128x32xf32>
    %cst_69 = arith.constant dense<0.000000e+00> : vector<32x32xf32>
    %72 = tpu.matmul %66, %71, %cst_69 {dimension_numbers = #tpu.dot_dimension_numbers<[1], [0], [0], [1], [0, 0, 1, 1], [], []>, precision = #tpu.contract_precision<fp32>} : vector<32x128xf32>, vector<128x32xf32>, vector<32x32xf32> -> vector<32x32xf32>
    %c1_70 = arith.constant 1 : index
    %c0_71 = arith.constant 0 : index
    %c0_72 = arith.constant 0 : index
    %73 = vector.load %arg11[%c1_70, %c0_71, %c0_72] : memref<3x128x32xf32, #tpu.memory_space<vmem>>, vector<1x128x32xf32>
    %74 = vector.shape_cast %73 : vector<1x128x32xf32> to vector<128x32xf32>
    %cst_73 = arith.constant dense<0.000000e+00> : vector<32x32xf32>
    %75 = tpu.matmul %63, %74, %cst_73 {dimension_numbers = #tpu.dot_dimension_numbers<[1], [0], [0], [1], [0, 0, 1, 1], [], []>, precision = #tpu.contract_precision<fp32>} : vector<32x128xf32>, vector<128x32xf32>, vector<32x32xf32> -> vector<32x32xf32>
    %76 = arith.addf %72, %75 : vector<32x32xf32>
    %c2_74 = arith.constant 2 : index
    %c0_75 = arith.constant 0 : index
    %c0_76 = arith.constant 0 : index
    %77 = vector.load %arg11[%c2_74, %c0_75, %c0_76] : memref<3x128x32xf32, #tpu.memory_space<vmem>>, vector<1x128x32xf32>
    %78 = vector.shape_cast %77 : vector<1x128x32xf32> to vector<128x32xf32>
    %cst_77 = arith.constant dense<0.000000e+00> : vector<32x32xf32>
    %79 = tpu.matmul %69, %78, %cst_77 {dimension_numbers = #tpu.dot_dimension_numbers<[1], [0], [0], [1], [0, 0, 1, 1], [], []>, precision = #tpu.contract_precision<fp32>} : vector<32x128xf32>, vector<128x32xf32>, vector<32x32xf32> -> vector<32x32xf32>
    %80 = arith.addf %76, %79 : vector<32x32xf32>
    %c0_78 = arith.constant 0 : index
    %c0_79 = arith.constant 0 : index
    %81 = vector.load %arg12[%c0_78, %c0_79] : memref<1x32xf32, #tpu.memory_space<vmem>>, vector<1x32xf32>
    %82 = vector.broadcast %81 : vector<1x32xf32> to vector<32x32xf32>
    %83 = arith.addf %80, %82 : vector<32x32xf32>
    %84 = arith.negf %83 : vector<32x32xf32>
    %85 = math.exp %84 : vector<32x32xf32>
    %cst_80 = arith.constant 1.000000e+00 : f32
    %86 = vector.broadcast %cst_80 : f32 to vector<32x32xf32>
    %87 = arith.addf %86, %85 : vector<32x32xf32>
    %88 = arith.divf %86, %87 : vector<32x32xf32>
    %c0_81 = arith.constant 0 : index
    %c0_82 = arith.constant 0 : index
    %c0_83 = arith.constant 0 : index
    %89 = vector.load %arg13[%c0_81, %c0_82, %c0_83] : memref<1x32x32xf32, #tpu.memory_space<vmem>>, vector<1x32x32xf32>
    %90 = vector.shape_cast %89 : vector<1x32x32xf32> to vector<32x32xf32>
    %91 = vector.shape_cast %88 : vector<32x32xf32> to vector<1x32x32xf32>
    tpu.vector_store %arg13[%c0_81, %c0_82, %c0_83], %91 {strides = array<i32>} : memref<1x32x32xf32, #tpu.memory_space<vmem>>, vector<1x32x32xf32>,
    return
  }
  func.func @transform_0(%arg0: i32) -> (i32, i32, i32) {
    %c0_i32 = arith.constant 0 : i32
    %c0_i32_0 = arith.constant 0 : i32
    %c0_i32_1 = arith.constant 0 : i32
    return %arg0, %c0_i32, %c0_i32_0 : i32, i32, i32
  }
  func.func @transform_1(%arg0: i32) -> (i32, i32) {
    %c0_i32 = arith.constant 0 : i32
    %c0_i32_0 = arith.constant 0 : i32
    %c0_i32_1 = arith.constant 0 : i32
    return %c0_i32, %c0_i32_0 : i32, i32
  }
  func.func @transform_2(%arg0: i32) -> (i32, i32, i32) {
    %c0_i32 = arith.constant 0 : i32
    %c0_i32_0 = arith.constant 0 : i32
    %c0_i32_1 = arith.constant 0 : i32
    %c0_i32_2 = arith.constant 0 : i32
    return %c0_i32, %c0_i32_0, %c0_i32_1 : i32, i32, i32
  }
  func.func @transform_3(%arg0: i32) -> (i32, i32, i32) {
    %c0_i32 = arith.constant 0 : i32
    %c0_i32_0 = arith.constant 0 : i32
    %c0_i32_1 = arith.constant 0 : i32
    %c0_i32_2 = arith.constant 0 : i32
    return %c0_i32, %c0_i32_0, %c0_i32_1 : i32, i32, i32
  }
  func.func @transform_4(%arg0: i32) -> (i32, i32) {
    %c0_i32 = arith.constant 0 : i32
    %c0_i32_0 = arith.constant 0 : i32
    %c0_i32_1 = arith.constant 0 : i32
    return %c0_i32, %c0_i32_0 : i32, i32
  }
  func.func @transform_5(%arg0: i32) -> (i32, i32) {
    %c0_i32 = arith.constant 0 : i32
    %c0_i32_0 = arith.constant 0 : i32
    %c0_i32_1 = arith.constant 0 : i32
    return %c0_i32, %c0_i32_0 : i32, i32
  }
  func.func @transform_6(%arg0: i32) -> (i32, i32, i32) {
    %c0_i32 = arith.constant 0 : i32
    %c0_i32_0 = arith.constant 0 : i32
    %c0_i32_1 = arith.constant 0 : i32
    %c0_i32_2 = arith.constant 0 : i32
    return %c0_i32, %c0_i32_0, %c0_i32_1 : i32, i32, i32
  }
  func.func @transform_7(%arg0: i32) -> (i32, i32) {
    %c0_i32 = arith.constant 0 : i32
    %c0_i32_0 = arith.constant 0 : i32
    %c0_i32_1 = arith.constant 0 : i32
    return %c0_i32, %c0_i32_0 : i32, i32
  }
  func.func @transform_8(%arg0: i32) -> (i32, i32, i32) {
    %c0_i32 = arith.constant 0 : i32
    %c0_i32_0 = arith.constant 0 : i32
    %c0_i32_1 = arith.constant 0 : i32
    %c0_i32_2 = arith.constant 0 : i32
    return %c0_i32, %c0_i32_0, %c0_i32_1 : i32, i32, i32
  }
  func.func @transform_9(%arg0: i32) -> (i32, i32) {
    %c0_i32 = arith.constant 0 : i32
    %c0_i32_0 = arith.constant 0 : i32
    %c0_i32_1 = arith.constant 0 : i32
    return %c0_i32, %c0_i32_0 : i32, i32
  }
  func.func @transform_10(%arg0: i32) -> (i32, i32, i32) {
    %c0_i32 = arith.constant 0 : i32
    %c0_i32_0 = arith.constant 0 : i32
    %c0_i32_1 = arith.constant 0 : i32
    %c0_i32_2 = arith.constant 0 : i32
    return %c0_i32, %c0_i32_0, %c0_i32_1 : i32, i32, i32
  }
  func.func @transform_11(%arg0: i32) -> (i32, i32) {
    %c0_i32 = arith.constant 0 : i32
    %c0_i32_0 = arith.constant 0 : i32
    %c0_i32_1 = arith.constant 0 : i32
    return %c0_i32, %c0_i32_0 : i32, i32
  }
  func.func @transform_12(%arg0: i32) -> (i32, i32, i32) {
    %c0_i32 = arith.constant 0 : i32
    %c0_i32_0 = arith.constant 0 : i32
    %c0_i32_1 = arith.constant 0 : i32
    return %arg0, %c0_i32, %c0_i32_0 : i32, i32, i32
  }
}

</mosaic_0001>

<bundles_post_ra>
// kernel: tile.30
= control target key start
LH: loop header
LB: loop body
LE: loop exit
PB: predicated region body
PF: predicated region fallthrough
CT: control target
= control target key end

     0   :  { %s40_s0 = inlined_call_operand.vmem [shape: f32[4], index: 0, kind: input, shape index: {}]   ;;  %s41_s1 = inlined_call_operand.vmem [shape: f32[32,4], index: 1, kind: output, shape index: {}]  }
   0x1   :  { %v4_v0 = vld [vmem:[%s40_s0] ss:$0 sm:$0xff] }
   0x2   :  { %5 = vst [vmem:[%s41_s1] sm:$0xff] %v4_v0  ;;  %12 = vst [vmem:[%s41_s1 + $0x8] sm:$0xff] %v4_v0 }
   0x3   :  { %13 = vst [vmem:[%s41_s1 + $0x10] sm:$0xff] %v4_v0  ;;  %14 = vst [vmem:[%s41_s1 + $0x18] sm:$0xff] %v4_v0 }

// kernel: tile.31
= control target key start
LH: loop header
LB: loop body
LE: loop exit
PB: predicated region body
PF: predicated region fallthrough
CT: control target
= control target key end

     0   :  { %s259_s10 = smov 124   ;;  %s260_s11 = smov 116   ;;  %vm3_vm0 = vcmask 31744   ;;  %vm9_vm1 = vcmask 1048544   ;;  %vm15_vm2 = vcmask 1015744   ;;  %vm21_vm3 = vcmask 982944   ;;  %s399_s0 = inlined_call_operand.vmem [shape: f32[32,4], index: 0, kind: input, shape index: {}]   ;;  %s400_s1 = inlined_call_operand.vmem [shape: f32[1,128], index: 1, kind: output, shape index: {}]  }
   0x1   :  { %v197_v0 = vld [vmem:[%s399_s0 + $0x1f] sm:$0x1]   ;;  %v199_v1 = vld [vmem:[%s399_s0 + $0x1d] sm:$0x1]   ;;  %v198_v2 = vld [vmem:[%s399_s0 + $0x1e] sm:$0x1]  }
   0x2   :  { %7 = vrot.lane.b32.xlu0 %v197_v0, %s259_s10  ;;  %19 = vrot.lane.b32.xlu1 %v199_v1, %s260_s11  ;;  %v200_v3 = vld [vmem:[%s399_s0 + $0x1c] sm:$0x1]   ;;  %s261_s16 = smov 120   ;;  %s262_s17 = smov 112   ;;  %v201_v4 = vld [vmem:[%s399_s0 + $0x1b] sm:$0x1]  }
   0x3   :  { %v202_v5 = vld [vmem:[%s399_s0 + $0x1a] sm:$0x1]   ;;  %s263_s22 = smov 108   ;;  %s264_s23 = smov 104   ;;  %v203_v6 = vld [vmem:[%s399_s0 + $0x19] sm:$0x1]  }
   0x4   :  { %v204_v7 = vld [vmem:[%s399_s0 + $0x18] sm:$0x1]   ;;  %s265_s28 = smov 100   ;;  %s266_s29 = smov 96   ;;  %v205_v8 = vld [vmem:[%s399_s0 + $0x17] sm:$0x1]  }
   0x5   :  { %v206_v9 = vld [vmem:[%s399_s0 + $0x16] sm:$0x1]   ;;  %v2_v10 = vld [vmem:[%s399_s0] sm:$0x1]   ;;  %s267_s7 = smov 92   ;;  %s268_s8 = smov 88  }
   0x6   :  { %13 = vrot.lane.b32.xlu0 %v198_v2, %s261_s16  ;;  %25 = vrot.lane.b32.xlu1 %v200_v3, %s262_s17  ;;  %4 = vst.msk [vmem:[#allocation0] sm:$0x1] %vm3_vm0, %v2_v10   ;;  %v207_v11 = vld [vmem:[%s399_s0 + $0x15] sm:$0x1]   ;;  %v208_v12 = vld [vmem:[%s399_s0 + $0x14] sm:$0x1]  }
   0x7   :  { %s269_s13 = smov 84   ;;  %s270_s14 = smov 80   ;;  %v209_v13 = vld [vmem:[%s399_s0 + $0x13] sm:$0x1]   ;;  %v210_v14 = vld [vmem:[%s399_s0 + $0x12] sm:$0x1]  }
   0x8   :  { %s271_s19 = smov 76   ;;  %s272_s20 = smov 72   ;;  %v211_v15 = vld [vmem:[%s399_s0 + $0x11] sm:$0x1]   ;;  %v212_v16 = vld [vmem:[%s399_s0 + $0x10] sm:$0x1]  }
   0x9   :  { %s273_s25 = smov 68   ;;  %s274_s26 = smov 64   ;;  %v213_v17 = vld [vmem:[%s399_s0 + $0xf] sm:$0x1]   ;;  %v214_v18 = vld [vmem:[%s399_s0 + $0xe] sm:$0x1]  }
   0xa   :  { %31 = vrot.lane.b32.xlu0 %v201_v4, %s263_s22  ;;  %37 = vrot.lane.b32.xlu1 %v202_v5, %s264_s23  ;;  %s275_s2 = smov 60   ;;  %s276_s3 = smov 56   ;;  %v215_v19 = vld [vmem:[%s399_s0 + $0xd] sm:$0x1]   ;;  %v216_v20 = vld [vmem:[%s399_s0 + $0xc] sm:$0x1]  }
   0xb   :  { %s278_s9 = smov 48   ;;  %v217_v21 = vld [vmem:[%s399_s0 + $0xb] sm:$0x1]   ;;  %v218_v22 = vld [vmem:[%s399_s0 + $0xa] sm:$0x1]   ;;  %s280_s15 = smov 40  }
   0xc   :  { %v219_v23 = vld [vmem:[%s399_s0 + $0x9] sm:$0x1]   ;;  %v220_v24 = vld [vmem:[%s399_s0 + $0x8] sm:$0x1]   ;;  %s282_s21 = smov 32   ;;  %s284_s27 = smov 24  }
   0xd   :  { %v221_v25 = vld [vmem:[%s399_s0 + $0x7] sm:$0x1]   ;;  %v222_v26 = vld [vmem:[%s399_s0 + $0x6] sm:$0x1]   ;;  %v223_v27 = vld [vmem:[%s399_s0 + $0x5] sm:$0x1]  }
   0xe   :  { %43 = vrot.lane.b32.xlu0 %v203_v6, %s265_s28  ;;  %49 = vrot.lane.b32.xlu1 %v204_v7, %s266_s29  ;;  %v224_v28 = vld [vmem:[%s399_s0 + $0x4] sm:$0x1]   ;;  %s286_s4 = smov 16   ;;  %v225_v29 = vld [vmem:[%s399_s0 + $0x3] sm:$0x1]   ;;  %s288_s10 = smov 8  }
   0xf   :  { %v226_v30 = vld [vmem:[%s399_s0 + $0x2] sm:$0x1]   ;;  %v227_v31 = vld [vmem:[%s399_s0 + $0x1] sm:$0x1]   ;;  %s289_s0 = smov 4   ;;  %vm27_vm4 = vcmask 950144  }
  0x10   :  { %vm33_vm5 = vcmask 917344   ;;  %vm39_vm6 = vcmask 884544   ;;  %vm45_vm7 = vcmask 851744   ;;  %vm51_vm8 = vcmask 818944  }
  0x11   :  { %vm57_vm9 = vcmask 786144   ;;  %vm63_vm10 = vcmask 753344   ;;  %vm69_vm11 = vcmask 720544   ;;  %vm75_vm12 = vcmask 687744  }
  0x12   :  { %55 = vrot.lane.b32.xlu0 %v205_v8, %s267_s7  ;;  %61 = vrot.lane.b32.xlu1 %v206_v9, %s268_s8  ;;  %s277_s8 = smov 52   ;;  %vm81_vm13 = vcmask 654944   ;;  %vm87_vm14 = vcmask 622144   ;;  %vm93_vm15 = vcmask 589344   ;;  %vm99_vm0 = vcmask 556544  }
  0x16   :  { %67 = vrot.lane.b32.xlu0 %v207_v11, %s269_s13  ;;  %73 = vrot.lane.b32.xlu1 %v208_v12, %s270_s14  ;;  %s279_s14 = smov 44  }
  0x1a   :  { %79 = vrot.lane.b32.xlu0 %v209_v13, %s271_s19  ;;  %85 = vrot.lane.b32.xlu1 %v210_v14, %s272_s20  ;;  %s281_s20 = smov 36  }
  0x1e   :  { %91 = vrot.lane.b32.xlu0 %v211_v15, %s273_s25  ;;  %97 = vrot.lane.b32.xlu1 %v212_v16, %s274_s26  ;;  %s283_s26 = smov 28  }
  0x22   :  { %103 = vrot.lane.b32.xlu0 %v213_v17, %s275_s2  ;;  %109 = vrot.lane.b32.xlu1 %v214_v18, %s276_s3  ;;  %s285_s3 = smov 20  }
  0x26   :  { %115 = vrot.lane.b32.xlu0 %v215_v19, %s277_s8  ;;  %121 = vrot.lane.b32.xlu1 %v216_v20, %s278_s9  ;;  %s287_s9 = smov 12  }
  0x2a   :  { %127 = vrot.lane.b32.xlu0 %v217_v21, %s279_s14  ;;  %133 = vrot.lane.b32.xlu1 %v218_v22, %s280_s15 }
  0x2e   :  { %139 = vrot.lane.b32.xlu0 %v219_v23, %s281_s20  ;;  %145 = vrot.lane.b32.xlu1 %v220_v24, %s282_s21 }
  0x32   :  { %151 = vrot.lane.b32.xlu0 %v221_v25, %s283_s26  ;;  %157 = vrot.lane.b32.xlu1 %v222_v26, %s284_s27 }
  0x36   :  { %163 = vrot.lane.b32.xlu0 %v223_v27, %s285_s3  ;;  %169 = vrot.lane.b32.xlu1 %v224_v28, %s286_s4 }
  0x3a   :  { %175 = vrot.lane.b32.xlu0 %v225_v29, %s287_s9  ;;  %181 = vrot.lane.b32.xlu1 %v226_v30, %s288_s10 }
  0x3e   :  { %187 = vrot.lane.b32.xlu0 %v227_v31, %s289_s0 }
  0x74   :  { %v8_v32 = vpop.permute.xlu0 %7   ;;  %v20_v33 = vpop.permute.xlu1 %19  }
  0x75   :  { %10 = vst.msk [vmem:[#allocation0] sm:$0x1] %vm9_vm1, %v8_v32   ;;  %vm105_vm1 = vcmask 523744  }
  0x78   :  { %v14_v34 = vpop.permute.xlu0 %13   ;;  %v26_v35 = vpop.permute.xlu1 %25  }
  0x79   :  { %16 = vst.msk [vmem:[#allocation0] sm:$0x1] %vm15_vm2, %v14_v34   ;;  %vm111_vm2 = vcmask 490944  }
  0x7a   :  { %22 = vst.msk [vmem:[#allocation0] sm:$0x1] %vm21_vm3, %v20_v33   ;;  %vm117_vm3 = vcmask 458144  }
  0x7b   :  { %28 = vst.msk [vmem:[#allocation0] sm:$0x1] %vm27_vm4, %v26_v35   ;;  %vm123_vm4 = vcmask 425344  }
  0x7c   :  { %v32_v36 = vpop.permute.xlu0 %31   ;;  %v38_v37 = vpop.permute.xlu1 %37  }
  0x7d   :  { %34 = vst.msk [vmem:[#allocation0] sm:$0x1] %vm33_vm5, %v32_v36   ;;  %vm129_vm5 = vcmask 392544  }
  0x7e   :  { %40 = vst.msk [vmem:[#allocation0] sm:$0x1] %vm39_vm6, %v38_v37   ;;  %vm135_vm6 = vcmask 359744  }
  0x80   :  { %v44_v38 = vpop.permute.xlu0 %43   ;;  %v50_v39 = vpop.permute.xlu1 %49  }
  0x81   :  { %46 = vst.msk [vmem:[#allocation0] sm:$0x1] %vm45_vm7, %v44_v38   ;;  %vm141_vm7 = vcmask 326944  }
  0x82   :  { %52 = vst.msk [vmem:[#allocation0] sm:$0x1] %vm51_vm8, %v50_v39   ;;  %vm147_vm8 = vcmask 294144  }
  0x84   :  { %v56_v40 = vpop.permute.xlu0 %55   ;;  %v62_v41 = vpop.permute.xlu1 %61  }
  0x85   :  { %58 = vst.msk [vmem:[#allocation0] sm:$0x1] %vm57_vm9, %v56_v40   ;;  %vm153_vm9 = vcmask 261344  }
  0x86   :  { %64 = vst.msk [vmem:[#allocation0] sm:$0x1] %vm63_vm10, %v62_v41   ;;  %vm159_vm10 = vcmask 228544  }
  0x88   :  { %v68_v42 = vpop.permute.xlu0 %67   ;;  %v74_v43 = vpop.permute.xlu1 %73  }
  0x89   :  { %70 = vst.msk [vmem:[#allocation0] sm:$0x1] %vm69_vm11, %v68_v42   ;;  %vm165_vm11 = vcmask 195744  }
  0x8a   :  { %76 = vst.msk [vmem:[#allocation0] sm:$0x1] %vm75_vm12, %v74_v43   ;;  %vm171_vm12 = vcmask 162944  }
  0x8c   :  { %v80_v44 = vpop.permute.xlu0 %79   ;;  %v86_v45 = vpop.permute.xlu1 %85  }
  0x8d   :  { %82 = vst.msk [vmem:[#allocation0] sm:$0x1] %vm81_vm13, %v80_v44   ;;  %vm177_vm13 = vcmask 130144  }
  0x8e   :  { %88 = vst.msk [vmem:[#allocation0] sm:$0x1] %vm87_vm14, %v86_v45   ;;  %vm183_vm14 = vcmask 97344  }
  0x90   :  { %v92_v46 = vpop.permute.xlu0 %91   ;;  %v98_v47 = vpop.permute.xlu1 %97  }
  0x91   :  { %94 = vst.msk [vmem:[#allocation0] sm:$0x1] %vm93_vm15, %v92_v46   ;;  %vm189_vm15 = vcmask 64544  }
  0x92   :  { %100 = vst.msk [vmem:[#allocation0] sm:$0x1] %vm99_vm0, %v98_v47  }
  0x94   :  { %v104_v48 = vpop.permute.xlu0 %103   ;;  %v110_v49 = vpop.permute.xlu1 %109  }
  0x95   :  { %106 = vst.msk [vmem:[#allocation0] sm:$0x1] %vm105_vm1, %v104_v48  }
  0x96   :  { %112 = vst.msk [vmem:[#allocation0] sm:$0x1] %vm111_vm2, %v110_v49  }
  0x98   :  { %v116_v50 = vpop.permute.xlu0 %115   ;;  %v122_v51 = vpop.permute.xlu1 %121  }
  0x99   :  { %118 = vst.msk [vmem:[#allocation0] sm:$0x1] %vm117_vm3, %v116_v50  }
  0x9a   :  { %124 = vst.msk [vmem:[#allocation0] sm:$0x1] %vm123_vm4, %v122_v51  }
  0x9c   :  { %v128_v52 = vpop.permute.xlu0 %127   ;;  %v134_v53 = vpop.permute.xlu1 %133  }
  0x9d   :  { %130 = vst.msk [vmem:[#allocation0] sm:$0x1] %vm129_vm5, %v128_v52  }
  0x9e   :  { %136 = vst.msk [vmem:[#allocation0] sm:$0x1] %vm135_vm6, %v134_v53  }
  0xa0   :  { %v140_v54 = vpop.permute.xlu0 %139   ;;  %v146_v55 = vpop.permute.xlu1 %145  }
  0xa1   :  { %142 = vst.msk [vmem:[#allocation0] sm:$0x1] %vm141_vm7, %v140_v54  }
  0xa2   :  { %148 = vst.msk [vmem:[#allocation0] sm:$0x1] %vm147_vm8, %v146_v55  }
  0xa4   :  { %v152_v56 = vpop.permute.xlu0 %151   ;;  %v158_v57 = vpop.permute.xlu1 %157  }
  0xa5   :  { %154 = vst.msk [vmem:[#allocation0] sm:$0x1] %vm153_vm9, %v152_v56  }
  0xa6   :  { %160 = vst.msk [vmem:[#allocation0] sm:$0x1] %vm159_vm10, %v158_v57  }
  0xa8   :  { %v164_v58 = vpop.permute.xlu0 %163   ;;  %v170_v59 = vpop.permute.xlu1 %169  }
  0xa9   :  { %166 = vst.msk [vmem:[#allocation0] sm:$0x1] %vm165_vm11, %v164_v58  }
  0xaa   :  { %172 = vst.msk [vmem:[#allocation0] sm:$0x1] %vm171_vm12, %v170_v59  }
  0xac   :  { %v176_v60 = vpop.permute.xlu0 %175   ;;  %v182_v61 = vpop.permute.xlu1 %181  }
  0xad   :  { %178 = vst.msk [vmem:[#allocation0] sm:$0x1] %vm177_vm13, %v176_v60  }
  0xae   :  { %184 = vst.msk [vmem:[#allocation0] sm:$0x1] %vm183_vm14, %v182_v61  }
  0xb0   :  { %v188_v62 = vpop.permute.xlu0 %187  }
  0xb1   :  { %190 = vst.msk [vmem:[#allocation0] sm:$0x1] %vm189_vm15, %v188_v62  }
  0xb8   :  { %v194_v63 = vld [vmem:[#allocation0] sm:$0x1] }
  0xb9   :  { %196 = vst [vmem:[%s400_s1] sm:$0x1] %v194_v63 }

// kernel: tile.22
= control target key start
LH: loop header
LB: loop body
LE: loop exit
PB: predicated region body
PF: predicated region fallthrough
CT: control target
= control target key end

     0   :  { %s28_s0 = inlined_call_operand.vmem [shape: f32[4], index: 0, kind: input, shape index: {}]   ;;  %s29_s1 = inlined_call_operand.vmem [shape: f32[16,4], index: 1, kind: output, shape index: {}]  }
   0x1   :  { %v4_v0 = vld [vmem:[%s28_s0] ss:$0 sm:$0xff] }
   0x2   :  { %5 = vst [vmem:[%s29_s1] sm:$0xff] %v4_v0  ;;  %8 = vst [vmem:[%s29_s1 + $0x8] sm:$0xff] %v4_v0 }

// kernel: tile.23
= control target key start
LH: loop header
LB: loop body
LE: loop exit
PB: predicated region body
PF: predicated region fallthrough
CT: control target
= control target key end

     0   :  { %s131_s10 = smov 60   ;;  %s132_s11 = smov 52   ;;  %vm3_vm0 = vcmask 31744   ;;  %vm9_vm1 = vcmask 523744   ;;  %vm15_vm2 = vcmask 490944   ;;  %vm21_vm3 = vcmask 458144   ;;  %s207_s0 = inlined_call_operand.vmem [shape: f32[16,4], index: 0, kind: input, shape index: {}]   ;;  %s208_s1 = inlined_call_operand.vmem [shape: f32[1,64], index: 1, kind: output, shape index: {}]  }
   0x1   :  { %v101_v0 = vld [vmem:[%s207_s0 + $0xf] sm:$0x1]   ;;  %v103_v1 = vld [vmem:[%s207_s0 + $0xd] sm:$0x1]   ;;  %v102_v2 = vld [vmem:[%s207_s0 + $0xe] sm:$0x1]  }
   0x2   :  { %7 = vrot.lane.b32.xlu0 %v101_v0, %s131_s10  ;;  %19 = vrot.lane.b32.xlu1 %v103_v1, %s132_s11  ;;  %v104_v3 = vld [vmem:[%s207_s0 + $0xc] sm:$0x1]   ;;  %s133_s16 = smov 56   ;;  %s134_s17 = smov 48   ;;  %v105_v4 = vld [vmem:[%s207_s0 + $0xb] sm:$0x1]  }
   0x3   :  { %v106_v5 = vld [vmem:[%s207_s0 + $0xa] sm:$0x1]   ;;  %v2_v6 = vld [vmem:[%s207_s0] sm:$0x1]   ;;  %s135_s24 = smov 44   ;;  %s136_s25 = smov 40  }
   0x4   :  { %4 = vst.msk [vmem:[#allocation0] sm:$0x1] %vm3_vm0, %v2_v6   ;;  %v107_v7 = vld [vmem:[%s207_s0 + $0x9] sm:$0x1]   ;;  %v108_v8 = vld [vmem:[%s207_s0 + $0x8] sm:$0x1]  }
   0x5   :  { %s137_s30 = smov 36   ;;  %s138_s2 = smov 32   ;;  %v109_v9 = vld [vmem:[%s207_s0 + $0x7] sm:$0x1]   ;;  %v110_v10 = vld [vmem:[%s207_s0 + $0x6] sm:$0x1]  }
   0x6   :  { %13 = vrot.lane.b32.xlu0 %v102_v2, %s133_s16  ;;  %25 = vrot.lane.b32.xlu1 %v104_v3, %s134_s17  ;;  %s139_s7 = smov 28   ;;  %s140_s8 = smov 24   ;;  %v111_v11 = vld [vmem:[%s207_s0 + $0x5] sm:$0x1]   ;;  %v112_v12 = vld [vmem:[%s207_s0 + $0x4] sm:$0x1]  }
   0x7   :  { %s141_s13 = smov 20   ;;  %s142_s14 = smov 16   ;;  %v113_v13 = vld [vmem:[%s207_s0 + $0x3] sm:$0x1]   ;;  %v114_v14 = vld [vmem:[%s207_s0 + $0x2] sm:$0x1]  }
   0x8   :  { %s143_s19 = smov 12   ;;  %s144_s20 = smov 8   ;;  %v115_v15 = vld [vmem:[%s207_s0 + $0x1] sm:$0x1]   ;;  %vm27_vm4 = vcmask 425344   ;;  %vm33_vm5 = vcmask 392544  }
   0x9   :  { %s145_s0 = smov 4   ;;  %vm39_vm6 = vcmask 359744   ;;  %vm45_vm7 = vcmask 326944   ;;  %vm51_vm8 = vcmask 294144   ;;  %vm57_vm9 = vcmask 261344  }
   0xa   :  { %31 = vrot.lane.b32.xlu0 %v105_v4, %s135_s24  ;;  %37 = vrot.lane.b32.xlu1 %v106_v5, %s136_s25  ;;  %vm63_vm10 = vcmask 228544   ;;  %vm69_vm11 = vcmask 195744   ;;  %vm75_vm12 = vcmask 162944   ;;  %vm81_vm13 = vcmask 130144  }
   0xb   :  { %vm87_vm14 = vcmask 97344   ;;  %vm93_vm15 = vcmask 64544  }
   0xe   :  { %43 = vrot.lane.b32.xlu0 %v107_v7, %s137_s30  ;;  %49 = vrot.lane.b32.xlu1 %v108_v8, %s138_s2 }
  0x12   :  { %55 = vrot.lane.b32.xlu0 %v109_v9, %s139_s7  ;;  %61 = vrot.lane.b32.xlu1 %v110_v10, %s140_s8 }
  0x16   :  { %67 = vrot.lane.b32.xlu0 %v111_v11, %s141_s13  ;;  %73 = vrot.lane.b32.xlu1 %v112_v12, %s142_s14 }
  0x1a   :  { %79 = vrot.lane.b32.xlu0 %v113_v13, %s143_s19  ;;  %85 = vrot.lane.b32.xlu1 %v114_v14, %s144_s20 }
  0x1e   :  { %91 = vrot.lane.b32.xlu0 %v115_v15, %s145_s0 }
  0x74   :  { %v8_v16 = vpop.permute.xlu0 %7   ;;  %v20_v17 = vpop.permute.xlu1 %19  }
  0x75   :  { %10 = vst.msk [vmem:[#allocation0] sm:$0x1] %vm9_vm1, %v8_v16  }
  0x78   :  { %v14_v18 = vpop.permute.xlu0 %13   ;;  %v26_v19 = vpop.permute.xlu1 %25  }
  0x79   :  { %16 = vst.msk [vmem:[#allocation0] sm:$0x1] %vm15_vm2, %v14_v18  }
  0x7a   :  { %22 = vst.msk [vmem:[#allocation0] sm:$0x1] %vm21_vm3, %v20_v17  }
  0x7b   :  { %28 = vst.msk [vmem:[#allocation0] sm:$0x1] %vm27_vm4, %v26_v19  }
  0x7c   :  { %v32_v20 = vpop.permute.xlu0 %31   ;;  %v38_v21 = vpop.permute.xlu1 %37  }
  0x7d   :  { %34 = vst.msk [vmem:[#allocation0] sm:$0x1] %vm33_vm5, %v32_v20  }
  0x7e   :  { %40 = vst.msk [vmem:[#allocation0] sm:$0x1] %vm39_vm6, %v38_v21  }
  0x80   :  { %v44_v22 = vpop.permute.xlu0 %43   ;;  %v50_v23 = vpop.permute.xlu1 %49  }
  0x81   :  { %46 = vst.msk [vmem:[#allocation0] sm:$0x1] %vm45_vm7, %v44_v22  }
  0x82   :  { %52 = vst.msk [vmem:[#allocation0] sm:$0x1] %vm51_vm8, %v50_v23  }
  0x84   :  { %v56_v24 = vpop.permute.xlu0 %55   ;;  %v62_v25 = vpop.permute.xlu1 %61  }
  0x85   :  { %58 = vst.msk [vmem:[#allocation0] sm:$0x1] %vm57_vm9, %v56_v24  }
  0x86   :  { %64 = vst.msk [vmem:[#allocation0] sm:$0x1] %vm63_vm10, %v62_v25  }
  0x88   :  { %v68_v26 = vpop.permute.xlu0 %67   ;;  %v74_v27 = vpop.permute.xlu1 %73  }
  0x89   :  { %70 = vst.msk [vmem:[#allocation0] sm:$0x1] %vm69_vm11, %v68_v26  }
  0x8a   :  { %76 = vst.msk [vmem:[#allocation0] sm:$0x1] %vm75_vm12, %v74_v27  }
  0x8c   :  { %v80_v28 = vpop.permute.xlu0 %79   ;;  %v86_v29 = vpop.permute.xlu1 %85  }
  0x8d   :  { %82 = vst.msk [vmem:[#allocation0] sm:$0x1] %vm81_vm13, %v80_v28  }
  0x8e   :  { %88 = vst.msk [vmem:[#allocation0] sm:$0x1] %vm87_vm14, %v86_v29  }
  0x90   :  { %v92_v30 = vpop.permute.xlu0 %91  }
  0x91   :  { %94 = vst.msk [vmem:[#allocation0] sm:$0x1] %vm93_vm15, %v92_v30  }
  0x98   :  { %v98_v31 = vld [vmem:[#allocation0] sm:$0x1] }
  0x99   :  { %100 = vst [vmem:[%s208_s1] sm:$0x1] %v98_v31 }

// kernel: ds_out_forward.1
= control target key start
LH: loop header
LB: loop body
LE: loop exit
PB: predicated region body
PF: predicated region fallthrough
CT: control target
= control target key end

     0   :  { %17 = vsyncpa [#allocation3], 0  ;;  %s23124_s0 = inlined_call_operand.vmem [shape: f32[2,16,64], index: 0, kind: input, shape index: {}]   ;;  %s23125_s1 = inlined_call_operand.vmem [shape: f32[64,64], index: 1, kind: input, shape index: {}]   ;;  %s23126_s2 = inlined_call_operand.vmem [shape: f32[3,32,16], index: 2, kind: input, shape index: {}]   ;;  %s23127_s3 = inlined_call_operand.vmem [shape: f32[2,32,32], index: 3, kind: input, shape index: {}]   ;;  %s23128_s4 = inlined_call_operand.vmem [shape: f32[1,64], index: 4, kind: input, shape index: {}]   ;;  %s23129_s5 = inlined_call_operand.vmem [shape: f32[1,64], index: 5, kind: input, shape index: {}]   ;;  %s23130_s6 = inlined_call_operand.vmem [shape: f32[3,64,128], index: 6, kind: input, shape index: {}]   ;;  %s23131_s7 = inlined_call_operand.vmem [shape: f32[1,128], index: 7, kind: input, shape index: {}]   ;;  %s23132_s8 = inlined_call_operand.vmem [shape: f32[3,128,128], index: 8, kind: input, shape index: {}]   ;;  %s23133_s9 = inlined_call_operand.vmem [shape: f32[1,128], index: 9, kind: input, shape index: {}]   ;;  %s23134_s10 = inlined_call_operand.vmem [shape: f32[3,128,32], index: 10, kind: input, shape index: {}]   ;;  %s23135_s11 = inlined_call_operand.vmem [shape: f32[1,32], index: 11, kind: input, shape index: {}]   ;;  %s23136_s12 = inlined_call_operand.hbm [shape: f32[2,32,32], index: 12, kind: output, shape index: {}]  }
   0x1   :  { %19 = vsyncpa [#allocation3 + $0x1], 0  ;;  %s19297_s21 = smov 0   ;;  %s19299_s22 = smov 0  }
   0x2   :  { %s19301_s23 = smov 0   ;;  %s19303_s24 = smov 0  }
   0x3 LB: > { %s19318_s25 = sadd.s32 4294967295, %s19227_s24   ;;  %s12863_s26 = sadd.s32 4294967294, %s19227_s24   ;;  %s19227_s24 = sphi %s19303_s24, %s23392_s24   ;;  %s19223_s23 = sphi %s19301_s23, %s23391_s23   ;;  %s19219_s22 = sphi %s19299_s22, %s23390_s22   ;;  %s19215_s21 = sphi %s19297_s21, %s23389_s21  }
   0x4   : > { %s19322_s27 = sadd.s32 1, %s19227_s24   ;;  %s289_s28 = sadd.s32 1, %s19223_s23 }
   0x5   : > { %s286_s29 = ssub.s32 %s19227_s24, %s19322_s27  ;;  %p299_p0 = scmp.ne.s32.totalorder %s19223_s23, %s19219_s22 }
   0x6   : > { %p287_p1 = scmp.eq.s32.totalorder %s286_s29, 0  ;;  %p300_p2 = scmp.eq.s32.totalorder %s19318_s25, 1 }
   0x7   : > { %p305_p3 = scmp.ne.s32.totalorder %s19219_s22, %s19215_s21  ;;  %p306_p4 = scmp.eq.s32.totalorder %s12863_s26, 1 }
   0x8   : > { %s19333_s30 = scalar_select %p287_p1, %s19223_s23, %s289_s28  }
   0x9   : > { %p19335_p5 = por %p300_p2, %p299_p0  ;;  %p19339_p6 = por %p306_p4, %p305_p3 }
   0xa   : > { %23242 = sst [smem:[#allocation5_spill]] %s19333_s30  ;;  %p12866_p7 = scmp.ge.s32.totalorder %s19227_s24, 1 }
   0xb   : > { %p365_p8 = scmp.lt.s32.totalorder %s19227_s24, 3 }
   0xd   : > { %p366_p9 = pnand %p12866_p7, %p365_p8 }
   0xf   : > { %369 = sbr.rel (%p366_p9) target bundleno = 3196 (0xc7c), region = 68 }
  0x16   : > { %v414_v0 = vld [vmem:[%s23125_s1] sm:$0xff]  ;;  %v415_v1 = vld [vmem:[%s23125_s1 + $0x8] sm:$0xff]  ;;  %v416_v2 = vld [vmem:[%s23125_s1 + $0x10] sm:$0xff]  ;;  %p407_p10 = scmp.lt.s32.totalorder %s19318_s25, 1  ;;  %vm422_vm0 = vcmask 523264   ;;  %vm1625_vm1 = vcmask 130048  }
  0x17   : > { %v430_v3 = vand.u32 4294901760, %v414_v0  ;;  %v433_v4 = vand.u32 4294901760, %v415_v1  ;;  %v417_v5 = vld [vmem:[%s23125_s1 + $0x18] sm:$0xff]  ;;  %v436_v6 = vand.u32 4294901760, %v416_v2  ;;  %v418_v7 = vld [vmem:[%s23125_s1 + $0x20] sm:$0xff]  ;;  %v419_v8 = vld [vmem:[%s23125_s1 + $0x28] sm:$0xff] }
  0x18   : > { %v439_v9 = vand.u32 4294901760, %v417_v5  ;;  %v442_v10 = vand.u32 4294901760, %v418_v7  ;;  %v445_v11 = vand.u32 4294901760, %v419_v8  ;;  %v420_v12 = vld [vmem:[%s23125_s1 + $0x30] sm:$0xff]  ;;  %v421_v13 = vld [vmem:[%s23125_s1 + $0x38] sm:$0xff]  ;;  %s408_s26 = scalar_select %p407_p10, %s19318_s25, 1 }
  0x19   : > { %v19371_v14 = vpack.c.bf16 %v433_v4, %v430_v3  ;;  %v448_v15 = vand.u32 4294901760, %v420_v12  ;;  %v451_v16 = vand.u32 4294901760, %v421_v13  ;;  %v19373_v17 = vsub.f32 %v414_v0, %v430_v3  ;;  %s404_s16 = sand.u32 1, %s19219_s22   ;;  %s12977_s18 = sshll.u32 %s19318_s25, 9 }
  0x1a   : > { %v19375_v18 = vpack.c.bf16 %v439_v9, %v436_v6  ;;  %v19377_v19 = vpack.c.bf16 %v445_v11, %v442_v10  ;;  %s12976_s28 = sshll.u32 %s408_s26, 4  ;;  %v19379_v20 = vsub.f32 %v415_v1, %v433_v4  ;;  %v19381_v21 = vsub.f32 %v416_v2, %v436_v6  ;;  %s12867_s17 = sshll.u32 %s404_s16, 5 }
  0x1b   : > { %16843 = vmatprep.subr.bf16.mxu0 %v19371_v14  ;;  %v19384_v22 = vpack.c.bf16 %v451_v16, %v448_v15  ;;  %s411_s15 = scalar_lea.vmem %s23124_s0, %s12976_s28  ;;  %v525_v23 = vand.u32 4294901760, %v19373_v17  ;;  %v19390_v24 = vsub.f32 %v417_v5, %v439_v9  ;;  %v19392_v25 = vsub.f32 %v418_v7, %v442_v10  ;;  %s406_s19 = scalar_lea.vmem [#allocation2], %s12867_s17 }
  0x1c   : > { %16845 = vmatpush3.bf16.msra.mxu0 %v19371_v14  ;;  %v19395_v26 = vld [vmem:[%s411_s15] sm:$0xff]  ;;  %v19397_v27 = vld [vmem:[%s411_s15 + $0x8] sm:$0xff]  ;;  %v532_v28 = vand.u32 4294901760, %v19379_v20  ;;  %v539_v29 = vand.u32 4294901760, %v19381_v21  ;;  %v19401_v30 = vsub.f32 %v419_v8, %v445_v11  ;;  %v19403_v31 = vsub.f32 %v420_v12, %v448_v15  ;;  %s12801_s20 = sshll.u32 %s406_s19, 4  ;;  %s23077_s30 = scalar_lea.hbm %s23136_s12, %s12977_s18  ;;  %s23079_s20 = int_to_ptr.vmem [resolvable:$true] %s12801_s20 }
  0x1d   : > { %16847 = vmatprep.subr.bf16.mxu0 %v19375_v18  ;;  %v424_v32 = vsel %vm422_vm0, %v19395_v26, 0  ;;  %v526_v33 = vsub.f32 %v19373_v17, %v525_v23  ;;  %v427_v34 = vsel %vm422_vm0, %v19397_v27, 0  ;;  %v546_v35 = vand.u32 4294901760, %v19390_v24  ;;  %s23083_s25 = scalar_lea.sflag [#allocation3], %s404_s16  ;;  %s19165_s29 = scalar_lea.vmem %s23079_s20, 512 }
  0x1e   : > { %v19414_v36 = vand.u32 4294901760, %v424_v32  ;;  %v533_v37 = vsub.f32 %v19379_v20, %v532_v28  ;;  %v19419_v38 = vand.u32 4294901760, %v427_v34  ;;  %v540_v39 = vsub.f32 %v19381_v21, %v539_v29  ;;  %p19166_p11 = scmp.ne.s32.totalorder %s23079_s20, %s19165_s29  ;;  %s19229_s15 = smov [#allocation2]  }
  0x1f   : > { %v527_v40 = vand.u32 4294901760, %v526_v33  ;;  %v547_v41 = vsub.f32 %v19390_v24, %v546_v35  ;;  %v553_v42 = vand.u32 4294901760, %v19392_v25  ;;  %v560_v43 = vand.u32 4294901760, %v19401_v30  ;;  %s19169_s17 = sshll.u32 %s19229_s15, 4  ;;  %s19170_s17 = int_to_ptr.vmem [resolvable:$false] %s19169_s17 }
  0x20   : > { %16849 = vmatpush3.bf16.msra.mxu0 %v19375_v18  ;;  %v19431_v44 = vsub.f32 %v424_v32, %v19414_v36  ;;  %v534_v45 = vand.u32 4294901760, %v533_v37  ;;  %v19434_v46 = vsub.f32 %v427_v34, %v19419_v38  ;;  %v541_v47 = vand.u32 4294901760, %v540_v39  ;;  %v12872_v39 = vld [vmem:[%s23126_s2 + $0x20] sm:$0xff]  ;;  %p19167_p12 = pnand %p19166_p11, %p19335_p5  ;;  %s19171_s18 = scalar_lea.vmem %s19170_s17, 1024 }
  0x21   : > { %16851 = vmatprep.subr.bf16.mxu0 %v19377_v19  ;;  %v548_v48 = vand.u32 4294901760, %v547_v41  ;;  %v554_v49 = vsub.f32 %v19392_v25, %v553_v42  ;;  %v561_v50 = vsub.f32 %v19401_v30, %v560_v43  ;;  %v567_v51 = vand.u32 4294901760, %v19403_v31  ;;  %p19172_p0 = scmp.lt.s32.totalorder %s23079_s20, %s19170_s17  ;;  %p19173_p1 = scmp.lt.s32.totalorder %s19171_s18, %s19165_s29 }
  0x22   : > { %v504_v52 = vand.u32 4294901760, %v19431_v44  ;;  %v16858_v53 = vpack.c.bf16 %v534_v45, %v527_v40  ;;  %v514_v54 = vand.u32 4294901760, %v19434_v46  ;;  %v19446_v55 = vsub.f32 %v421_v13, %v451_v16  ;;  %p19168_p13 = pneg %p19167_p12 }
  0x23   : > { %v16862_v56 = vpack.c.bf16 %v548_v48, %v541_v47  ;;  %v555_v57 = vand.u32 4294901760, %v554_v49  ;;  %v562_v58 = vand.u32 4294901760, %v561_v50  ;;  %v568_v61 = vsub.f32 %v19403_v31, %v567_v51  ;;  %v1622_v50 = vld [vmem:[%s23126_s2 + $0x8] sm:$0xff]  ;;  %p19174_p2 = por %p19173_p1, %p19172_p0 }
  0x24   : > { %16853 = vmatpush3.bf16.msra.mxu0 %v19377_v19  ;;  %v505_v59 = vsub.f32 %v19431_v44, %v504_v52  ;;  %v515_v60 = vsub.f32 %v19434_v46, %v514_v54  ;;  %v574_v62 = vand.u32 4294901760, %v19446_v55  ;;  %16955 = vmatprep.subr.bf16.mxu1 %v16858_v53  ;;  %v19465_v6 = vpack.c.bf16 %v19379_v20, %v19373_v17 }
  0x25   : > { %16855 = vmatprep.subr.bf16.mxu0 %v19384_v22  ;;  %16957 = vmatpush3.bf16.msra.mxu1 %v16858_v53  ;;  %v16866_v2 = vpack.c.bf16 %v562_v58, %v555_v57  ;;  %v569_v3 = vand.u32 4294901760, %v568_v61  ;;  %v19471_v7 = vpack.c.bf16 %v19390_v24, %v19381_v21  ;;  %v19479_v8 = vpack.c.bf16 %v19401_v30, %v19392_v25  ;;  %p19175_p3 = pnand %p19174_p2, %p19168_p13 }
  0x26   : > { %v506_v63 = vand.u32 4294901760, %v505_v59  ;;  %v575_v0 = vsub.f32 %v19446_v55, %v574_v62  ;;  %16959 = vmatprep.subr.bf16.mxu1 %v16862_v56  ;;  %v516_v1 = vand.u32 4294901760, %v515_v60  ;;  %v19485_v9 = vpack.c.bf16 %v19446_v55, %v19403_v31  ;;  %v12870_v59 = vld [vmem:[%s23128_s4] ss:$0 sm:$0xff] }
  0x27   : > { %v19502_v10 = vpack.c.bf16 %v532_v28, %v525_v23  ;;  %v19510_v11 = vpack.c.bf16 %v546_v35, %v539_v29  ;;  %v19521_v12 = vpack.c.bf16 %v560_v43, %v553_v42  ;;  %v19529_v13 = vpack.c.bf16 %v574_v62, %v567_v51  ;;  %v1623_v51 = vld [vmem:[%s23126_s2 + $0x10] sm:$0xff] }
  0x28   : > { %16857 = vmatpush3.bf16.msra.mxu0 %v19384_v22  ;;  %14350 = vmatprep.mubr.f32.mxu0 %v506_v63  ;;  %v576_v4 = vand.u32 4294901760, %v575_v0  ;;  %v19613_v40 = vsel %vm1625_vm1, %v12872_v39, 0  ;;  %vm5519_vm2 = vcmask 261120  }
  0x29   : > { %16859 = vmatprep.subr.bf16.mxu0 %v16858_v53  ;;  %16961 = vmatpush3.bf16.msra.mxu1 %v16862_v56  ;;  %v19616_v41 = vand.u32 4294901760, %v19613_v40 }
  0x2a   : > { %16963 = vmatprep.subr.bf16.mxu1 %v16866_v2  ;;  %v16870_v5 = vpack.c.bf16 %v576_v4, %v569_v3 }
  0x2b   : > { %14351 = vmatmul.mubr.f32.vlgmr.msra.gmra.mrb[0].mxu0 %v516_v1  ;;  %v12871_v1 = vld [vmem:[%s23129_s5] ss:$0 sm:$0xff] }
  0x2c   : > { %16861 = vmatpush3.bf16.msra.mxu0 %v16858_v53  ;;  %14369 = vmatprep.mubr.f32.mxu0 %v19414_v36  ;;  %v1633_v53 = vsel %vm1625_vm1, %v1623_v51, 0 }
  0x2d   : > { %16863 = vmatprep.subr.bf16.mxu0 %v16862_v56  ;;  %16965 = vmatpush3.bf16.msra.mxu1 %v16866_v2 }
  0x2e   : > { %16967 = vmatprep.subr.bf16.mxu1 %v16870_v5 }
  0x30   : > { %16865 = vmatpush3.bf16.msra.mxu0 %v16862_v56  ;;  %v19632_v56 = vand.u32 4294901760, %v1633_v53 }
  0x31   : > { %16867 = vmatprep.subr.bf16.mxu0 %v16866_v2  ;;  %16969 = vmatpush3.bf16.msra.mxu1 %v16870_v5 }
  0x32   : > { %16971 = vmatprep.subr.bf16.mxu1 %v19465_v6  ;;  %v19645_v0 = vsub.f32 %v1633_v53, %v19632_v56  ;;  %v12878_v53 = vld [vmem:[%s23126_s2 + $0x50] sm:$0xff] }
  0x34   : > { %16869 = vmatpush3.bf16.msra.mxu0 %v16866_v2 }
  0x35   : > { %16871 = vmatprep.subr.bf16.mxu0 %v16870_v5 }
  0x38   : > { %16873 = vmatpush3.bf16.msra.mxu0 %v16870_v5 }
  0x39   : > { %16875 = vmatprep.subr.bf16.mxu0 %v19465_v6 }
  0x3b   : > { %14370 = vmatmul.mubr.f32.vlgmr.msra.gmra.mrb[0].mxu0 %v19419_v38 }
  0x3c   : > { %16877 = vmatpush3.bf16.msra.mxu0 %v19465_v6  ;;  %14388 = vmatprep.mubr.f32.mxu0 %v19431_v44 }
  0x3d   : > { %16879 = vmatprep.subr.bf16.mxu0 %v19471_v7 }
  0x40   : > { %16881 = vmatpush3.bf16.msra.mxu0 %v19471_v7 }
  0x41   : > { %16883 = vmatprep.subr.bf16.mxu0 %v19479_v8 }
  0x44   : > { %16885 = vmatpush3.bf16.msra.mxu0 %v19479_v8 }
  0x45   : > { %16887 = vmatprep.subr.bf16.mxu0 %v19485_v9 }
  0x48   : > { %16889 = vmatpush3.bf16.msra.mxu0 %v19485_v9 }
  0x49   : > { %16891 = vmatprep.subr.bf16.mxu0 %v19371_v14 }
  0x4b   : > { %14389 = vmatmul.mubr.f32.vlgmr.msra.gmra.mrb[0].mxu0 %v19434_v46 }
  0x4c   : > { %16893 = vmatpush3.bf16.msra.mxu0 %v19371_v14  ;;  %14407 = vmatprep.mubr.f32.mxu0 %v504_v52  ;;  %v1630_v52 = vsel %vm1625_vm1, %v1622_v50, 0 }
  0x4d   : > { %16895 = vmatprep.subr.bf16.mxu0 %v19375_v18  ;;  %v19630_v55 = vand.u32 4294901760, %v1630_v52 }
  0x4f   : > { %v19639_v60 = vsub.f32 %v1630_v52, %v19630_v55  ;;  %v12877_v52 = vld [vmem:[%s23126_s2 + $0x48] sm:$0xff] }
  0x50   : > { %16897 = vmatpush3.bf16.msra.mxu0 %v19375_v18 }
  0x51   : > { %16899 = vmatprep.subr.bf16.mxu0 %v19377_v19  ;;  %v1717_v5 = vand.u32 4294901760, %v19639_v60 }
  0x54   : > { %16901 = vmatpush3.bf16.msra.mxu0 %v19377_v19 }
  0x55   : > { %16903 = vmatprep.subr.bf16.mxu0 %v19384_v22 }
  0x58   : > { %16905 = vmatpush3.bf16.msra.mxu0 %v19384_v22 }
  0x59   : > { %16907 = vmatprep.subr.bf16.mxu0 %v19502_v10 }
  0x5b   : > { %14408 = vmatmul.mubr.f32.vlgmr.msra.gmra.mrb[0].mxu0 %v514_v54  ;;  %v1624_v54 = vld [vmem:[%s23126_s2 + $0x18] sm:$0xff] }
  0x5c   : > { %16909 = vmatpush3.bf16.msra.mxu0 %v19502_v10  ;;  %14426 = vmatprep.mubr.f32.mxu0 %v19414_v36  ;;  %v1636_v57 = vsel %vm1625_vm1, %v1624_v54, 0 }
  0x5d   : > { %16911 = vmatprep.subr.bf16.mxu0 %v19510_v11  ;;  %v19641_v61 = vand.u32 4294901760, %v1636_v57 }
  0x60   : > { %16913 = vmatpush3.bf16.msra.mxu0 %v19510_v11 }
  0x61   : > { %16915 = vmatprep.subr.bf16.mxu0 %v19521_v12 }
  0x64   : > { %16917 = vmatpush3.bf16.msra.mxu0 %v19521_v12 }
  0x65   : > { %16919 = vmatprep.subr.bf16.mxu0 %v19529_v13 }
  0x68   : > { %16921 = vmatpush3.bf16.msra.mxu0 %v19529_v13 }
  0x69   : > { %16923 = vmatprep.subr.bf16.mxu0 %v19371_v14 }
  0x6b   : > { %14427 = vmatmul.mubr.f32.vlgmr.msra.gmra.mrb[0].mxu0 %v19419_v38 }
  0x6c   : > { %16925 = vmatpush3.bf16.msra.mxu0 %v19371_v14  ;;  %14445 = vmatprep.mubr.f32.mxu0 %v19414_v36  ;;  %v1621_v36 = vld [vmem:[%s23126_s2] sm:$0xff] }
  0x6d   : > { %16927 = vmatprep.subr.bf16.mxu0 %v19375_v18 }
  0x70   : > { %16929 = vmatpush3.bf16.msra.mxu0 %v19375_v18 }
  0x71   : > { %16931 = vmatprep.subr.bf16.mxu0 %v19377_v19 }
  0x74   : > { %16933 = vmatpush3.bf16.msra.mxu0 %v19377_v19 }
  0x75   : > { %16935 = vmatprep.subr.bf16.mxu0 %v19384_v22 }
  0x78   : > { %16937 = vmatpush3.bf16.msra.mxu0 %v19384_v22 }
  0x79   : > { %16939 = vmatprep.subr.bf16.mxu0 %v19371_v14 }
  0x7b   : > { %14446 = vmatmul.mubr.f32.vlgmr.msra.gmra.mrb[0].mxu0 %v19419_v38 }
  0x7c   : > { %16941 = vmatpush3.bf16.msra.mxu0 %v19371_v14 }
  0x7d   : > { %16943 = vmatprep.subr.bf16.mxu0 %v19375_v18 }
  0x80   : > { %16945 = vmatpush3.bf16.msra.mxu0 %v19375_v18 }
  0x81   : > { %16947 = vmatprep.subr.bf16.mxu0 %v19377_v19 }
  0x84   : > { %16949 = vmatpush3.bf16.msra.mxu0 %v19377_v19 }
  0x85   : > { %16951 = vmatprep.subr.bf16.mxu0 %v19384_v22 }
  0x88   : > { %16953 = vmatpush3.bf16.msra.mxu0 %v19384_v22 }
 0x14e   : > { %v14447_v15 = vpop.f32.mrb[0].mxu0 }
 0x14f   : > { %v19554_v16 = vsub.f32 %v19397_v27, %v14447_v15  ;;  %v999_v17 = vpop.f32.mrb[1].mxu0 }
 0x150   : > { %v19557_v20 = vsub.f32 %v19395_v26, %v999_v17 }
 0x151   : > { %v1012_v21 = vmul.f32 %v19554_v16, %v19554_v16 }
 0x152   : > { %v1011_v23 = vmul.f32 %v19557_v20, %v19557_v20 }
 0x153   : > { %v1017_v24 = vsel %vm422_vm0, %v1012_v21, 0 }
 0x154   : > { %v1102_v25 = vand.u32 4294901760, %v1017_v24  ;;  %v1014_v28 = vsel %vm422_vm0, %v1011_v23, 0 }
 0x155   : > { %v1092_v29 = vand.u32 4294901760, %v1014_v28 }
 0x156   : > { %v1103_v30 = vsub.f32 %v1017_v24, %v1102_v25 }
 0x157   : > { %14483 = vmatprep.mubr.f32.mxu1 %v1092_v29  ;;  %v1093_v27 = vsub.f32 %v1014_v28, %v1092_v29 }
 0x158   : > { %14484 = vmatmul.mubr.f32.vlgmr.msra.gmra.mrb[0].mxu1 %v1102_v25  ;;  %v1104_v31 = vand.u32 4294901760, %v1103_v30 }
 0x159   : > { %16973 = vmatpush3.bf16.msra.mxu1 %v19465_v6  ;;  %14502 = vmatprep.mubr.f32.mxu1 %v1093_v27  ;;  %v1094_v26 = vand.u32 4294901760, %v1093_v27  ;;  %v19653_v6 = vsub.f32 %v1636_v57, %v19641_v61  ;;  %v2840_v57 = vsel %vm1625_vm1, %v12877_v52, 0 }
 0x15a   : > { %16975 = vmatprep.subr.bf16.mxu1 %v19471_v7  ;;  %v1105_v32 = vsub.f32 %v1103_v30, %v1104_v31 }
 0x15b   : > { %v1095_v33 = vsub.f32 %v1093_v27, %v1094_v26 }
 0x15c   : > { %v1106_v35 = vand.u32 4294901760, %v1105_v32  ;;  %v12873_v32 = vld [vmem:[%s23126_s2 + $0x28] sm:$0xff] }
 0x15d   : > { %16977 = vmatpush3.bf16.msra.mxu1 %v19471_v7  ;;  %v1096_v34 = vand.u32 4294901760, %v1095_v33 }
 0x15e   : > { %16979 = vmatprep.subr.bf16.mxu1 %v19479_v8 }
 0x15f   : > { %14464 = vmatprep.mubr.f32.mxu0 %v1096_v34 }
 0x160   : > { %14465 = vmatmul.mubr.f32.vlgmr.msra.gmra.mrb[2].mxu0 %v1106_v35 }
 0x161   : > { %16981 = vmatpush3.bf16.msra.mxu1 %v19479_v8  ;;  %v1727_v8 = vand.u32 4294901760, %v19645_v0 }
 0x162   : > { %16983 = vmatprep.subr.bf16.mxu1 %v19485_v9 }
 0x165   : > { %16985 = vmatpush3.bf16.msra.mxu1 %v19485_v9 }
 0x166   : > { %16987 = vmatprep.subr.bf16.mxu1 %v19371_v14 }
 0x168   : > { %14503 = vmatmul.mubr.f32.vlgmr.msra.gmra.mrb[0].mxu1 %v1103_v30 }
 0x169   : > { %16989 = vmatpush3.bf16.msra.mxu1 %v19371_v14  ;;  %14521 = vmatprep.mubr.f32.mxu1 %v1094_v26 }
 0x16a   : > { %16991 = vmatprep.subr.bf16.mxu1 %v19375_v18 }
 0x16d   : > { %16993 = vmatpush3.bf16.msra.mxu1 %v19375_v18 }
 0x16e   : > { %16995 = vmatprep.subr.bf16.mxu1 %v19377_v19 }
 0x171   : > { %16997 = vmatpush3.bf16.msra.mxu1 %v19377_v19 }
 0x172   : > { %16999 = vmatprep.subr.bf16.mxu1 %v19384_v22 }
 0x175   : > { %17001 = vmatpush3.bf16.msra.mxu1 %v19384_v22 }
 0x176   : > { %17003 = vmatprep.subr.bf16.mxu1 %v19502_v10 }
 0x178   : > { %14522 = vmatmul.mubr.f32.vlgmr.msra.gmra.mrb[0].mxu1 %v1104_v31 }
 0x179   : > { %17005 = vmatpush3.bf16.msra.mxu1 %v19502_v10  ;;  %14540 = vmatprep.mubr.f32.mxu1 %v1092_v29 }
 0x17a   : > { %17007 = vmatprep.subr.bf16.mxu1 %v19510_v11 }
 0x17d   : > { %17009 = vmatpush3.bf16.msra.mxu1 %v19510_v11 }
 0x17e   : > { %17011 = vmatprep.subr.bf16.mxu1 %v19521_v12 }
 0x181   : > { %17013 = vmatpush3.bf16.msra.mxu1 %v19521_v12  ;;  %v1718_v12 = vsub.f32 %v19639_v60, %v1717_v5 }
 0x182   : > { %17015 = vmatprep.subr.bf16.mxu1 %v19529_v13 }
 0x183   : > { %v1719_v23 = vand.u32 4294901760, %v1718_v12 }
 0x185   : > { %17017 = vmatpush3.bf16.msra.mxu1 %v19529_v13  ;;  %v1737_v13 = vand.u32 4294901760, %v19653_v6 }
 0x186   : > { %17019 = vmatprep.subr.bf16.mxu1 %v19371_v14 }
 0x187   : > { %v1738_v24 = vsub.f32 %v19653_v6, %v1737_v13 }
 0x188   : > { %14541 = vmatmul.mubr.f32.vlgmr.msra.gmra.mrb[0].mxu1 %v1102_v25 }
 0x189   : > { %17021 = vmatpush3.bf16.msra.mxu1 %v19371_v14  ;;  %14559 = vmatprep.mubr.f32.mxu1 %v1092_v29  ;;  %v1627_v14 = vsel %vm1625_vm1, %v1621_v36, 0  ;;  %v1739_v33 = vand.u32 4294901760, %v1738_v24  ;;  %v2235_v36 = vsel %vm1625_vm1, %v12873_v32, 0 }
 0x18a   : > { %17023 = vmatprep.subr.bf16.mxu1 %v19375_v18  ;;  %v19600_v37 = vand.u32 4294901760, %v1627_v14 }
 0x18d   : > { %17025 = vmatpush3.bf16.msra.mxu1 %v19375_v18  ;;  %v19603_v18 = vsub.f32 %v1627_v14, %v19600_v37  ;;  %v12874_v14 = vld [vmem:[%s23126_s2 + $0x30] sm:$0xff] }
 0x18e   : > { %17027 = vmatprep.subr.bf16.mxu1 %v19377_v19  ;;  %v2238_v39 = vsel %vm1625_vm1, %v12874_v14, 0 }
 0x18f   : > { %v1707_v38 = vand.u32 4294901760, %v19603_v18 }
 0x191   : > { %17029 = vmatpush3.bf16.msra.mxu1 %v19377_v19  ;;  %v1708_v19 = vsub.f32 %v19603_v18, %v1707_v38 }
 0x192   : > { %17031 = vmatprep.subr.bf16.mxu1 %v19384_v22 }
 0x195   : > { %17033 = vmatpush3.bf16.msra.mxu1 %v19384_v22  ;;  %v1709_v22 = vand.u32 4294901760, %v1708_v19  ;;  %v12875_v19 = vld [vmem:[%s23126_s2 + $0x38] sm:$0xff] }
 0x197   : > { %14566 = vmatprep.mubr.f32.mxu0 %v1709_v22  ;;  %v19689_v22 = vand.u32 4294901760, %v2235_v36 }
 0x198   : > { %14560 = vmatmul.mubr.f32.vlgmr.msra.gmra.mrb[0].mxu1 %v1102_v25 }
 0x199   : > { %14636 = vmatprep.mubr.f32.mxu1 %v19616_v41 }
 0x233   : > { %v14466_v42 = vpop.f32.mrb[2].mxu0 }
 0x234   : > { %v1098_v43 = vpop.f32.mrb[3].mxu0  ;;  %v1109_v44 = vadd.f32 1e-05, %v14466_v42  ;;  %v2241_v42 = vsel %vm1625_vm1, %v12875_v19, 0 }
 0x235   : > { %v1099_v45 = vadd.f32 1e-05, %v1098_v43  ;;  %v19698_v43 = vand.u32 4294901760, %v2238_v39 }
 0x26b   : > { %v14561_v46 = vpop.f32.mrb[0].mxu1 }
 0x26c   : > { %v18739_v47 = vadd.f32 %v14561_v46, %v1109_v44  ;;  %v1589_v48 = vpop.f32.mrb[1].mxu1  ;;  %v19702_v44 = vand.u32 4294901760, %v2241_v42  ;;  %v2321_v46 = vsub.f32 %v2235_v36, %v19689_v22 }
 0x26d   : > { %v18741_v49 = vadd.f32 %v1589_v48, %v1099_v45  ;;  %v2311_v45 = vsub.f32 %v19613_v40, %v19616_v41 }
 0x26e   : > { %19145 = vrsqrt.f32 %v18739_v47  ;;  %v2331_v47 = vsub.f32 %v2238_v39, %v19698_v43  ;;  %v19719_v40 = vsub.f32 %v2241_v42, %v19702_v44  ;;  %v12886_v42 = vld [vmem:[%s23130_s6 + $0x70] sm:$0xff] }
 0x26f   : > { %19147 = vrsqrt.f32 %v18741_v49  ;;  %v2312_v48 = vand.u32 4294901760, %v2311_v45  ;;  %v2322_v49 = vand.u32 4294901760, %v2321_v46 }
 0x270   : > { %v2332_v50 = vand.u32 4294901760, %v2331_v47  ;;  %v2342_v51 = vand.u32 4294901760, %v19719_v40 }
 0x278   : > { %v19146_v58 = vpop.eup %19145 }
 0x279   : > { %v19148_v62 = vpop.eup %19147  ;;  %v1602_v63 = vmul.f32 %v19146_v58, %v19554_v16  ;;  %v1728_v16 = vsub.f32 %v19645_v0, %v1727_v8  ;;  %v2843_v58 = vsel %vm1625_vm1, %v12878_v53, 0 }
 0x27a   : > { %v1601_v2 = vmul.f32 %v19148_v62, %v19557_v20  ;;  %v2313_v62 = vsub.f32 %v2311_v45, %v2312_v48 }
 0x27b   : > { %v1611_v3 = vmul.f32 %v12870_v59, %v1602_v63  ;;  %v1729_v29 = vand.u32 4294901760, %v1728_v16 }
 0x27c   : > { %v1610_v4 = vmul.f32 %v12870_v59, %v1601_v2  ;;  %v12879_v59 = vld [vmem:[%s23126_s2 + $0x58] sm:$0xff]  ;;  %v2323_v2 = vsub.f32 %v2321_v46, %v2322_v49 }
 0x27d   : > { %v1620_v7 = vadd.f32 %v12871_v1, %v1611_v3 }
 0x27e   : > { %v1619_v9 = vadd.f32 %v12871_v1, %v1610_v4  ;;  %v2846_v1 = vsel %vm1625_vm1, %v12879_v59, 0 }
 0x27f   : > { %v1642_v10 = vand.u32 4294901760, %v1620_v7  ;;  %v19778_v4 = vand.u32 4294901760, %v2846_v1 }
 0x280   : > { %v1639_v11 = vand.u32 4294901760, %v1619_v9 }
 0x281   : > { %v1754_v15 = vsub.f32 %v1620_v7, %v1642_v10 }
 0x282   : > { %v19663_v17 = vpack.c.bf16 %v1642_v10, %v1639_v11  ;;  %v1747_v20 = vsub.f32 %v1619_v9, %v1639_v11  ;;  %v2946_v9 = vsub.f32 %v2846_v1, %v19778_v4 }
 0x283   : > { %v1755_v21 = vand.u32 4294901760, %v1754_v15 }
 0x284   : > { %17035 = vmatprep.subr.bf16.mxu0 %v19663_v17  ;;  %v1748_v25 = vand.u32 4294901760, %v1747_v20  ;;  %v19669_v28 = vpack.c.bf16 %v1754_v15, %v1747_v20 }
 0x285   : > { %17037 = vmatpush3.bf16.msra.mxu0 %v19663_v17  ;;  %v1756_v30 = vsub.f32 %v1754_v15, %v1755_v21 }
 0x286   : > { %v1749_v27 = vsub.f32 %v1747_v20, %v1748_v25  ;;  %v19672_v31 = vpack.c.bf16 %v1755_v21, %v1748_v25  ;;  %v12880_v25 = vld [vmem:[%s23130_s6 + $0x40] sm:$0xff] }
 0x287   : > { %v1757_v26 = vand.u32 4294901760, %v1756_v30 }
 0x288   : > { %14567 = vmatmul.mubr.f32.vlgmr.msra.gmra.mrb[4].mxu0 %v1719_v23  ;;  %v1750_v34 = vand.u32 4294901760, %v1749_v27  ;;  %v12882_v27 = vld [vmem:[%s23130_s6 + $0x50] sm:$0xff] }
 0x289   : > { %14569 = vmatprep.mubr.f32.mxu0 %v1729_v29 }
 0x28a   : > { %v19677_v35 = vpack.c.bf16 %v1757_v26, %v1750_v34  ;;  %v3472_v26 = vand.u32 4294901760, %v12882_v27  ;;  %v12884_v34 = vld [vmem:[%s23130_s6 + $0x60] sm:$0xff] }
 0x28b   : > { %v3478_v36 = vand.u32 4294901760, %v12884_v34 }
 0x28c   : > { %14570 = vmatmul.mubr.f32.gmra.mrb[6].mxu0 %v1739_v33  ;;  %17039 = vmatprep.subr.bf16.mxu0 %v19677_v35 }
 0x28d   : > { %17063 = vmatprep.subr.bf16.mxu1 %v19677_v35  ;;  %17041 = vmatpush3.bf16.msra.mxu0 %v19677_v35 }
 0x28e   : > { %17065 = vmatpush3.bf16.msra.mxu1 %v19677_v35  ;;  %17043 = vmatprep.subr.bf16.mxu0 %v19669_v28 }
 0x28f   : > { %17067 = vmatprep.subr.bf16.mxu1 %v19669_v28  ;;  %14576 = vmatprep.mubr.f32.mxu0 %v19600_v37 }
 0x290   : > { %14577 = vmatmul.mubr.f32.vlgmr.msra.gmra.mrb[4].mxu0 %v19630_v55 }
 0x291   : > { %14637 = vmatmul.mubr.f32.vlgmr.msra.gmra.mrb[2].mxu1 %v19689_v22  ;;  %17045 = vmatpush3.bf16.msra.mxu0 %v19669_v28 }
 0x292   : > { %17069 = vmatpush3.bf16.msra.mxu1 %v19669_v28  ;;  %17047 = vmatprep.subr.bf16.mxu0 %v19663_v17 }
 0x293   : > { %17071 = vmatprep.subr.bf16.mxu1 %v19663_v17  ;;  %14579 = vmatprep.mubr.f32.mxu0 %v19632_v56 }
 0x294   : > { %14639 = vmatprep.mubr.f32.mxu1 %v19698_v43  ;;  %14580 = vmatmul.mubr.f32.gmra.mrb[6].mxu0 %v19641_v61 }
 0x295   : > { %14640 = vmatmul.mubr.f32.gmra.mrb[4].mxu1 %v19702_v44  ;;  %14586 = vmatprep.mubr.f32.mxu0 %v19603_v18  ;;  %v12876_v18 = vld [vmem:[%s23126_s2 + $0x40] sm:$0xff] }
 0x296   : > { %14646 = vmatprep.mubr.f32.mxu1 %v2311_v45 }
 0x298   : > { %14587 = vmatmul.mubr.f32.vlgmr.msra.gmra.mrb[4].mxu0 %v19639_v60  ;;  %v19767_v60 = vand.u32 4294901760, %v2840_v57 }
 0x299   : > { %17049 = vmatpush3.bf16.msra.mxu0 %v19663_v17  ;;  %14647 = vmatmul.mubr.f32.vlgmr.msra.gmra.mrb[2].mxu1 %v2321_v46 }
 0x29a   : > { %17073 = vmatpush3.bf16.msra.mxu1 %v19663_v17  ;;  %17051 = vmatprep.subr.bf16.mxu0 %v19672_v31  ;;  %v2926_v3 = vsub.f32 %v2840_v57, %v19767_v60 }
 0x29b   : > { %17075 = vmatprep.subr.bf16.mxu1 %v19672_v31  ;;  %14589 = vmatprep.mubr.f32.mxu0 %v19645_v0  ;;  %v19772_v0 = vand.u32 4294901760, %v2843_v58 }
 0x29c   : > { %14649 = vmatprep.mubr.f32.mxu1 %v2331_v47  ;;  %14590 = vmatmul.mubr.f32.gmra.mrb[6].mxu0 %v19653_v6 }
 0x29d   : > { %14650 = vmatmul.mubr.f32.gmra.mrb[4].mxu1 %v19719_v40  ;;  %14596 = vmatprep.mubr.f32.mxu0 %v1707_v38  ;;  %v2837_v38 = vsel %vm1625_vm1, %v12876_v18, 0  ;;  %v2936_v7 = vsub.f32 %v2843_v58, %v19772_v0  ;;  %v3608_v58 = vsub.f32 %v12884_v34, %v3478_v36 }
 0x29e   : > { %14656 = vmatprep.mubr.f32.mxu1 %v2312_v48  ;;  %v19755_v54 = vand.u32 4294901760, %v2837_v38 }
 0x29f   : > { %v2937_v12 = vand.u32 4294901760, %v2936_v7 }
 0x2a0   : > { %14597 = vmatmul.mubr.f32.vlgmr.msra.gmra.mrb[4].mxu0 %v1717_v5  ;;  %v2916_v63 = vsub.f32 %v2837_v38, %v19755_v54  ;;  %v2333_v5 = vsub.f32 %v2331_v47, %v2332_v50 }
 0x2a1   : > { %17053 = vmatpush3.bf16.msra.mxu0 %v19672_v31  ;;  %14657 = vmatmul.mubr.f32.vlgmr.msra.gmra.mrb[2].mxu1 %v2322_v49  ;;  %v2938_v16 = vsub.f32 %v2936_v7, %v2937_v12 }
 0x2a2   : > { %17077 = vmatpush3.bf16.msra.mxu1 %v19672_v31  ;;  %17055 = vmatprep.subr.bf16.mxu0 %v19663_v17  ;;  %v2917_v6 = vand.u32 4294901760, %v2916_v63  ;;  %v2334_v10 = vand.u32 4294901760, %v2333_v5 }
 0x2a3   : > { %17079 = vmatprep.subr.bf16.mxu1 %v19663_v17  ;;  %14599 = vmatprep.mubr.f32.mxu0 %v1727_v8  ;;  %v2927_v8 = vand.u32 4294901760, %v2926_v3  ;;  %v2939_v23 = vand.u32 4294901760, %v2938_v16 }
 0x2a4   : > { %14659 = vmatprep.mubr.f32.mxu1 %v2332_v50  ;;  %14600 = vmatmul.mubr.f32.gmra.mrb[6].mxu0 %v1737_v13  ;;  %v2918_v11 = vsub.f32 %v2916_v63, %v2917_v6  ;;  %v3594_v50 = vsub.f32 %v12882_v27, %v3472_v26 }
 0x2a5   : > { %14660 = vmatmul.mubr.f32.gmra.mrb[4].mxu1 %v2342_v51  ;;  %14606 = vmatprep.mubr.f32.mxu0 %v19600_v37  ;;  %v2928_v15 = vsub.f32 %v2926_v3, %v2927_v8 }
 0x2a6   : > { %14666 = vmatprep.mubr.f32.mxu1 %v19616_v41  ;;  %v3595_v52 = vand.u32 4294901760, %v3594_v50 }
 0x2a7   : > { %v2929_v20 = vand.u32 4294901760, %v2928_v15 }
 0x2a8   : > { %14607 = vmatmul.mubr.f32.vlgmr.msra.gmra.mrb[4].mxu0 %v19630_v55  ;;  %v3596_v57 = vsub.f32 %v3594_v50, %v3595_v52 }
 0x2a9   : > { %17057 = vmatpush3.bf16.msra.mxu0 %v19663_v17  ;;  %14667 = vmatmul.mubr.f32.vlgmr.msra.gmra.mrb[2].mxu1 %v19689_v22 }
 0x2aa   : > { %17081 = vmatpush3.bf16.msra.mxu1 %v19663_v17  ;;  %17059 = vmatprep.subr.bf16.mxu0 %v19663_v17 }
 0x2ab   : > { %14609 = vmatprep.mubr.f32.mxu0 %v19632_v56  ;;  %14669 = vmatprep.mubr.f32.mxu1 %v19698_v43 }
 0x2ac   : > { %14610 = vmatmul.mubr.f32.gmra.mrb[6].mxu0 %v19641_v61 }
 0x2ad   : > { %14670 = vmatmul.mubr.f32.gmra.mrb[4].mxu1 %v19702_v44  ;;  %14616 = vmatprep.mubr.f32.mxu0 %v19600_v37  ;;  %v2314_v37 = vand.u32 4294901760, %v2313_v62  ;;  %v3597_v62 = vand.u32 4294901760, %v3596_v57 }
 0x2ae   : > { %14676 = vmatprep.mubr.f32.mxu1 %v19616_v41  ;;  %v2324_v41 = vand.u32 4294901760, %v2323_v2 }
 0x2b0   : > { %14617 = vmatmul.mubr.f32.vlgmr.msra.gmra.mrb[4].mxu0 %v19630_v55  ;;  %v2343_v55 = vsub.f32 %v19719_v40, %v2342_v51 }
 0x2b1   : > { %17061 = vmatpush3.bf16.msra.mxu0 %v19663_v17  ;;  %14677 = vmatmul.mubr.f32.vlgmr.msra.gmra.mrb[2].mxu1 %v19689_v22 }
 0x2b2   : > { %17083 = vmatprep.subr.bf16.mxu0 %v19663_v17  ;;  %14619 = vmatprep.mubr.f32.mxu0 %v19632_v56  ;;  %v2344_v13 = vand.u32 4294901760, %v2343_v55  ;;  %v2947_v56 = vand.u32 4294901760, %v2946_v9 }
 0x2b3   : > { %14679 = vmatprep.mubr.f32.mxu1 %v19698_v43  ;;  %v12887_v43 = vld [vmem:[%s23130_s6 + $0x78] sm:$0xff] }
 0x2b4   : > { %14620 = vmatmul.mubr.f32.gmra.mrb[6].mxu0 %v19641_v61  ;;  %v2919_v61 = vand.u32 4294901760, %v2918_v11  ;;  %v2948_v21 = vsub.f32 %v2946_v9, %v2947_v56  ;;  %v3487_v45 = vand.u32 4294901760, %v12887_v43 }
 0x2b5   : > { %14680 = vmatmul.mubr.f32.gmra.mrb[4].mxu1 %v19702_v44  ;;  %14626 = vmatprep.mubr.f32.mxu0 %v2314_v37  ;;  %v3484_v44 = vand.u32 4294901760, %v12886_v42 }
 0x2b6   : > { %v2949_v24 = vand.u32 4294901760, %v2948_v21  ;;  %v3629_v37 = vsub.f32 %v12887_v43, %v3487_v45 }
 0x2b7   : > { %v19849_v40 = vpack.c.bf16 %v3487_v45, %v3484_v44 }
 0x2b8   : > { %14627 = vmatmul.mubr.f32.vlgmr.msra.gmra.mrb[8].mxu0 %v2324_v41  ;;  %v3630_v55 = vand.u32 4294901760, %v3629_v37 }
 0x2b9   : > { %17085 = vmatpush3.bf16.msra.mxu0 %v19663_v17  ;;  %14629 = vmatprep.mubr.f32.mxu0 %v2334_v10 }
 0x2ba   : > { %17087 = vmatprep.subr.bf16.mxu0 %v19677_v35  ;;  %v3631_v10 = vsub.f32 %v3629_v37, %v3630_v55 }
 0x2bc   : > { %14630 = vmatmul.mubr.f32.gmra.mrb[10].mxu0 %v2344_v13 }
 0x2bd   : > { %14686 = vmatprep.mubr.f32.mxu0 %v2919_v61 }
 0x2c0   : > { %14687 = vmatmul.mubr.f32.vlgmr.msra.gmra.mrb[12].mxu0 %v2929_v20 }
 0x2c1   : > { %17089 = vmatpush3.bf16.msra.mxu0 %v19677_v35  ;;  %14689 = vmatprep.mubr.f32.mxu0 %v2939_v23  ;;  %v12885_v35 = vld [vmem:[%s23130_s6 + $0x68] sm:$0xff] }
 0x2c2   : > { %17091 = vmatprep.subr.bf16.mxu0 %v19669_v28  ;;  %v3481_v14 = vand.u32 4294901760, %v12885_v35 }
 0x2c4   : > { %14690 = vmatmul.mubr.f32.gmra.mrb[14].mxu0 %v2949_v24  ;;  %v19839_v19 = vpack.c.bf16 %v3481_v14, %v3478_v36  ;;  %v3615_v59 = vsub.f32 %v12885_v35, %v3481_v14 }
 0x2c5   : > { %14696 = vmatprep.mubr.f32.mxu0 %v19755_v54 }
 0x2c6   : > { %v19860_v61 = vpack.c.bf16 %v3615_v59, %v3608_v58 }
 0x2c8   : > { %14697 = vmatmul.mubr.f32.vlgmr.msra.gmra.mrb[12].mxu0 %v19767_v60 }
 0x2c9   : > { %17093 = vmatpush3.bf16.msra.mxu0 %v19669_v28  ;;  %14699 = vmatprep.mubr.f32.mxu0 %v19772_v0  ;;  %v3466_v28 = vand.u32 4294901760, %v12880_v25 }
 0x2ca   : > { %17095 = vmatprep.subr.bf16.mxu0 %v19663_v17 }
 0x2cb   : > { %v3580_v22 = vsub.f32 %v12880_v25, %v3466_v28 }
 0x2cc   : > { %14700 = vmatmul.mubr.f32.gmra.mrb[14].mxu0 %v19778_v4 }
 0x2cd   : > { %14706 = vmatprep.mubr.f32.mxu0 %v2916_v63  ;;  %v3581_v46 = vand.u32 4294901760, %v3580_v22  ;;  %v3609_v63 = vand.u32 4294901760, %v3608_v58 }
 0x2cf   : > { %v3582_v48 = vsub.f32 %v3580_v22, %v3581_v46  ;;  %v3610_v2 = vsub.f32 %v3608_v58, %v3609_v63 }
 0x2d0   : > { %14707 = vmatmul.mubr.f32.vlgmr.msra.gmra.mrb[12].mxu0 %v2926_v3 }
 0x2d1   : > { %17097 = vmatpush3.bf16.msra.mxu0 %v19663_v17  ;;  %14709 = vmatprep.mubr.f32.mxu0 %v2936_v7  ;;  %v3583_v18 = vand.u32 4294901760, %v3582_v48 }
 0x2d2   : > { %17099 = vmatprep.subr.bf16.mxu0 %v19672_v31 }
 0x2d4   : > { %14710 = vmatmul.mubr.f32.gmra.mrb[14].mxu0 %v2946_v9 }
 0x2d5   : > { %14716 = vmatprep.mubr.f32.mxu0 %v2917_v6  ;;  %v3611_v6 = vand.u32 4294901760, %v3610_v2 }
 0x2d8   : > { %14717 = vmatmul.mubr.f32.vlgmr.msra.gmra.mrb[12].mxu0 %v2927_v8 }
 0x2d9   : > { %17101 = vmatpush3.bf16.msra.mxu0 %v19672_v31  ;;  %14719 = vmatprep.mubr.f32.mxu0 %v2937_v12  ;;  %v12883_v31 = vld [vmem:[%s23130_s6 + $0x58] sm:$0xff]  ;;  %v3632_v12 = vand.u32 4294901760, %v3631_v10 }
 0x2da   : > { %17103 = vmatprep.subr.bf16.mxu0 %v19663_v17  ;;  %v3475_v32 = vand.u32 4294901760, %v12883_v31 }
 0x2dc   : > { %14720 = vmatmul.mubr.f32.gmra.mrb[14].mxu0 %v2947_v56  ;;  %v19829_v33 = vpack.c.bf16 %v3475_v32, %v3472_v26  ;;  %v3601_v51 = vsub.f32 %v12883_v31, %v3475_v32 }
 0x2dd   : > { %14726 = vmatprep.mubr.f32.mxu0 %v19755_v54 }
 0x2de   : > { %v3602_v53 = vand.u32 4294901760, %v3601_v51  ;;  %v19858_v56 = vpack.c.bf16 %v3601_v51, %v3594_v50 }
 0x2e0   : > { %14727 = vmatmul.mubr.f32.vlgmr.msra.gmra.mrb[12].mxu0 %v19767_v60  ;;  %v19866_v21 = vpack.c.bf16 %v3602_v53, %v3595_v52 }
 0x2e1   : > { %17105 = vmatpush3.bf16.msra.mxu0 %v19663_v17  ;;  %14729 = vmatprep.mubr.f32.mxu0 %v19772_v0  ;;  %v12881_v17 = vld [vmem:[%s23130_s6 + $0x48] sm:$0xff] }
 0x2e2   : > { %v3469_v29 = vand.u32 4294901760, %v12881_v17 }
 0x2e4   : > { %14730 = vmatmul.mubr.f32.gmra.mrb[14].mxu0 %v19778_v4  ;;  %v19819_v30 = vpack.c.bf16 %v3469_v29, %v3466_v28  ;;  %v3587_v39 = vsub.f32 %v12881_v17, %v3469_v29 }
 0x2e5   : > { %14736 = vmatprep.mubr.f32.mxu0 %v19755_v54 }
 0x2e6   : > { %17107 = vmatprep.subr.bf16.mxu1 %v19819_v30  ;;  %v3588_v47 = vand.u32 4294901760, %v3587_v39  ;;  %v17138_v15 = vpack.c.bf16 %v3587_v39, %v3580_v22 }
 0x2e7   : > { %17109 = vmatpush3.bf16.msra.mxu1 %v19819_v30 }
 0x2e8   : > { %14737 = vmatmul.mubr.f32.vlgmr.msra.gmra.mrb[12].mxu0 %v19767_v60  ;;  %17111 = vmatprep.subr.bf16.mxu1 %v19829_v33  ;;  %v3589_v49 = vsub.f32 %v3587_v39, %v3588_v47  ;;  %v3603_v60 = vsub.f32 %v3601_v51, %v3602_v53  ;;  %v19864_v20 = vpack.c.bf16 %v3588_v47, %v3581_v46 }
 0x2e9   : > { %14739 = vmatprep.mubr.f32.mxu0 %v19772_v0  ;;  %v3616_v0 = vand.u32 4294901760, %v3615_v59 }
 0x2ea   : > { %v3590_v38 = vand.u32 4294901760, %v3589_v49  ;;  %v3604_v1 = vand.u32 4294901760, %v3603_v60 }
 0x2eb   : > { %17113 = vmatpush3.bf16.msra.mxu1 %v19829_v33  ;;  %v3617_v3 = vsub.f32 %v3615_v59, %v3616_v0  ;;  %v19868_v23 = vpack.c.bf16 %v3616_v0, %v3609_v63 }
 0x2ec   : > { %14740 = vmatmul.mubr.f32.gmra.mrb[14].mxu0 %v19778_v4  ;;  %17115 = vmatprep.subr.bf16.mxu1 %v19839_v19  ;;  %v19853_v54 = vpack.c.bf16 %v3590_v38, %v3583_v18  ;;  %v3622_v4 = vsub.f32 %v12886_v42, %v3484_v44  ;;  %v19856_v5 = vpack.c.bf16 %v3604_v1, %v3597_v62 }
 0x2ed   : > { %v3618_v7 = vand.u32 4294901760, %v3617_v3 }
 0x2ee   : > { %v3623_v41 = vand.u32 4294901760, %v3622_v4  ;;  %v19862_v16 = vpack.c.bf16 %v3629_v37, %v3622_v4 }
 0x2ef   : > { %17117 = vmatpush3.bf16.msra.mxu1 %v19839_v19  ;;  %v17130_v8 = vpack.c.bf16 %v3618_v7, %v3611_v6 }
 0x2f0   : > { %17119 = vmatprep.subr.bf16.mxu1 %v19849_v40  ;;  %v3624_v9 = vsub.f32 %v3622_v4, %v3623_v41  ;;  %v19870_v24 = vpack.c.bf16 %v3630_v55, %v3623_v41 }
 0x2f2   : > { %v3625_v11 = vand.u32 4294901760, %v3624_v9  ;;  %v3437_v9 = vld [vmem:[%s23130_s6 + $0x8] sm:$0xff] }
 0x2f3   : > { %17121 = vmatpush3.bf16.msra.mxu1 %v19849_v40  ;;  %v4147_v10 = vand.u32 4294901760, %v3437_v9 }
 0x2f4   : > { %17123 = vmatprep.subr.bf16.mxu1 %v19853_v54  ;;  %v17134_v13 = vpack.c.bf16 %v3632_v12, %v3625_v11  ;;  %v3438_v12 = vld [vmem:[%s23130_s6 + $0x10] sm:$0xff] }
 0x383   : > { %v19872_v25 = vpop.f32.mrb[4].mxu0 }
 0x384   : > { %v14678_v17 = vpop.f32.mrb[2].mxu1  ;;  %v19874_v28 = vpop.f32.mrb[5].mxu0 }
 0x385   : > { %v2809_v29 = vpop.f32.mrb[3].mxu1  ;;  %v4132_v41 = vsel %vm422_vm0, %v19874_v28, 0 }
 0x386   : > { %v19941_v55 = vand.u32 4294901760, %v4132_v41 }
 0x387   : > { %v19876_v27 = vpop.f32.mrb[6].mxu0 }
 0x388   : > { %v14681_v31 = vpop.f32.mrb[4].mxu1  ;;  %v19878_v26 = vpop.f32.mrb[7].mxu0  ;;  %v19954_v11 = vsub.f32 %v4132_v41, %v19941_v55 }
 0x389   : > { %v2821_v32 = vpop.f32.mrb[5].mxu1 }
 0x38b   : > { %v14628_v34 = vpop.f32.mrb[8].mxu0 }
 0x38c   : > { %v18742_v35 = vadd.f32 %v14678_v17, %v14628_v34  ;;  %v2316_v36 = vpop.f32.mrb[9].mxu0 }
 0x38d   : > { %v18743_v14 = vadd.f32 %v2809_v29, %v2316_v36  ;;  %v3443_v29 = vld [vmem:[%s23130_s6 + $0x38] sm:$0xff]  ;;  %v4141_v36 = vsel %vm422_vm0, %v19876_v27, 0 }
 0x38e   : > { %v3457_v22 = vsel %vm422_vm0, %v18742_v35, 0 }
 0x38f   : > { %v19881_v39 = vand.u32 4294901760, %v3457_v22  ;;  %v3454_v42 = vsel %vm422_vm0, %v18743_v14, 0  ;;  %v14631_v43 = vpop.f32.mrb[10].mxu0 }
 0x390   : > { %v19884_v44 = vand.u32 4294901760, %v3454_v42  ;;  %v18744_v45 = vadd.f32 %v14681_v31, %v14631_v43  ;;  %v2336_v46 = vpop.f32.mrb[11].mxu0  ;;  %v4165_v43 = vand.u32 4294901760, %v3443_v29 }
 0x391   : > { %v3549_v47 = vsub.f32 %v3457_v22, %v19881_v39  ;;  %v18745_v48 = vadd.f32 %v2821_v32, %v2336_v46 }
 0x392   : > { %v3539_v49 = vsub.f32 %v3454_v42, %v19884_v44  ;;  %v3463_v50 = vsel %vm422_vm0, %v18744_v45, 0 }
 0x393   : > { %v3550_v51 = vand.u32 4294901760, %v3549_v47  ;;  %v19889_v18 = vand.u32 4294901760, %v3463_v50  ;;  %v3460_v38 = vsel %vm422_vm0, %v18745_v48, 0 }
 0x394   : > { %v19892_v52 = vand.u32 4294901760, %v3460_v38  ;;  %v3540_v53 = vand.u32 4294901760, %v3539_v49 }
 0x395   : > { %v3551_v57 = vsub.f32 %v3549_v47, %v3550_v51  ;;  %v3569_v58 = vsub.f32 %v3463_v50, %v19889_v18 }
 0x396   : > { %v3559_v59 = vsub.f32 %v3460_v38, %v19892_v52  ;;  %v3541_v60 = vsub.f32 %v3539_v49, %v3540_v53 }
 0x397   : > { %v3570_v62 = vand.u32 4294901760, %v3569_v58  ;;  %v3552_v1 = vand.u32 4294901760, %v3551_v57 }
 0x398   : > { %v3542_v63 = vand.u32 4294901760, %v3541_v60  ;;  %v3560_v0 = vand.u32 4294901760, %v3559_v59 }
 0x399   : > { %v3571_v2 = vsub.f32 %v3569_v58, %v3570_v62 }
 0x39a   : > { %14758 = vmatprep.mubr.f32.mxu1 %v3542_v63  ;;  %v3561_v3 = vsub.f32 %v3559_v59, %v3560_v0 }
 0x39b   : > { %14759 = vmatmul.mubr.f32.vlgmr.msra.gmra.mrb[6].mxu1 %v3552_v1  ;;  %v3572_v37 = vand.u32 4294901760, %v3571_v2  ;;  %v20051_v1 = vsub.f32 %v3443_v29, %v4165_v43 }
 0x39c   : > { %17125 = vmatpush3.bf16.msra.mxu1 %v19853_v54  ;;  %v3562_v4 = vand.u32 4294901760, %v3561_v3 }
 0x39d   : > { %17127 = vmatprep.subr.bf16.mxu1 %v19856_v5 }
 0x39e   : > { %14761 = vmatprep.mubr.f32.mxu1 %v3562_v4 }
 0x39f   : > { %14762 = vmatmul.mubr.f32.gmra.mrb[8].mxu1 %v3572_v37 }
 0x3a0   : > { %17129 = vmatpush3.bf16.msra.mxu1 %v19856_v5  ;;  %14780 = vmatprep.mubr.f32.mxu1 %v19884_v44 }
 0x3a1   : > { %17131 = vmatprep.subr.bf16.mxu1 %v17130_v8 }
 0x3a4   : > { %17133 = vmatpush3.bf16.msra.mxu1 %v17130_v8  ;;  %v3436_v8 = vld [vmem:[%s23130_s6] sm:$0xff] }
 0x3a5   : > { %17135 = vmatprep.subr.bf16.mxu1 %v17134_v13 }
 0x3a8   : > { %17137 = vmatpush3.bf16.msra.mxu1 %v17134_v13  ;;  %v3439_v13 = vld [vmem:[%s23130_s6 + $0x18] sm:$0xff] }
 0x3a9   : > { %17139 = vmatprep.subr.bf16.mxu1 %v17138_v15 }
 0x3ab   : > { %14781 = vmatmul.mubr.f32.vlgmr.msra.gmra.mrb[6].mxu1 %v19881_v39 }
 0x3ac   : > { %14783 = vmatprep.mubr.f32.mxu1 %v19892_v52  ;;  %17141 = vmatpush3.bf16.msra.mxu1 %v17138_v15 }
 0x3ad   : > { %17143 = vmatprep.subr.bf16.mxu1 %v19858_v56 }
 0x3af   : > { %14784 = vmatmul.mubr.f32.gmra.mrb[8].mxu1 %v19889_v18 }
 0x3b0   : > { %17145 = vmatpush3.bf16.msra.mxu1 %v19858_v56  ;;  %14802 = vmatprep.mubr.f32.mxu1 %v3539_v49  ;;  %v20024_v49 = vand.u32 4294901760, %v4141_v36 }
 0x3b1   : > { %17147 = vmatprep.subr.bf16.mxu1 %v19860_v61 }
 0x3b2   : > { %v20046_v63 = vsub.f32 %v4141_v36, %v20024_v49 }
 0x3b4   : > { %17149 = vmatpush3.bf16.msra.mxu1 %v19860_v61  ;;  %v4150_v61 = vand.u32 4294901760, %v3438_v12 }
 0x3b5   : > { %17151 = vmatprep.subr.bf16.mxu1 %v19862_v16 }
 0x3b6   : > { %v19990_v31 = vsub.f32 %v3438_v12, %v4150_v61  ;;  %v4308_v12 = vand.u32 4294901760, %v20051_v1 }
 0x3b8   : > { %17153 = vmatpush3.bf16.msra.mxu1 %v19862_v16  ;;  %v4153_v16 = vand.u32 4294901760, %v3439_v13  ;;  %v4273_v27 = vand.u32 4294901760, %v19990_v31 }
 0x3b9   : > { %17155 = vmatprep.subr.bf16.mxu1 %v19819_v30 }
 0x3ba   : > { %v19992_v32 = vsub.f32 %v3439_v13, %v4153_v16 }
 0x3bb   : > { %14803 = vmatmul.mubr.f32.vlgmr.msra.gmra.mrb[6].mxu1 %v3549_v47  ;;  %v19910_v54 = vpop.f32.mrb[12].mxu0 }
 0x3bc   : > { %14805 = vmatprep.mubr.f32.mxu1 %v3559_v59  ;;  %17157 = vmatpush3.bf16.msra.mxu1 %v19819_v30  ;;  %v19913_v5 = vpop.f32.mrb[13].mxu0  ;;  %v4280_v46 = vand.u32 4294901760, %v19992_v32 }
 0x3bd   : > { %17159 = vmatprep.subr.bf16.mxu1 %v19829_v33 }
 0x3be   : > { %v4281_v59 = vsub.f32 %v19992_v32, %v4280_v46 }
 0x3bf   : > { %14806 = vmatmul.mubr.f32.gmra.mrb[8].mxu1 %v3569_v58  ;;  %v19916_v6 = vpop.f32.mrb[14].mxu0  ;;  %v4274_v58 = vsub.f32 %v19990_v31, %v4273_v27 }
 0x3c0   : > { %17161 = vmatpush3.bf16.msra.mxu1 %v19829_v33  ;;  %14824 = vmatprep.mubr.f32.mxu1 %v3540_v53  ;;  %v19919_v7 = vpop.f32.mrb[15].mxu0  ;;  %v4282_v37 = vand.u32 4294901760, %v4281_v59  ;;  %v4828_v59 = vsel %vm422_vm0, %v19916_v6, 0 }
 0x3c1   : > { %17163 = vmatprep.subr.bf16.mxu1 %v19839_v19  ;;  %v4275_v4 = vand.u32 4294901760, %v4274_v58  ;;  %v12892_v58 = vld [vmem:[%s23130_s6 + $0xa0] sm:$0xff] }
 0x3c4   : > { %17165 = vmatpush3.bf16.msra.mxu1 %v19839_v19 }
 0x3c5   : > { %17167 = vmatprep.subr.bf16.mxu1 %v19849_v40 }
 0x3c8   : > { %17169 = vmatpush3.bf16.msra.mxu1 %v19849_v40 }
 0x3c9   : > { %17171 = vmatprep.subr.bf16.mxu1 %v19864_v20 }
 0x3cb   : > { %14825 = vmatmul.mubr.f32.vlgmr.msra.gmra.mrb[6].mxu1 %v3550_v51 }
 0x3cc   : > { %14827 = vmatprep.mubr.f32.mxu1 %v3560_v0  ;;  %17173 = vmatpush3.bf16.msra.mxu1 %v19864_v20  ;;  %v4135_v20 = vsel %vm422_vm0, %v19872_v25, 0  ;;  %v3442_v25 = vld [vmem:[%s23130_s6 + $0x30] sm:$0xff] }
 0x3cd   : > { %17175 = vmatprep.subr.bf16.mxu1 %v19866_v21  ;;  %v19994_v34 = vand.u32 4294901760, %v4135_v20  ;;  %v4162_v42 = vand.u32 4294901760, %v3442_v25 }
 0x3cf   : > { %14828 = vmatmul.mubr.f32.gmra.mrb[8].mxu1 %v3570_v62  ;;  %v20022_v48 = vsub.f32 %v4135_v20, %v19994_v34  ;;  %v20049_v0 = vsub.f32 %v3442_v25, %v4162_v42  ;;  %v4309_v25 = vsub.f32 %v20051_v1, %v4308_v12 }
 0x3d0   : > { %17177 = vmatpush3.bf16.msra.mxu1 %v19866_v21  ;;  %14846 = vmatprep.mubr.f32.mxu1 %v19884_v44  ;;  %v4218_v21 = vand.u32 4294901760, %v19954_v11 }
 0x3d1   : > { %17179 = vmatprep.subr.bf16.mxu1 %v19868_v23 }
 0x3d2   : > { %v4219_v22 = vsub.f32 %v19954_v11, %v4218_v21 }
 0x3d4   : > { %17181 = vmatpush3.bf16.msra.mxu1 %v19868_v23  ;;  %v3440_v23 = vld [vmem:[%s23130_s6 + $0x20] sm:$0xff]  ;;  %v4220_v38 = vand.u32 4294901760, %v4219_v22  ;;  %v4310_v22 = vand.u32 4294901760, %v4309_v25 }
 0x3d5   : > { %17183 = vmatprep.subr.bf16.mxu1 %v19870_v24  ;;  %v4156_v35 = vand.u32 4294901760, %v3440_v23 }
 0x3d7   : > { %v20017_v47 = vsub.f32 %v3440_v23, %v4156_v35 }
 0x3d8   : > { %17185 = vmatpush3.bf16.msra.mxu1 %v19870_v24  ;;  %v3441_v24 = vld [vmem:[%s23130_s6 + $0x28] sm:$0xff] }
 0x3d9   : > { %17187 = vmatprep.subr.bf16.mxu1 %v19819_v30  ;;  %v4287_v60 = vand.u32 4294901760, %v20017_v47 }
 0x3db   : > { %14847 = vmatmul.mubr.f32.vlgmr.msra.gmra.mrb[6].mxu1 %v19881_v39  ;;  %v4288_v41 = vsub.f32 %v20017_v47, %v4287_v60 }
 0x3dc   : > { %14849 = vmatprep.mubr.f32.mxu1 %v19892_v52  ;;  %17189 = vmatpush3.bf16.msra.mxu1 %v19819_v30  ;;  %v4144_v30 = vand.u32 4294901760, %v3436_v8 }
 0x3dd   : > { %17191 = vmatprep.subr.bf16.mxu1 %v19829_v33 }
 0x3de   : > { %v19962_v15 = vsub.f32 %v3436_v8, %v4144_v30  ;;  %v19968_v56 = vpack.c.bf16 %v4147_v10, %v4144_v30  ;;  %v4248_v30 = vand.u32 4294901760, %v20046_v63 }
 0x3df   : > { %14850 = vmatmul.mubr.f32.gmra.mrb[8].mxu1 %v19889_v18 }
 0x3e0   : > { %17193 = vmatpush3.bf16.msra.mxu1 %v19829_v33  ;;  %14868 = vmatprep.mubr.f32.mxu1 %v19884_v44  ;;  %v19964_v33 = vsub.f32 %v3437_v9, %v4147_v10  ;;  %v4259_v17 = vand.u32 4294901760, %v19962_v15  ;;  %v4301_v10 = vand.u32 4294901760, %v20049_v0 }
 0x3e1   : > { %17195 = vmatprep.subr.bf16.mxu1 %v19839_v19 }
 0x3e2   : > { %v4266_v28 = vand.u32 4294901760, %v19964_v33  ;;  %v4260_v44 = vsub.f32 %v19962_v15, %v4259_v17 }
 0x3e4   : > { %17197 = vmatpush3.bf16.msra.mxu1 %v19839_v19  ;;  %v4138_v19 = vsel %vm422_vm0, %v19878_v26, 0  ;;  %v19997_v26 = vpack.c.bf16 %v4153_v16, %v4150_v61  ;;  %v4267_v45 = vsub.f32 %v19964_v33, %v4266_v28  ;;  %v4261_v53 = vand.u32 4294901760, %v4260_v44 }
 0x3e5   : > { %17199 = vmatprep.subr.bf16.mxu1 %v19849_v40  ;;  %v20001_v14 = vand.u32 4294901760, %v4138_v19  ;;  %v17222_v61 = vpack.c.bf16 %v4282_v37, %v4275_v4  ;;  %v4289_v16 = vand.u32 4294901760, %v4288_v41  ;;  %v17238_v44 = vpack.c.bf16 %v19992_v32, %v19990_v31  ;;  %v12889_v31 = vld [vmem:[%s23130_s6 + $0x88] sm:$0xff] }
 0x3e6   : > { %v4268_v57 = vand.u32 4294901760, %v4267_v45  ;;  %v20205_v41 = vand.u32 4294901760, %v4828_v59 }
 0x3e7   : > { %v20030_v51 = vsub.f32 %v4138_v19, %v20001_v14  ;;  %v4302_v19 = vsub.f32 %v20049_v0, %v4301_v10 }
 0x3e8   : > { %17201 = vmatpush3.bf16.msra.mxu1 %v19849_v40  ;;  %v4159_v40 = vand.u32 4294901760, %v3441_v24  ;;  %v17218_v3 = vpack.c.bf16 %v4268_v57, %v4261_v53  ;;  %v17266_v53 = vpack.c.bf16 %v4266_v28, %v4259_v17  ;;  %v12888_v28 = vld [vmem:[%s23130_s6 + $0x80] sm:$0xff] }
 0x3e9   : > { %17203 = vmatprep.subr.bf16.mxu1 %v19968_v56  ;;  %v4238_v2 = vand.u32 4294901760, %v20030_v51  ;;  %v4303_v36 = vand.u32 4294901760, %v4302_v19 }
 0x3ea   : > { %v20027_v50 = vpack.c.bf16 %v4159_v40, %v4156_v35 }
 0x3eb   : > { %14869 = vmatmul.mubr.f32.vlgmr.msra.gmra.mrb[6].mxu1 %v19881_v39  ;;  %v20019_v39 = vsub.f32 %v3441_v24, %v4159_v40  ;;  %v4239_v13 = vsub.f32 %v20030_v51, %v4238_v2  ;;  %v4249_v24 = vsub.f32 %v20046_v63, %v4248_v30 }
 0x3ec   : > { %14871 = vmatprep.mubr.f32.mxu1 %v19892_v52  ;;  %17205 = vmatpush3.bf16.msra.mxu1 %v19968_v56  ;;  %v20033_v52 = vpack.c.bf16 %v4165_v43, %v4162_v42  ;;  %v17230_v42 = vpack.c.bf16 %v4310_v22, %v4303_v36  ;;  %v17234_v43 = vpack.c.bf16 %v19964_v33, %v19962_v15 }
 0x3ed   : > { %17207 = vmatprep.subr.bf16.mxu1 %v19997_v26  ;;  %v4294_v62 = vand.u32 4294901760, %v20019_v39  ;;  %v4240_v29 = vand.u32 4294901760, %v4239_v13  ;;  %v4250_v35 = vand.u32 4294901760, %v4249_v24  ;;  %v17242_v45 = vpack.c.bf16 %v20019_v39, %v20017_v47 }
 0x3ee   : > { %v17278_v33 = vpack.c.bf16 %v4308_v12, %v4301_v10  ;;  %v20230_v24 = vsub.f32 %v4828_v59, %v20205_v41 }
 0x3ef   : > { %14872 = vmatmul.mubr.f32.gmra.mrb[8].mxu1 %v19889_v18  ;;  %v4228_v18 = vand.u32 4294901760, %v20022_v48  ;;  %v4295_v8 = vsub.f32 %v20019_v39, %v4294_v62  ;;  %v17274_v15 = vpack.c.bf16 %v4294_v62, %v4287_v60  ;;  %v4825_v60 = vsel %vm422_vm0, %v19919_v7, 0  ;;  %v12894_v62 = vld [vmem:[%s23130_s6 + $0xb0] sm:$0xff] }
 0x3f0   : > { %17209 = vmatpush3.bf16.msra.mxu1 %v19997_v26  ;;  %14890 = vmatprep.mubr.f32.mxu1 %v4220_v38  ;;  %v17246_v38 = vpack.c.bf16 %v20051_v1, %v20049_v0 }
 0x3f1   : > { %17211 = vmatprep.subr.bf16.mxu1 %v20027_v50  ;;  %v4229_v9 = vsub.f32 %v20022_v48, %v4228_v18  ;;  %v4296_v20 = vand.u32 4294901760, %v4295_v8  ;;  %v4849_v8 = vand.u32 4294901760, %v12894_v62 }
 0x3f3   : > { %v4230_v23 = vand.u32 4294901760, %v4229_v9  ;;  %v17226_v40 = vpack.c.bf16 %v4296_v20, %v4289_v16  ;;  %v20245_v22 = vsub.f32 %v12894_v62, %v4849_v8 }
 0x3f4   : > { %17213 = vmatpush3.bf16.msra.mxu1 %v20027_v50 }
 0x3f5   : > { %17215 = vmatprep.subr.bf16.mxu1 %v20033_v52 }
 0x3f8   : > { %17217 = vmatpush3.bf16.msra.mxu1 %v20033_v52 }
 0x3f9   : > { %17219 = vmatprep.subr.bf16.mxu1 %v17218_v3 }
 0x3fb   : > { %14891 = vmatmul.mubr.f32.vlgmr.msra.gmra.mrb[6].mxu1 %v4230_v23 }
 0x3fc   : > { %14893 = vmatprep.mubr.f32.mxu1 %v4240_v29  ;;  %17221 = vmatpush3.bf16.msra.mxu1 %v17218_v3  ;;  %v20197_v3 = vand.u32 4294901760, %v4825_v60 }
 0x3fd   : > { %17223 = vmatprep.subr.bf16.mxu1 %v17222_v61 }
 0x3fe   : > { %v20226_v16 = vsub.f32 %v4825_v60, %v20197_v3 }
 0x3ff   : > { %14894 = vmatmul.mubr.f32.gmra.mrb[8].mxu1 %v4250_v35 }
 0x400   : > { %17225 = vmatpush3.bf16.msra.mxu1 %v17222_v61  ;;  %14912 = vmatprep.mubr.f32.mxu1 %v19941_v55 }
 0x401   : > { %17227 = vmatprep.subr.bf16.mxu1 %v17226_v40 }
 0x404   : > { %17229 = vmatpush3.bf16.msra.mxu1 %v17226_v40 }
 0x405   : > { %17231 = vmatprep.subr.bf16.mxu1 %v17230_v42 }
 0x408   : > { %17233 = vmatpush3.bf16.msra.mxu1 %v17230_v42 }
 0x409   : > { %17235 = vmatprep.subr.bf16.mxu1 %v17234_v43 }
 0x40b   : > { %14913 = vmatmul.mubr.f32.vlgmr.msra.gmra.mrb[6].mxu1 %v19994_v34 }
 0x40c   : > { %14915 = vmatprep.mubr.f32.mxu1 %v20001_v14  ;;  %17237 = vmatpush3.bf16.msra.mxu1 %v17234_v43  ;;  %v4925_v43 = vand.u32 4294901760, %v20226_v16 }
 0x40d   : > { %17239 = vmatprep.subr.bf16.mxu1 %v17238_v44 }
 0x40f   : > { %14916 = vmatmul.mubr.f32.gmra.mrb[8].mxu1 %v20024_v49 }
 0x410   : > { %17241 = vmatpush3.bf16.msra.mxu1 %v17238_v44  ;;  %14934 = vmatprep.mubr.f32.mxu1 %v19954_v11  ;;  %v17270_v11 = vpack.c.bf16 %v4280_v46, %v4273_v27  ;;  %v12890_v27 = vld [vmem:[%s23130_s6 + $0x90] sm:$0xff]  ;;  %v12891_v46 = vld [vmem:[%s23130_s6 + $0x98] sm:$0xff] }
 0x411   : > { %17243 = vmatprep.subr.bf16.mxu1 %v17242_v45 }
 0x414   : > { %17245 = vmatpush3.bf16.msra.mxu1 %v17242_v45  ;;  %v4935_v45 = vand.u32 4294901760, %v20230_v24 }
 0x415   : > { %17247 = vmatprep.subr.bf16.mxu1 %v17246_v38 }
 0x418   : > { %17249 = vmatpush3.bf16.msra.mxu1 %v17246_v38 }
 0x419   : > { %17251 = vmatprep.subr.bf16.mxu1 %v19968_v56 }
 0x41b   : > { %14935 = vmatmul.mubr.f32.vlgmr.msra.gmra.mrb[6].mxu1 %v20022_v48  ;;  %v4837_v48 = vand.u32 4294901760, %v12890_v27 }
 0x41c   : > { %14937 = vmatprep.mubr.f32.mxu1 %v20030_v51  ;;  %17253 = vmatpush3.bf16.msra.mxu1 %v19968_v56  ;;  %v4840_v51 = vand.u32 4294901760, %v12891_v46 }
 0x41d   : > { %17255 = vmatprep.subr.bf16.mxu1 %v19997_v26  ;;  %v20190_v1 = vsub.f32 %v12890_v27, %v4837_v48 }
 0x41e   : > { %v20192_v6 = vsub.f32 %v12891_v46, %v4840_v51  ;;  %v20195_v7 = vpack.c.bf16 %v4840_v51, %v4837_v48 }
 0x41f   : > { %14938 = vmatmul.mubr.f32.gmra.mrb[8].mxu1 %v20046_v63  ;;  %v4960_v12 = vand.u32 4294901760, %v20190_v1 }
 0x420   : > { %17257 = vmatpush3.bf16.msra.mxu1 %v19997_v26  ;;  %14956 = vmatprep.mubr.f32.mxu1 %v4218_v21  ;;  %v4819_v21 = vsel %vm422_vm0, %v19913_v5, 0  ;;  %v4831_v5 = vand.u32 4294901760, %v12888_v28  ;;  %v4967_v13 = vand.u32 4294901760, %v20192_v6 }
 0x421   : > { %17259 = vmatprep.subr.bf16.mxu1 %v20027_v50  ;;  %v20137_v17 = vand.u32 4294901760, %v4819_v21  ;;  %v4961_v35 = vsub.f32 %v20190_v1, %v4960_v12 }
 0x422   : > { %v4968_v40 = vsub.f32 %v20192_v6, %v4967_v13 }
 0x423   : > { %v20150_v32 = vsub.f32 %v4819_v21, %v20137_v17  ;;  %v4988_v21 = vand.u32 4294901760, %v20245_v22 }
 0x424   : > { %17261 = vmatpush3.bf16.msra.mxu1 %v20027_v50 }
 0x425   : > { %17263 = vmatprep.subr.bf16.mxu1 %v20033_v52  ;;  %v4905_v57 = vand.u32 4294901760, %v20150_v32  ;;  %v4989_v48 = vsub.f32 %v20245_v22, %v4988_v21 }
 0x427   : > { %v4906_v4 = vsub.f32 %v20150_v32, %v4905_v57  ;;  %v4990_v60 = vand.u32 4294901760, %v4989_v48 }
 0x428   : > { %17265 = vmatpush3.bf16.msra.mxu1 %v20033_v52 }
 0x429   : > { %17267 = vmatprep.subr.bf16.mxu1 %v17266_v53  ;;  %v4907_v20 = vand.u32 4294901760, %v4906_v4 }
 0x42b   : > { %14957 = vmatmul.mubr.f32.vlgmr.msra.gmra.mrb[6].mxu1 %v4228_v18  ;;  %v12895_v18 = vld [vmem:[%s23130_s6 + $0xb8] sm:$0xff] }
 0x42c   : > { %14959 = vmatprep.mubr.f32.mxu1 %v4238_v2  ;;  %17269 = vmatpush3.bf16.msra.mxu1 %v17266_v53  ;;  %v4852_v9 = vand.u32 4294901760, %v12895_v18  ;;  %v4962_v53 = vand.u32 4294901760, %v4961_v35 }
 0x42d   : > { %17271 = vmatprep.subr.bf16.mxu1 %v17270_v11 }
 0x42e   : > { %v20233_v19 = vpack.c.bf16 %v4852_v9, %v4849_v8  ;;  %v20247_v42 = vsub.f32 %v12895_v18, %v4852_v9 }
 0x42f   : > { %14960 = vmatmul.mubr.f32.gmra.mrb[8].mxu1 %v4248_v30 }
 0x430   : > { %17273 = vmatpush3.bf16.msra.mxu1 %v17270_v11  ;;  %14978 = vmatprep.mubr.f32.mxu1 %v19941_v55  ;;  %v4969_v11 = vand.u32 4294901760, %v4968_v40  ;;  %v17342_v8 = vpack.c.bf16 %v20247_v42, %v20245_v22 }
 0x431   : > { %17275 = vmatprep.subr.bf16.mxu1 %v17274_v15 }
 0x432   : > { %v17318_v27 = vpack.c.bf16 %v4969_v11, %v4962_v53 }
 0x434   : > { %17277 = vmatpush3.bf16.msra.mxu1 %v17274_v15 }
 0x435   : > { %17279 = vmatprep.subr.bf16.mxu1 %v17278_v33 }
 0x438   : > { %17281 = vmatpush3.bf16.msra.mxu1 %v17278_v33 }
 0x439   : > { %17283 = vmatprep.subr.bf16.mxu1 %v19968_v56 }
 0x43b   : > { %14979 = vmatmul.mubr.f32.vlgmr.msra.gmra.mrb[6].mxu1 %v19994_v34 }
 0x43c   : > { %14981 = vmatprep.mubr.f32.mxu1 %v20001_v14  ;;  %17285 = vmatpush3.bf16.msra.mxu1 %v19968_v56  ;;  %v4834_v56 = vand.u32 4294901760, %v12889_v31 }
 0x43d   : > { %17287 = vmatprep.subr.bf16.mxu1 %v19997_v26 }
 0x43e   : > { %v20163_v47 = vsub.f32 %v12889_v31, %v4834_v56  ;;  %v20166_v39 = vpack.c.bf16 %v4834_v56, %v4831_v5  ;;  %v4926_v31 = vsub.f32 %v20226_v16, %v4925_v43  ;;  %v4936_v56 = vsub.f32 %v20230_v24, %v4935_v45 }
 0x43f   : > { %14982 = vmatmul.mubr.f32.gmra.mrb[8].mxu1 %v20024_v49 }
 0x440   : > { %17289 = vmatpush3.bf16.msra.mxu1 %v19997_v26  ;;  %15000 = vmatprep.mubr.f32.mxu1 %v19941_v55  ;;  %v4822_v26 = vsel %vm422_vm0, %v19910_v54, 0  ;;  %v20161_v55 = vsub.f32 %v12888_v28, %v4831_v5  ;;  %v12893_v54 = vld [vmem:[%s23130_s6 + $0xa8] sm:$0xff]  ;;  %v4953_v0 = vand.u32 4294901760, %v20163_v47  ;;  %v4995_v28 = vand.u32 4294901760, %v20247_v42 }
 0x441   : > { %17291 = vmatprep.subr.bf16.mxu1 %v20027_v50  ;;  %v4846_v2 = vand.u32 4294901760, %v12893_v54 }
 0x442   : > { %v4946_v63 = vand.u32 4294901760, %v20161_v55  ;;  %v4954_v10 = vsub.f32 %v20163_v47, %v4953_v0  ;;  %v4996_v51 = vsub.f32 %v20247_v42, %v4995_v28 }
 0x444   : > { %17293 = vmatpush3.bf16.msra.mxu1 %v20027_v50  ;;  %v20175_v50 = vand.u32 4294901760, %v4822_v26  ;;  %v4947_v30 = vsub.f32 %v20161_v55, %v4946_v63  ;;  %v4955_v29 = vand.u32 4294901760, %v4954_v10  ;;  %v4997_v62 = vand.u32 4294901760, %v4996_v51 }
 0x445   : > { %17295 = vmatprep.subr.bf16.mxu1 %v20033_v52  ;;  %v17362_v9 = vpack.c.bf16 %v4953_v0, %v4946_v63 }
 0x446   : > { %v20203_v37 = vsub.f32 %v4822_v26, %v20175_v50  ;;  %v4948_v25 = vand.u32 4294901760, %v4947_v30  ;;  %v17326_v18 = vpack.c.bf16 %v4997_v62, %v4990_v60  ;;  %v12896_v30 = vld [vmem:[%s23131_s7] ss:$0 sm:$0xff] }
 0x448   : > { %17297 = vmatpush3.bf16.msra.mxu1 %v20033_v52  ;;  %v4843_v52 = vand.u32 4294901760, %v12892_v58  ;;  %v4915_v23 = vand.u32 4294901760, %v20203_v37  ;;  %v17314_v38 = vpack.c.bf16 %v4955_v29, %v4948_v25 }
 0x449   : > { %17299 = vmatprep.subr.bf16.mxu1 %v20166_v39 }
 0x44a   : > { %v20221_v61 = vsub.f32 %v12892_v58, %v4843_v52  ;;  %v4916_v44 = vsub.f32 %v20203_v37, %v4915_v23  ;;  %v4927_v58 = vand.u32 4294901760, %v4926_v31 }
 0x44b   : > { %15001 = vmatmul.mubr.f32.vlgmr.msra.gmra.mrb[6].mxu1 %v19994_v34  ;;  %v20219_v34 = vpack.c.bf16 %v4846_v2, %v4843_v52  ;;  %v17330_v52 = vpack.c.bf16 %v20163_v47, %v20161_v55  ;;  %v17374_v47 = vpack.c.bf16 %v4995_v28, %v4988_v21 }
 0x44c   : > { %15003 = vmatprep.mubr.f32.mxu1 %v20001_v14  ;;  %17301 = vmatpush3.bf16.msra.mxu1 %v20166_v39  ;;  %v20223_v14 = vsub.f32 %v12893_v54, %v4846_v2  ;;  %v4974_v36 = vand.u32 4294901760, %v20221_v61  ;;  %v4917_v5 = vand.u32 4294901760, %v4916_v44  ;;  %v4937_v54 = vand.u32 4294901760, %v4936_v56 }
 0x44d   : > { %17303 = vmatprep.subr.bf16.mxu1 %v20195_v7  ;;  %v17334_v2 = vpack.c.bf16 %v20192_v6, %v20190_v1  ;;  %v5516_v6 = vld [vmem:[%s23127_s3 + $0x8] sm:$0xff] }
 0x44e   : > { %v4975_v15 = vsub.f32 %v20221_v61, %v4974_v36  ;;  %v17338_v4 = vpack.c.bf16 %v20223_v14, %v20221_v61 }
 0x44f   : > { %15004 = vmatmul.mubr.f32.gmra.mrb[8].mxu1 %v20024_v49  ;;  %v4981_v49 = vand.u32 4294901760, %v20223_v14 }
 0x450   : > { %17305 = vmatpush3.bf16.msra.mxu1 %v20195_v7  ;;  %15022 = vmatprep.mubr.f32.mxu1 %v4907_v20  ;;  %v4976_v46 = vand.u32 4294901760, %v4975_v15 }
 0x451   : > { %17307 = vmatprep.subr.bf16.mxu1 %v20219_v34  ;;  %v4982_v33 = vsub.f32 %v20223_v14, %v4981_v49  ;;  %v17370_v55 = vpack.c.bf16 %v4981_v49, %v4974_v36 }
 0x453   : > { %v4983_v26 = vand.u32 4294901760, %v4982_v33 }
 0x454   : > { %17309 = vmatpush3.bf16.msra.mxu1 %v20219_v34 }
 0x455   : > { %17311 = vmatprep.subr.bf16.mxu1 %v20233_v19  ;;  %v17322_v59 = vpack.c.bf16 %v4983_v26, %v4976_v46 }
 0x458   : > { %17313 = vmatpush3.bf16.msra.mxu1 %v20233_v19 }
 0x459   : > { %17315 = vmatprep.subr.bf16.mxu1 %v17314_v38 }
 0x45b   : > { %15023 = vmatmul.mubr.f32.vlgmr.msra.gmra.mrb[6].mxu1 %v4917_v5 }
 0x45c   : > { %15025 = vmatprep.mubr.f32.mxu1 %v4927_v58  ;;  %17317 = vmatpush3.bf16.msra.mxu1 %v17314_v38 }
 0x45d   : > { %17319 = vmatprep.subr.bf16.mxu1 %v17318_v27 }
 0x45f   : > { %15026 = vmatmul.mubr.f32.gmra.mrb[8].mxu1 %v4937_v54 }
 0x460   : > { %17321 = vmatpush3.bf16.msra.mxu1 %v17318_v27  ;;  %15044 = vmatprep.mubr.f32.mxu1 %v20137_v17 }
 0x461   : > { %17323 = vmatprep.subr.bf16.mxu1 %v17322_v59 }
 0x464   : > { %17325 = vmatpush3.bf16.msra.mxu1 %v17322_v59 }
 0x465   : > { %17327 = vmatprep.subr.bf16.mxu1 %v17326_v18 }
 0x468   : > { %17329 = vmatpush3.bf16.msra.mxu1 %v17326_v18 }
 0x469   : > { %17331 = vmatprep.subr.bf16.mxu1 %v17330_v52 }
 0x46b   : > { %15045 = vmatmul.mubr.f32.vlgmr.msra.gmra.mrb[6].mxu1 %v20175_v50 }
 0x46c   : > { %15047 = vmatprep.mubr.f32.mxu1 %v20197_v3  ;;  %17333 = vmatpush3.bf16.msra.mxu1 %v17330_v52 }
 0x46d   : > { %17335 = vmatprep.subr.bf16.mxu1 %v17334_v2 }
 0x46f   : > { %15048 = vmatmul.mubr.f32.gmra.mrb[8].mxu1 %v20205_v41 }
 0x470   : > { %17337 = vmatpush3.bf16.msra.mxu1 %v17334_v2  ;;  %15066 = vmatprep.mubr.f32.mxu1 %v20150_v32  ;;  %v17366_v32 = vpack.c.bf16 %v4967_v13, %v4960_v12 }
 0x471   : > { %17339 = vmatprep.subr.bf16.mxu1 %v17338_v4 }
 0x474   : > { %17341 = vmatpush3.bf16.msra.mxu1 %v17338_v4 }
 0x475   : > { %17343 = vmatprep.subr.bf16.mxu1 %v17342_v8 }
 0x478   : > { %17345 = vmatpush3.bf16.msra.mxu1 %v17342_v8 }
 0x479   : > { %17347 = vmatprep.subr.bf16.mxu1 %v20166_v39 }
 0x47b   : > { %15067 = vmatmul.mubr.f32.vlgmr.msra.gmra.mrb[6].mxu1 %v20203_v37 }
 0x47c   : > { %15069 = vmatprep.mubr.f32.mxu1 %v20226_v16  ;;  %17349 = vmatpush3.bf16.msra.mxu1 %v20166_v39 }
 0x47d   : > { %17351 = vmatprep.subr.bf16.mxu1 %v20195_v7 }
 0x47f   : > { %15070 = vmatmul.mubr.f32.gmra.mrb[8].mxu1 %v20230_v24 }
 0x480   : > { %17353 = vmatpush3.bf16.msra.mxu1 %v20195_v7  ;;  %15088 = vmatprep.mubr.f32.mxu1 %v4905_v57 }
 0x481   : > { %17355 = vmatprep.subr.bf16.mxu1 %v20219_v34 }
 0x484   : > { %17357 = vmatpush3.bf16.msra.mxu1 %v20219_v34 }
 0x485   : > { %17359 = vmatprep.subr.bf16.mxu1 %v20233_v19 }
 0x488   : > { %17361 = vmatpush3.bf16.msra.mxu1 %v20233_v19 }
 0x489   : > { %17363 = vmatprep.subr.bf16.mxu1 %v17362_v9 }
 0x48b   : > { %15089 = vmatmul.mubr.f32.vlgmr.msra.gmra.mrb[6].mxu1 %v4915_v23 }
 0x48c   : > { %15091 = vmatprep.mubr.f32.mxu1 %v4925_v43  ;;  %17365 = vmatpush3.bf16.msra.mxu1 %v17362_v9 }
 0x48d   : > { %17367 = vmatprep.subr.bf16.mxu1 %v17366_v32 }
 0x48f   : > { %15092 = vmatmul.mubr.f32.gmra.mrb[8].mxu1 %v4935_v45 }
 0x490   : > { %17369 = vmatpush3.bf16.msra.mxu1 %v17366_v32  ;;  %15110 = vmatprep.mubr.f32.mxu1 %v20137_v17 }
 0x491   : > { %17371 = vmatprep.subr.bf16.mxu1 %v17370_v55 }
 0x494   : > { %17373 = vmatpush3.bf16.msra.mxu1 %v17370_v55 }
 0x495   : > { %17375 = vmatprep.subr.bf16.mxu1 %v17374_v47 }
 0x498   : > { %17377 = vmatpush3.bf16.msra.mxu1 %v17374_v47 }
 0x499   : > { %17379 = vmatprep.subr.bf16.mxu1 %v20166_v39 }
 0x49b   : > { %15111 = vmatmul.mubr.f32.vlgmr.msra.gmra.mrb[6].mxu1 %v20175_v50 }
 0x49c   : > { %15113 = vmatprep.mubr.f32.mxu1 %v20197_v3  ;;  %17381 = vmatpush3.bf16.msra.mxu1 %v20166_v39  ;;  %v5515_v39 = vld [vmem:[%s23127_s3] sm:$0xff] }
 0x49d   : > { %17383 = vmatprep.subr.bf16.mxu1 %v20195_v7 }
 0x49f   : > { %15114 = vmatmul.mubr.f32.gmra.mrb[8].mxu1 %v20205_v41 }
 0x4a0   : > { %17385 = vmatpush3.bf16.msra.mxu1 %v20195_v7  ;;  %15132 = vmatprep.mubr.f32.mxu1 %v20137_v17  ;;  %v5521_v17 = vsel %vm5519_vm2, %v5515_v39, 0  ;;  %v5517_v7 = vld [vmem:[%s23127_s3 + $0x10] sm:$0xff] }
 0x4a1   : > { %17387 = vmatprep.subr.bf16.mxu1 %v20219_v34  ;;  %v20345_v57 = vand.u32 4294901760, %v5521_v17  ;;  %v5527_v37 = vsel %vm5519_vm2, %v5517_v7, 0 }
 0x4a2   : > { %v20371_v12 = vand.u32 4294901760, %v5527_v37 }
 0x4a3   : > { %v20348_v63 = vsub.f32 %v5521_v17, %v20345_v57 }
 0x4a4   : > { %17389 = vmatpush3.bf16.msra.mxu1 %v20219_v34  ;;  %23247 = vst [vmem:[#allocation8_spill] sm:$0xff] %v20371_v12 }
 0x4a5   : > { %17391 = vmatprep.subr.bf16.mxu1 %v20233_v19  ;;  %23245 = vst [vmem:[#allocation6_spill] sm:$0xff] %v20348_v63  ;;  %v20351_v0 = vand.u32 4294901760, %v20348_v63 }
 0x4a7   : > { %23246 = vst [vmem:[#allocation7_spill] sm:$0xff] %v20351_v0 }
 0x4a8   : > { %17393 = vmatpush3.bf16.msra.mxu1 %v20233_v19  ;;  %v20380_v19 = vsub.f32 %v5527_v37, %v20371_v12  ;;  %v12899_v37 = vld [vmem:[%s23127_s3 + $0x30] sm:$0xff] }
 0x4aa   : > { %23250 = vst [vmem:[#allocation11_spill] sm:$0xff] %v20380_v19  ;;  %v20396_v38 = vand.u32 4294901760, %v20380_v19 }
 0x4ab   : > { %15133 = vmatmul.mubr.f32.vlgmr.msra.gmra.mrb[6].mxu1 %v20175_v50  ;;  %v5604_v50 = vsub.f32 %v20348_v63, %v20351_v0 }
 0x4ac   : > { %15135 = vmatprep.mubr.f32.mxu1 %v20197_v3  ;;  %v5524_v3 = vsel %vm5519_vm2, %v5516_v6, 0  ;;  %23253 = vst [vmem:[#allocation14_spill] sm:$0xff] %v20396_v38  ;;  %v5624_v26 = vsub.f32 %v20380_v19, %v20396_v38 }
 0x4ad   : > { %v5605_v1 = vand.u32 4294901760, %v5604_v50  ;;  %v20369_v10 = vand.u32 4294901760, %v5524_v3 }
 0x4ae   : > { %v20454_v2 = vand.u32 4294901760, %v5624_v26 }
 0x4af   : > { %15136 = vmatmul.mubr.f32.gmra.mrb[8].mxu1 %v20205_v41  ;;  %15146 = vmatprep.mubr.f32.mxu0 %v5605_v1  ;;  %v5518_v41 = vld [vmem:[%s23127_s3 + $0x18] sm:$0xff]  ;;  %v20375_v20 = vsub.f32 %v5524_v3, %v20369_v10  ;;  %v12898_v3 = vld [vmem:[%s23127_s3 + $0x28] sm:$0xff] }
 0x4b0   : > { %15998 = vmatprep.mubr.f32.mxu1 %v5605_v1  ;;  %v5530_v13 = vsel %vm5519_vm2, %v5518_v41, 0  ;;  %v12897_v1 = vld [vmem:[%s23127_s3 + $0x20] sm:$0xff] }
 0x4b1   : > { %23248 = vst [vmem:[#allocation9_spill] sm:$0xff] %v20375_v20  ;;  %v20377_v23 = vand.u32 4294901760, %v5530_v13  ;;  %v20387_v42 = vand.u32 4294901760, %v20375_v20  ;;  %v6152_v7 = vsel %vm5519_vm2, %v12897_v1, 0 }
 0x4b3   : > { %23249 = vst [vmem:[#allocation10_spill] sm:$0xff] %v20377_v23  ;;  %23251 = vst [vmem:[#allocation12_spill] sm:$0xff] %v20387_v42  ;;  %v20390_v43 = vsub.f32 %v5530_v13, %v20377_v23  ;;  %v5614_v5 = vsub.f32 %v20375_v20, %v20387_v42  ;;  %v6155_v13 = vsel %vm5519_vm2, %v12898_v3, 0 }
 0x4b5   : > { %23252 = vst [vmem:[#allocation13_spill] sm:$0xff] %v20390_v43  ;;  %v20419_v56 = vand.u32 4294901760, %v20390_v43  ;;  %v20447_v62 = vand.u32 4294901760, %v5614_v5 }
 0x4b7   : > { %23254 = vst [vmem:[#allocation15_spill] sm:$0xff] %v20419_v56  ;;  %v5634_v52 = vsub.f32 %v20390_v43, %v20419_v56 }
 0x4b9   : > { %v20468_v55 = vand.u32 4294901760, %v5634_v52 }
 0x57e   : > { %v15134_v34 = vpop.f32.mrb[6].mxu1 }
 0x57f   : > { %v5508_v61 = vadd.f32 %v15134_v34, %v12896_v30  ;;  %v5474_v14 = vpop.f32.mrb[7].mxu1  ;;  %v6158_v34 = vsel %vm5519_vm2, %v12899_v37, 0  ;;  %v12904_v37 = vld [vmem:[%s23132_s8 + $0x98] sm:$0xff] }
 0x580   : > { %v5507_v16 = vadd.f32 %v12896_v30, %v5474_v14  ;;  %v20537_v14 = vand.u32 4294901760, %v6155_v13 }
 0x581   : > { %v5512_v24 = vmax.f32 %v5508_v61, 0.0  ;;  %v12900_v61 = vld [vmem:[%s23127_s3 + $0x38] sm:$0xff] }
 0x582   : > { %v5511_v25 = vmax.f32 %v5507_v16, 0.0  ;;  %v15137_v29 = vpop.f32.mrb[8].mxu1  ;;  %23256 = vst [vmem:[#allocation17_spill] sm:$0xff] %v20537_v14 }
 0x583   : > { %v20382_v35 = vand.u32 4294901760, %v5512_v24  ;;  %v5510_v40 = vadd.f32 %v15137_v29, %v12896_v30  ;;  %v5486_v36 = vpop.f32.mrb[9].mxu1  ;;  %v20550_v29 = vsub.f32 %v6155_v13, %v20537_v14 }
 0x584   : > { %v20384_v49 = vand.u32 4294901760, %v5511_v25  ;;  %v5509_v22 = vadd.f32 %v12896_v30, %v5486_v36  ;;  %v20528_v30 = vand.u32 4294901760, %v6152_v7 }
 0x585   : > { %v20393_v44 = vsub.f32 %v5512_v24, %v20382_v35  ;;  %v5514_v45 = vmax.f32 %v5510_v40, 0.0  ;;  %v20544_v24 = vand.u32 4294901760, %v6158_v34  ;;  %23259 = vst [vmem:[#allocation20_spill] sm:$0xff] %v20550_v29 }
 0x586   : > { %v20400_v53 = vpack.c.bf16 %v20382_v35, %v20384_v49  ;;  %v20403_v11 = vsub.f32 %v5511_v25, %v20384_v49  ;;  %v5513_v15 = vmax.f32 %v5509_v22, 0.0  ;;  %23255 = vst [vmem:[#allocation16_spill] sm:$0xff] %v20528_v30  ;;  %v20542_v16 = vsub.f32 %v6152_v7, %v20528_v30 }
 0x587   : > { %v20406_v33 = vand.u32 4294901760, %v20393_v44  ;;  %v20408_v21 = vand.u32 4294901760, %v5514_v45  ;;  %23258 = vst [vmem:[#allocation19_spill] sm:$0xff] %v20544_v24  ;;  %v6161_v25 = vsel %vm5519_vm2, %v12900_v61, 0  ;;  %v20560_v22 = vsub.f32 %v6158_v34, %v20544_v24  ;;  %v12905_v61 = vld [vmem:[%s23132_s8 + $0xa0] sm:$0xff] }
 0x588   : > { %v20411_v28 = vand.u32 4294901760, %v20403_v11  ;;  %v20413_v31 = vand.u32 4294901760, %v5513_v15  ;;  %17395 = vmatprep.subr.bf16.mxu0 %v20400_v53  ;;  %v20482_v17 = vpack.c.bf16 %v20393_v44, %v20403_v11  ;;  %23257 = vst [vmem:[#allocation18_spill] sm:$0xff] %v20542_v16  ;;  %v20552_v40 = vand.u32 4294901760, %v6161_v25 }
 0x589   : > { %v20422_v27 = vsub.f32 %v5514_v45, %v20408_v21  ;;  %17397 = vmatpush3.bf16.msra.mxu0 %v20400_v53  ;;  %v5652_v46 = vsub.f32 %v20393_v44, %v20406_v33  ;;  %v20557_v36 = vand.u32 4294901760, %v20542_v16  ;;  %23262 = vst [vmem:[#allocation23_spill] sm:$0xff] %v20560_v22  ;;  %v20565_v45 = vand.u32 4294901760, %v20550_v29 }
 0x58a   : > { %v20431_v48 = vpack.c.bf16 %v20408_v21, %v20413_v31  ;;  %v20434_v51 = vsub.f32 %v5513_v15, %v20413_v31  ;;  %v5645_v58 = vsub.f32 %v20403_v11, %v20411_v28  ;;  %v20509_v6 = vpack.c.bf16 %v20406_v33, %v20411_v28  ;;  %23260 = vst [vmem:[#allocation21_spill] sm:$0xff] %v20552_v40 }
 0x58b   : > { %v20439_v54 = vand.u32 4294901760, %v20422_v27  ;;  %v20441_v59 = vand.u32 4294901760, %v5652_v46  ;;  %23261 = vst [vmem:[#allocation22_spill] sm:$0xff] %v20557_v36  ;;  %23263 = vst [vmem:[#allocation24_spill] sm:$0xff] %v20565_v45  ;;  %v20568_v15 = vsub.f32 %v6161_v25, %v20552_v40  ;;  %v6235_v5 = vsub.f32 %v20542_v16, %v20557_v36  ;;  %v12906_v25 = vld [vmem:[%s23132_s8 + $0xa8] sm:$0xff] }
 0x58c   : > { %v20444_v60 = vand.u32 4294901760, %v20434_v51  ;;  %17399 = vmatprep.subr.bf16.mxu0 %v20431_v48  ;;  %v20449_v18 = vand.u32 4294901760, %v5645_v58  ;;  %v20490_v50 = vpack.c.bf16 %v20422_v27, %v20434_v51  ;;  %v20575_v46 = vand.u32 4294901760, %v20560_v22 }
 0x58d   : > { %17401 = vmatpush3.bf16.msra.mxu0 %v20431_v48  ;;  %v5666_v4 = vsub.f32 %v20422_v27, %v20439_v54  ;;  %23264 = vst [vmem:[#allocation25_spill] sm:$0xff] %v20568_v15  ;;  %v6245_v26 = vsub.f32 %v20550_v29, %v20565_v45  ;;  %v20582_v58 = vand.u32 4294901760, %v20568_v15  ;;  %v20586_v52 = vand.u32 4294901760, %v6235_v5 }
 0x58e   : > { %v20460_v8 = vpack.c.bf16 %v20441_v59, %v20449_v18  ;;  %v5659_v9 = vsub.f32 %v20434_v51, %v20444_v60  ;;  %v20524_v41 = vpack.c.bf16 %v20439_v54, %v20444_v60  ;;  %23265 = vst [vmem:[#allocation26_spill] sm:$0xff] %v20575_v46  ;;  %v6820_v34 = vand.u32 4294901760, %v12904_v37 }
 0x58f   : > { %v20464_v32 = vand.u32 4294901760, %v5666_v4  ;;  %23266 = vst [vmem:[#allocation27_spill] sm:$0xff] %v20582_v58  ;;  %23267 = vst [vmem:[#allocation28_spill] sm:$0xff] %v20586_v52  ;;  %v6255_v4 = vsub.f32 %v20560_v22, %v20575_v46  ;;  %v6265_v1 = vsub.f32 %v20568_v15, %v20582_v58  ;;  %v6823_v5 = vand.u32 4294901760, %v12905_v61 }
 0x590   : > { %15147 = vmatmul.mubr.f32.vlgmr.msra.gmra.mrb[16].mxu0 %v20447_v62  ;;  %17403 = vmatprep.subr.bf16.mxu0 %v20460_v8  ;;  %v20470_v47 = vand.u32 4294901760, %v5659_v9  ;;  %v20592_v9 = vand.u32 4294901760, %v6245_v26  ;;  %v6826_v26 = vand.u32 4294901760, %v12906_v25 }
 0x591   : > { %17405 = vmatpush3.bf16.msra.mxu0 %v20460_v8  ;;  %15149 = vmatprep.mubr.f32.mxu0 %v20454_v2  ;;  %v20598_v7 = vand.u32 4294901760, %v6255_v4  ;;  %v20602_v3 = vand.u32 4294901760, %v6265_v1  ;;  %v12907_v4 = vld [vmem:[%s23132_s8 + $0xb0] sm:$0xff]  ;;  %v12908_v1 = vld [vmem:[%s23132_s8 + $0xb8] sm:$0xff] }
 0x592   : > { %v20476_v39 = vpack.c.bf16 %v20464_v32, %v20470_v47  ;;  %23268 = vst [vmem:[#allocation29_spill] sm:$0xff] %v20592_v9 }
 0x593   : > { %23269 = vst [vmem:[#allocation30_spill] sm:$0xff] %v20598_v7  ;;  %23270 = vst [vmem:[#allocation31_spill] sm:$0xff] %v20602_v3 }
 0x594   : > { %15150 = vmatmul.mubr.f32.gmra.mrb[18].mxu0 %v20468_v55  ;;  %17407 = vmatprep.subr.bf16.mxu0 %v20476_v39 }
 0x595   : > { %17409 = vmatpush3.bf16.msra.mxu0 %v20476_v39  ;;  %15160 = vmatprep.mubr.f32.mxu0 %v20345_v57 }
 0x596   : > { %17411 = vmatprep.subr.bf16.mxu0 %v20482_v17 }
 0x598   : > { %15161 = vmatmul.mubr.f32.vlgmr.msra.gmra.mrb[16].mxu0 %v20369_v10 }
 0x599   : > { %17413 = vmatpush3.bf16.msra.mxu0 %v20482_v17  ;;  %15163 = vmatprep.mubr.f32.mxu0 %v20371_v12 }
 0x59a   : > { %17415 = vmatprep.subr.bf16.mxu0 %v20490_v50 }
 0x59c   : > { %15164 = vmatmul.mubr.f32.gmra.mrb[18].mxu0 %v20377_v23 }
 0x59d   : > { %17417 = vmatpush3.bf16.msra.mxu0 %v20490_v50  ;;  %15174 = vmatprep.mubr.f32.mxu0 %v20348_v63 }
 0x59e   : > { %17419 = vmatprep.subr.bf16.mxu0 %v20400_v53 }
 0x5a0   : > { %15175 = vmatmul.mubr.f32.vlgmr.msra.gmra.mrb[16].mxu0 %v20375_v20 }
 0x5a1   : > { %17421 = vmatpush3.bf16.msra.mxu0 %v20400_v53  ;;  %15177 = vmatprep.mubr.f32.mxu0 %v20380_v19 }
 0x5a2   : > { %17423 = vmatprep.subr.bf16.mxu0 %v20431_v48 }
 0x5a4   : > { %15178 = vmatmul.mubr.f32.gmra.mrb[18].mxu0 %v20390_v43 }
 0x5a5   : > { %17425 = vmatpush3.bf16.msra.mxu0 %v20431_v48  ;;  %15188 = vmatprep.mubr.f32.mxu0 %v20351_v0 }
 0x5a6   : > { %17427 = vmatprep.subr.bf16.mxu0 %v20509_v6 }
 0x5a8   : > { %15189 = vmatmul.mubr.f32.vlgmr.msra.gmra.mrb[16].mxu0 %v20387_v42 }
 0x5a9   : > { %17429 = vmatpush3.bf16.msra.mxu0 %v20509_v6  ;;  %15191 = vmatprep.mubr.f32.mxu0 %v20396_v38 }
 0x5aa   : > { %17431 = vmatprep.subr.bf16.mxu0 %v20524_v41 }
 0x5ac   : > { %15192 = vmatmul.mubr.f32.gmra.mrb[18].mxu0 %v20419_v56  ;;  %v20733_v56 = vsub.f32 %v12904_v37, %v6820_v34 }
 0x5ad   : > { %17433 = vmatpush3.bf16.msra.mxu0 %v20524_v41  ;;  %15202 = vmatprep.mubr.f32.mxu0 %v20345_v57 }
 0x5ae   : > { %17435 = vmatprep.subr.bf16.mxu0 %v20400_v53 }
 0x5b0   : > { %15203 = vmatmul.mubr.f32.vlgmr.msra.gmra.mrb[16].mxu0 %v20369_v10 }
 0x5b1   : > { %17437 = vmatpush3.bf16.msra.mxu0 %v20400_v53  ;;  %15205 = vmatprep.mubr.f32.mxu0 %v20371_v12 }
 0x5b2   : > { %17439 = vmatprep.subr.bf16.mxu0 %v20431_v48 }
 0x5b4   : > { %15206 = vmatmul.mubr.f32.gmra.mrb[18].mxu0 %v20377_v23 }
 0x5b5   : > { %17441 = vmatpush3.bf16.msra.mxu0 %v20431_v48  ;;  %15216 = vmatprep.mubr.f32.mxu0 %v20345_v57 }
 0x5b6   : > { %17443 = vmatprep.subr.bf16.mxu0 %v20400_v53 }
 0x5b8   : > { %15217 = vmatmul.mubr.f32.vlgmr.msra.gmra.mrb[16].mxu0 %v20369_v10 }
 0x5b9   : > { %17445 = vmatpush3.bf16.msra.mxu0 %v20400_v53  ;;  %15219 = vmatprep.mubr.f32.mxu0 %v20371_v12 }
 0x5ba   : > { %17447 = vmatprep.subr.bf16.mxu0 %v20431_v48 }
 0x5bc   : > { %15220 = vmatmul.mubr.f32.gmra.mrb[18].mxu0 %v20377_v23 }
 0x5bd   : > { %17449 = vmatpush3.bf16.msra.mxu0 %v20431_v48  ;;  %15230 = vmatprep.mubr.f32.mxu0 %v20586_v52 }
 0x5be   : > { %17451 = vmatprep.subr.bf16.mxu0 %v20460_v8 }
 0x5c0   : > { %15231 = vmatmul.mubr.f32.vlgmr.msra.gmra.mrb[20].mxu0 %v20592_v9 }
 0x5c1   : > { %17453 = vmatpush3.bf16.msra.mxu0 %v20460_v8  ;;  %15233 = vmatprep.mubr.f32.mxu0 %v20598_v7  ;;  %v12901_v8 = vld [vmem:[%s23132_s8 + $0x80] sm:$0xff] }
 0x5c2   : > { %17455 = vmatprep.subr.bf16.mxu0 %v20476_v39 }
 0x5c4   : > { %15234 = vmatmul.mubr.f32.gmra.mrb[22].mxu0 %v20602_v3 }
 0x5c5   : > { %17457 = vmatpush3.bf16.msra.mxu0 %v20476_v39  ;;  %15244 = vmatprep.mubr.f32.mxu0 %v20528_v30  ;;  %v12902_v39 = vld [vmem:[%s23132_s8 + $0x88] sm:$0xff] }
 0x5c6   : > { %17459 = vmatprep.subr.bf16.mxu0 %v20482_v17 }
 0x5c8   : > { %15245 = vmatmul.mubr.f32.vlgmr.msra.gmra.mrb[20].mxu0 %v20537_v14 }
 0x5c9   : > { %17461 = vmatpush3.bf16.msra.mxu0 %v20482_v17  ;;  %15247 = vmatprep.mubr.f32.mxu0 %v20544_v24  ;;  %v6811_v17 = vand.u32 4294901760, %v12901_v8 }
 0x5ca   : > { %17463 = vmatprep.subr.bf16.mxu0 %v20490_v50 }
 0x5cc   : > { %15248 = vmatmul.mubr.f32.gmra.mrb[22].mxu0 %v20552_v40 }
 0x5cd   : > { %17465 = vmatpush3.bf16.msra.mxu0 %v20490_v50  ;;  %15258 = vmatprep.mubr.f32.mxu0 %v20542_v16  ;;  %v6814_v50 = vand.u32 4294901760, %v12902_v39  ;;  %v12911_v16 = vld [vmem:[%s23132_s8 + $0xd0] sm:$0xff] }
 0x5ce   : > { %17467 = vmatprep.subr.bf16.mxu0 %v20400_v53  ;;  %v6841_v7 = vand.u32 4294901760, %v12911_v16 }
 0x5d0   : > { %15259 = vmatmul.mubr.f32.vlgmr.msra.gmra.mrb[20].mxu0 %v20550_v29 }
 0x5d1   : > { %17469 = vmatpush3.bf16.msra.mxu0 %v20400_v53  ;;  %15261 = vmatprep.mubr.f32.mxu0 %v20560_v22 }
 0x5d2   : > { %17471 = vmatprep.subr.bf16.mxu0 %v20431_v48 }
 0x5d4   : > { %15262 = vmatmul.mubr.f32.gmra.mrb[22].mxu0 %v20568_v15 }
 0x5d5   : > { %17473 = vmatpush3.bf16.msra.mxu0 %v20431_v48  ;;  %15272 = vmatprep.mubr.f32.mxu0 %v20557_v36  ;;  %v12910_v36 = vld [vmem:[%s23132_s8 + $0xc8] sm:$0xff] }
 0x5d6   : > { %17475 = vmatprep.subr.bf16.mxu0 %v20509_v6  ;;  %v6838_v29 = vand.u32 4294901760, %v12910_v36 }
 0x5d8   : > { %15273 = vmatmul.mubr.f32.vlgmr.msra.gmra.mrb[20].mxu0 %v20565_v45  ;;  %v12909_v45 = vld [vmem:[%s23132_s8 + $0xc0] sm:$0xff] }
 0x5d9   : > { %17477 = vmatpush3.bf16.msra.mxu0 %v20509_v6  ;;  %15275 = vmatprep.mubr.f32.mxu0 %v20575_v46  ;;  %v12903_v6 = vld [vmem:[%s23132_s8 + $0x90] sm:$0xff]  ;;  %v6832_v46 = vand.u32 4294901760, %v12908_v1  ;;  %v6835_v22 = vand.u32 4294901760, %v12909_v45 }
 0x5da   : > { %17479 = vmatprep.subr.bf16.mxu0 %v20524_v41  ;;  %v6817_v13 = vand.u32 4294901760, %v12903_v6 }
 0x5db   : > { %v20711_v3 = vpack.c.bf16 %v6838_v29, %v6835_v22  ;;  %v20766_v12 = vsub.f32 %v12908_v1, %v6832_v46  ;;  %v20782_v1 = vsub.f32 %v12910_v36, %v6838_v29 }
 0x5dc   : > { %15276 = vmatmul.mubr.f32.gmra.mrb[22].mxu0 %v20582_v58  ;;  %v6829_v58 = vand.u32 4294901760, %v12907_v4 }
 0x5dd   : > { %17481 = vmatpush3.bf16.msra.mxu0 %v20524_v41  ;;  %15286 = vmatprep.mubr.f32.mxu0 %v20528_v30  ;;  %v20651_v41 = vpack.c.bf16 %v6814_v50, %v6811_v17  ;;  %v6997_v36 = vand.u32 4294901760, %v20782_v1 }
 0x5de   : > { %17483 = vmatprep.subr.bf16.mxu0 %v20400_v53  ;;  %v20687_v15 = vpack.c.bf16 %v6832_v46, %v6829_v58  ;;  %v20757_v0 = vsub.f32 %v12907_v4, %v6829_v58  ;;  %v23175_v4 = vand.u32 4294901760, %v20766_v12 }
 0x5e0   : > { %15287 = vmatmul.mubr.f32.vlgmr.msra.gmra.mrb[20].mxu0 %v20537_v14  ;;  %v6984_v29 = vsub.f32 %v20766_v12, %v23175_v4 }
 0x5e1   : > { %17485 = vmatpush3.bf16.msra.mxu0 %v20400_v53  ;;  %15289 = vmatprep.mubr.f32.mxu0 %v20544_v24  ;;  %v20663_v53 = vpack.c.bf16 %v6820_v34, %v6817_v13  ;;  %v20753_v34 = vsub.f32 %v12905_v61, %v6823_v5 }
 0x5e2   : > { %17487 = vmatprep.subr.bf16.mxu0 %v20431_v48  ;;  %v6985_v4 = vand.u32 4294901760, %v6984_v29 }
 0x5e4   : > { %15290 = vmatmul.mubr.f32.gmra.mrb[22].mxu0 %v20552_v40 }
 0x5e5   : > { %17489 = vmatpush3.bf16.msra.mxu0 %v20431_v48  ;;  %15300 = vmatprep.mubr.f32.mxu0 %v20528_v30  ;;  %v20675_v48 = vpack.c.bf16 %v6826_v26, %v6823_v5  ;;  %v20708_v30 = vsub.f32 %v12902_v39, %v6814_v50  ;;  %v20724_v39 = vld [vmem:[%s23132_s8 + $0xf0] sm:$0xff]  ;;  %v20731_v50 = vsub.f32 %v12903_v6, %v6817_v13 }
 0x5e6   : > { %17491 = vmatprep.subr.bf16.mxu0 %v20651_v41 }
 0x5e7   : > { %v23273_v6 = vand.u32 4294901760, %v20708_v30  ;;  %v23174_v13 = vand.u32 4294901760, %v20731_v50 }
 0x5e8   : > { %15301 = vmatmul.mubr.f32.vlgmr.msra.gmra.mrb[20].mxu0 %v20537_v14  ;;  %v20706_v14 = vsub.f32 %v12901_v8, %v6811_v17  ;;  %v20729_v17 = vld [vmem:[%s23132_s8 + $0xf8] sm:$0xff] }
 0x5e9   : > { %17493 = vmatpush3.bf16.msra.mxu0 %v20651_v41  ;;  %15303 = vmatprep.mubr.f32.mxu0 %v20544_v24  ;;  %v12912_v24 = vld [vmem:[%s23132_s8 + $0xd8] sm:$0xff]  ;;  %v6856_v43 = vand.u32 4294901760, %v20729_v17  ;;  %v6942_v37 = vsub.f32 %v20708_v30, %v23273_v6  ;;  %v6949_v61 = vsub.f32 %v20731_v50, %v23174_v13 }
 0x5ea   : > { %17495 = vmatprep.subr.bf16.mxu0 %v20663_v53  ;;  %v6844_v9 = vand.u32 4294901760, %v12912_v24  ;;  %v23272_v19 = vand.u32 4294901760, %v20706_v14 }
 0x5eb   : > { %v6943_v23 = vand.u32 4294901760, %v6942_v37  ;;  %v6950_v37 = vand.u32 4294901760, %v6949_v61 }
 0x5ec   : > { %15304 = vmatmul.mubr.f32.gmra.mrb[22].mxu0 %v20552_v40  ;;  %v20704_v40 = vld [vmem:[%s23132_s8 + $0xe8] sm:$0xff]  ;;  %v20719_v8 = vpack.c.bf16 %v6844_v9, %v6841_v7  ;;  %v6935_v20 = vsub.f32 %v20706_v14, %v23272_v19  ;;  %v23274_v19 = vand.u32 4294901760, %v20724_v39  ;;  %v20802_v61 = vsub.f32 %v12912_v24, %v6844_v9 }
 0x5ed   : > { %17497 = vmatpush3.bf16.msra.mxu0 %v20663_v53  ;;  %15338 = vmatprep.mubr.f32.mxu0 %v20449_v18  ;;  %v20699_v18 = vld [vmem:[%s23132_s8 + $0xe0] sm:$0xff]  ;;  %v23271_v42 = vand.u32 4294901760, %v20704_v40 }
 0x5ee   : > { %17499 = vmatprep.subr.bf16.mxu0 %v20675_v48  ;;  %v23164_v52 = vand.u32 4294901760, %v20699_v18  ;;  %v20764_v63 = vpack.c.bf16 %v6856_v43, %v23274_v19  ;;  %v6936_v6 = vand.u32 4294901760, %v6935_v20  ;;  %v20778_v20 = vsub.f32 %v12909_v45, %v6835_v22 }
 0x5ef   : > { %v7011_v9 = vand.u32 4294901760, %v20802_v61 }
 0x5f0   : > { %v20739_v38 = vpack.c.bf16 %v23271_v42, %v23164_v52  ;;  %v23170_v42 = vand.u32 4294901760, %v20733_v56  ;;  %v20755_v52 = vsub.f32 %v12906_v25, %v6826_v26  ;;  %v23172_v25 = vand.u32 4294901760, %v20753_v34 }
 0x5f1   : > { %17501 = vmatpush3.bf16.msra.mxu0 %v20675_v48  ;;  %v23173_v26 = vand.u32 4294901760, %v20757_v0  ;;  %v17522_v46 = vpack.c.bf16 %v6943_v23, %v6936_v6  ;;  %v6990_v45 = vand.u32 4294901760, %v20778_v20  ;;  %v20800_v6 = vsub.f32 %v12911_v16, %v6841_v7 }
 0x5f2   : > { %17503 = vmatprep.subr.bf16.mxu0 %v20687_v15  ;;  %v6956_v58 = vsub.f32 %v20733_v56, %v23170_v42  ;;  %v23171_v5 = vand.u32 4294901760, %v20755_v52  ;;  %v6963_v42 = vsub.f32 %v20753_v34, %v23172_v25  ;;  %v6998_v16 = vsub.f32 %v20782_v1, %v6997_v36 }
 0x5f3   : > { %v6977_v23 = vsub.f32 %v20757_v0, %v23173_v26  ;;  %v6991_v13 = vsub.f32 %v20778_v20, %v6990_v45  ;;  %v7004_v24 = vand.u32 4294901760, %v20800_v6 }
 0x5f4   : > { %v6957_v19 = vand.u32 4294901760, %v6956_v58  ;;  %v6970_v22 = vsub.f32 %v20755_v52, %v23171_v5  ;;  %v6964_v5 = vand.u32 4294901760, %v6963_v42 }
 0x5f5   : > { %17505 = vmatpush3.bf16.msra.mxu0 %v20687_v15  ;;  %v6978_v26 = vand.u32 4294901760, %v6977_v23 }
 0x5f6   : > { %17507 = vmatprep.subr.bf16.mxu0 %v20711_v3  ;;  %v17526_v58 = vpack.c.bf16 %v6957_v19, %v6950_v37  ;;  %v6971_v25 = vand.u32 4294901760, %v6970_v22  ;;  %v23276_v37 = vand.u32 4294901760, %v20704_v40  ;;  %v6999_v22 = vand.u32 4294901760, %v6998_v16 }
 0x5f7   : > { %v17534_v19 = vpack.c.bf16 %v6985_v4, %v6978_v26  ;;  %v20842_v26 = vsub.f32 %v20729_v17, %v6856_v43 }
 0x5f8   : > { %v17530_v7 = vpack.c.bf16 %v6971_v25, %v6964_v5  ;;  %v7005_v25 = vsub.f32 %v20800_v6, %v7004_v24 }
 0x5f9   : > { %17509 = vmatpush3.bf16.msra.mxu0 %v20711_v3 }
 0x5fa   : > { %17511 = vmatprep.subr.bf16.mxu0 %v20719_v8  ;;  %v7006_v23 = vand.u32 4294901760, %v7005_v25 }
 0x5fd   : > { %17513 = vmatpush3.bf16.msra.mxu0 %v20719_v8 }
 0x5fe   : > { %17515 = vmatprep.subr.bf16.mxu0 %v20739_v38 }
 0x601   : > { %17517 = vmatpush3.bf16.msra.mxu0 %v20739_v38 }
 0x602   : > { %17519 = vmatprep.subr.bf16.mxu0 %v20764_v63 }
 0x605   : > { %17521 = vmatpush3.bf16.msra.mxu0 %v20764_v63 }
 0x606   : > { %17523 = vmatprep.subr.bf16.mxu0 %v17522_v46 }
 0x608   : > { %15339 = vmatmul.mubr.f32.vlgmr.msra.gmra.mrb[24].mxu0 %v20441_v59  ;;  %v23275_v59 = vand.u32 4294901760, %v20699_v18 }
 0x609   : > { %15341 = vmatprep.mubr.f32.mxu0 %v20470_v47  ;;  %17525 = vmatpush3.bf16.msra.mxu0 %v17522_v46  ;;  %v20822_v47 = vsub.f32 %v20704_v40, %v23276_v37  ;;  %v6992_v46 = vand.u32 4294901760, %v6991_v13 }
 0x60a   : > { %17527 = vmatprep.subr.bf16.mxu0 %v17526_v58  ;;  %v20817_v42 = vsub.f32 %v20699_v18, %v23275_v59  ;;  %v7012_v18 = vsub.f32 %v20802_v61, %v7011_v9  ;;  %v7039_v59 = vand.u32 4294901760, %v20842_v26 }
 0x60b   : > { %v7025_v5 = vand.u32 4294901760, %v20822_v47  ;;  %v17538_v4 = vpack.c.bf16 %v6999_v22, %v6992_v46 }
 0x60c   : > { %15342 = vmatmul.mubr.f32.gmra.mrb[26].mxu0 %v20464_v32  ;;  %v7018_v40 = vand.u32 4294901760, %v20817_v42  ;;  %v23277_v32 = vand.u32 4294901760, %v20724_v39  ;;  %v7013_v29 = vand.u32 4294901760, %v7012_v18  ;;  %v7040_v46 = vsub.f32 %v20842_v26, %v7039_v59 }
 0x60d   : > { %17529 = vmatpush3.bf16.msra.mxu0 %v17526_v58  ;;  %15376 = vmatprep.mubr.f32.mxu0 %v20384_v49  ;;  %v7026_v16 = vsub.f32 %v20822_v47, %v7025_v5 }
 0x60e   : > { %17531 = vmatprep.subr.bf16.mxu0 %v17530_v7  ;;  %v20837_v13 = vsub.f32 %v20724_v39, %v23277_v32  ;;  %v7019_v58 = vsub.f32 %v20817_v42, %v7018_v40  ;;  %v17542_v43 = vpack.c.bf16 %v7013_v29, %v7006_v23  ;;  %v7041_v18 = vand.u32 4294901760, %v7040_v46 }
 0x60f   : > { %v17554_v32 = vpack.c.bf16 %v20708_v30, %v20706_v14  ;;  %v17558_v23 = vpack.c.bf16 %v20733_v56, %v20731_v50  ;;  %v17566_v29 = vpack.c.bf16 %v20766_v12, %v20757_v0 }
 0x610   : > { %v7032_v39 = vand.u32 4294901760, %v20837_v13  ;;  %v7020_v17 = vand.u32 4294901760, %v7019_v58  ;;  %v17570_v58 = vpack.c.bf16 %v20782_v1, %v20778_v20 }
 0x611   : > { %17533 = vmatpush3.bf16.msra.mxu0 %v17530_v7  ;;  %v7027_v7 = vand.u32 4294901760, %v7026_v16  ;;  %v17574_v16 = vpack.c.bf16 %v20802_v61, %v20800_v6 }
 0x612   : > { %17535 = vmatprep.subr.bf16.mxu0 %v17534_v19  ;;  %v7033_v37 = vsub.f32 %v20837_v13, %v7032_v39 }
 0x613   : > { %v17546_v22 = vpack.c.bf16 %v7027_v7, %v7020_v17  ;;  %v23281_v17 = vand.u32 4294901760, %v20733_v56  ;;  %v23284_v56 = vand.u32 4294901760, %v20757_v0  ;;  %v17642_v0 = vpack.c.bf16 %v7025_v5, %v7018_v40 }
 0x614   : > { %v7034_v25 = vand.u32 4294901760, %v7033_v37  ;;  %v23282_v37 = vand.u32 4294901760, %v20753_v34 }
 0x615   : > { %17537 = vmatpush3.bf16.msra.mxu0 %v17534_v19 }
 0x616   : > { %17539 = vmatprep.subr.bf16.mxu0 %v17538_v4  ;;  %v17550_v19 = vpack.c.bf16 %v7041_v18, %v7034_v25 }
 0x619   : > { %17541 = vmatpush3.bf16.msra.mxu0 %v17538_v4  ;;  %v17562_v4 = vpack.c.bf16 %v20755_v52, %v20753_v34 }
 0x61a   : > { %17543 = vmatprep.subr.bf16.mxu0 %v17542_v43 }
 0x61d   : > { %17545 = vmatpush3.bf16.msra.mxu0 %v17542_v43  ;;  %v17578_v43 = vpack.c.bf16 %v20822_v47, %v20817_v42  ;;  %v6782_v42 = vld [vmem:[%s23132_s8 + $0x28] sm:$0xff] }
 0x61e   : > { %17547 = vmatprep.subr.bf16.mxu0 %v17546_v22  ;;  %v7596_v40 = vand.u32 4294901760, %v6782_v42 }
 0x621   : > { %17549 = vmatpush3.bf16.msra.mxu0 %v17546_v22  ;;  %v21007_v22 = vld [vmem:[%s23132_s8 + $0x40] sm:$0xff] }
 0x622   : > { %17551 = vmatprep.subr.bf16.mxu0 %v17550_v19  ;;  %v7605_v25 = vand.u32 4294901760, %v21007_v22 }
 0x625   : > { %17553 = vmatpush3.bf16.msra.mxu0 %v17550_v19  ;;  %v21024_v19 = vld [vmem:[%s23132_s8 + $0x50] sm:$0xff] }
 0x626   : > { %17555 = vmatprep.subr.bf16.mxu0 %v17554_v32 }
 0x628   : > { %15377 = vmatmul.mubr.f32.vlgmr.msra.gmra.mrb[24].mxu0 %v20382_v35 }
 0x629   : > { %15379 = vmatprep.mubr.f32.mxu0 %v20413_v31  ;;  %17557 = vmatpush3.bf16.msra.mxu0 %v17554_v32  ;;  %v21035_v32 = vld [vmem:[%s23132_s8 + $0x60] sm:$0xff] }
 0x62a   : > { %17559 = vmatprep.subr.bf16.mxu0 %v17558_v23 }
 0x62c   : > { %15380 = vmatmul.mubr.f32.gmra.mrb[26].mxu0 %v20408_v21 }
 0x62d   : > { %17561 = vmatpush3.bf16.msra.mxu0 %v17558_v23  ;;  %15414 = vmatprep.mubr.f32.mxu0 %v20403_v11  ;;  %v17582_v11 = vpack.c.bf16 %v20842_v26, %v20837_v13  ;;  %v6783_v13 = vld [vmem:[%s23132_s8 + $0x30] sm:$0xff]  ;;  %v6784_v26 = vld [vmem:[%s23132_s8 + $0x38] sm:$0xff]  ;;  %v21040_v23 = vld [vmem:[%s23132_s8 + $0x68] sm:$0xff] }
 0x62e   : > { %17563 = vmatprep.subr.bf16.mxu0 %v17562_v4 }
 0x631   : > { %17565 = vmatpush3.bf16.msra.mxu0 %v17562_v4 }
 0x632   : > { %17567 = vmatprep.subr.bf16.mxu0 %v17566_v29 }
 0x635   : > { %17569 = vmatpush3.bf16.msra.mxu0 %v17566_v29 }
 0x636   : > { %17571 = vmatprep.subr.bf16.mxu0 %v17570_v58 }
 0x639   : > { %17573 = vmatpush3.bf16.msra.mxu0 %v17570_v58 }
 0x63a   : > { %17575 = vmatprep.subr.bf16.mxu0 %v17574_v16 }
 0x63d   : > { %17577 = vmatpush3.bf16.msra.mxu0 %v17574_v16  ;;  %v7611_v16 = vand.u32 4294901760, %v21024_v19 }
 0x63e   : > { %17579 = vmatprep.subr.bf16.mxu0 %v17578_v43 }
 0x641   : > { %17581 = vmatpush3.bf16.msra.mxu0 %v17578_v43 }
 0x642   : > { %17583 = vmatprep.subr.bf16.mxu0 %v17582_v11 }
 0x645   : > { %17585 = vmatpush3.bf16.msra.mxu0 %v17582_v11  ;;  %v7617_v11 = vand.u32 4294901760, %v21035_v32 }
 0x646   : > { %17587 = vmatprep.subr.bf16.mxu0 %v20651_v41 }
 0x648   : > { %15415 = vmatmul.mubr.f32.vlgmr.msra.gmra.mrb[24].mxu0 %v20393_v44  ;;  %v23278_v44 = vand.u32 4294901760, %v20706_v14  ;;  %v23283_v14 = vand.u32 4294901760, %v20755_v52 }
 0x649   : > { %15417 = vmatprep.mubr.f32.mxu0 %v20434_v51  ;;  %17589 = vmatpush3.bf16.msra.mxu0 %v20651_v41  ;;  %v23280_v51 = vand.u32 4294901760, %v20731_v50  ;;  %v23285_v50 = vand.u32 4294901760, %v20766_v12  ;;  %v17646_v12 = vpack.c.bf16 %v7039_v59, %v7032_v39  ;;  %v7599_v39 = vand.u32 4294901760, %v6783_v13 }
 0x64a   : > { %17591 = vmatprep.subr.bf16.mxu0 %v20663_v53  ;;  %v7602_v59 = vand.u32 4294901760, %v6784_v26 }
 0x64b   : > { %v17622_v7 = vpack.c.bf16 %v23281_v17, %v23280_v51 }
 0x64c   : > { %15418 = vmatmul.mubr.f32.gmra.mrb[26].mxu0 %v20422_v27 }
 0x64d   : > { %17593 = vmatpush3.bf16.msra.mxu0 %v20663_v53  ;;  %15452 = vmatprep.mubr.f32.mxu0 %v20411_v28  ;;  %v23279_v28 = vand.u32 4294901760, %v20708_v30  ;;  %v17626_v30 = vpack.c.bf16 %v23283_v14, %v23282_v37  ;;  %v21077_v14 = vld [vmem:[%s23132_s8 + $0x70] sm:$0xff] }
 0x64e   : > { %17595 = vmatprep.subr.bf16.mxu0 %v20675_v48 }
 0x64f   : > { %v17618_v27 = vpack.c.bf16 %v23279_v28, %v23278_v44  ;;  %v23189_v44 = vand.u32 4294901760, %v21040_v23 }
 0x651   : > { %17597 = vmatpush3.bf16.msra.mxu0 %v20675_v48 }
 0x652   : > { %17599 = vmatprep.subr.bf16.mxu0 %v20687_v15 }
 0x655   : > { %17601 = vmatpush3.bf16.msra.mxu0 %v20687_v15 }
 0x656   : > { %17603 = vmatprep.subr.bf16.mxu0 %v20711_v3 }
 0x659   : > { %17605 = vmatpush3.bf16.msra.mxu0 %v20711_v3 }
 0x65a   : > { %17607 = vmatprep.subr.bf16.mxu0 %v20719_v8 }
 0x65d   : > { %17609 = vmatpush3.bf16.msra.mxu0 %v20719_v8 }
 0x65e   : > { %17611 = vmatprep.subr.bf16.mxu0 %v20739_v38 }
 0x661   : > { %17613 = vmatpush3.bf16.msra.mxu0 %v20739_v38 }
 0x662   : > { %17615 = vmatprep.subr.bf16.mxu0 %v20764_v63 }
 0x665   : > { %17617 = vmatpush3.bf16.msra.mxu0 %v20764_v63 }
 0x666   : > { %17619 = vmatprep.subr.bf16.mxu0 %v17618_v27 }
 0x668   : > { %15453 = vmatmul.mubr.f32.vlgmr.msra.gmra.mrb[24].mxu0 %v20406_v33  ;;  %v17630_v33 = vpack.c.bf16 %v23285_v50, %v23284_v56  ;;  %v21091_v50 = vpack.c.bf16 %v23189_v44, %v7617_v11 }
 0x669   : > { %15455 = vmatprep.mubr.f32.mxu0 %v20444_v60  ;;  %17621 = vmatpush3.bf16.msra.mxu0 %v17618_v27  ;;  %v17634_v60 = vpack.c.bf16 %v6997_v36, %v6990_v45  ;;  %v6779_v45 = vld [vmem:[%s23132_s8 + $0x10] sm:$0xff]  ;;  %v6780_v36 = vld [vmem:[%s23132_s8 + $0x18] sm:$0xff] }
 0x66a   : > { %17623 = vmatprep.subr.bf16.mxu0 %v17622_v7  ;;  %v7587_v6 = vand.u32 4294901760, %v6779_v45  ;;  %v7590_v61 = vand.u32 4294901760, %v6780_v36 }
 0x66c   : > { %15456 = vmatmul.mubr.f32.gmra.mrb[26].mxu0 %v20439_v54  ;;  %v17638_v54 = vpack.c.bf16 %v7011_v9, %v7004_v24  ;;  %v6781_v9 = vld [vmem:[%s23132_s8 + $0x20] sm:$0xff]  ;;  %v21057_v28 = vsub.f32 %v6779_v45, %v7587_v6  ;;  %v21059_v27 = vsub.f32 %v6780_v36, %v7590_v61 }
 0x66d   : > { %17625 = vmatpush3.bf16.msra.mxu0 %v17622_v7  ;;  %15490 = vmatprep.mubr.f32.mxu0 %v20384_v49  ;;  %v7593_v47 = vand.u32 4294901760, %v6781_v9 }
 0x66e   : > { %17627 = vmatprep.subr.bf16.mxu0 %v17626_v30 }
 0x671   : > { %17629 = vmatpush3.bf16.msra.mxu0 %v17626_v30  ;;  %v21082_v30 = vld [vmem:[%s23132_s8 + $0x78] sm:$0xff] }
 0x672   : > { %17631 = vmatprep.subr.bf16.mxu0 %v17630_v33 }
 0x675   : > { %17633 = vmatpush3.bf16.msra.mxu0 %v17630_v33  ;;  %v23177_v33 = vand.u32 4294901760, %v21057_v28 }
 0x676   : > { %17635 = vmatprep.subr.bf16.mxu0 %v17634_v60 }
 0x679   : > { %17637 = vmatpush3.bf16.msra.mxu0 %v17634_v60  ;;  %v23176_v60 = vand.u32 4294901760, %v21059_v27 }
 0x67a   : > { %17639 = vmatprep.subr.bf16.mxu0 %v17638_v54 }
 0x67d   : > { %17641 = vmatpush3.bf16.msra.mxu0 %v17638_v54  ;;  %v23188_v54 = vand.u32 4294901760, %v21077_v14 }
 0x67e   : > { %17643 = vmatprep.subr.bf16.mxu0 %v17642_v0 }
 0x681   : > { %17645 = vmatpush3.bf16.msra.mxu0 %v17642_v0  ;;  %v23187_v0 = vand.u32 4294901760, %v21082_v30 }
 0x682   : > { %17647 = vmatprep.subr.bf16.mxu0 %v17646_v12 }
 0x685   : > { %17649 = vmatpush3.bf16.msra.mxu0 %v17646_v12 }
 0x686   : > { %17651 = vmatprep.subr.bf16.mxu0 %v20651_v41 }
 0x688   : > { %15491 = vmatmul.mubr.f32.vlgmr.msra.gmra.mrb[24].mxu0 %v20382_v35 }
 0x689   : > { %15493 = vmatprep.mubr.f32.mxu0 %v20413_v31  ;;  %17653 = vmatpush3.bf16.msra.mxu0 %v20651_v41 }
 0x68a   : > { %17655 = vmatprep.subr.bf16.mxu0 %v20663_v53 }
 0x68b   : > { %v20939_v52 = vpop.f32.mrb[16].mxu0 }
 0x68c   : > { %v6124_v34 = vpop.f32.mrb[17].mxu0  ;;  %15494 = vmatmul.mubr.f32.gmra.mrb[26].mxu0 %v20408_v21  ;;  %v21065_v7 = vand.u32 4294901760, %v20939_v52 }
 0x68d   : > { %17657 = vmatpush3.bf16.msra.mxu0 %v20663_v53  ;;  %15528 = vmatprep.mubr.f32.mxu0 %v20384_v49  ;;  %v20955_v41 = vand.u32 4294901760, %v6124_v34  ;;  %v6777_v49 = vld [vmem:[%s23132_s8] sm:$0xff]  ;;  %v6778_v53 = vld [vmem:[%s23132_s8 + $0x8] sm:$0xff] }
 0x68e   : > { %17659 = vmatprep.subr.bf16.mxu0 %v20675_v48 }
 0x68f   : > { %v20945_v20 = vpop.f32.mrb[18].mxu0 }
 0x690   : > { %v20947_v1 = vpop.f32.mrb[19].mxu0 }
 0x691   : > { %17661 = vmatpush3.bf16.msra.mxu0 %v20675_v48  ;;  %v7584_v48 = vand.u32 4294901760, %v6778_v53  ;;  %v21085_v56 = vand.u32 4294901760, %v20947_v1 }
 0x692   : > { %17663 = vmatprep.subr.bf16.mxu0 %v20687_v15 }
 0x693   : > { %v21044_v29 = vsub.f32 %v6778_v53, %v7584_v48  ;;  %v21109_v53 = vand.u32 4294901760, %v20945_v20  ;;  %v21118_v45 = vsub.f32 %v20947_v1, %v21085_v56  ;;  %v21139_v1 = vpack.c.bf16 %v23187_v0, %v23188_v54 }
 0x695   : > { %17665 = vmatpush3.bf16.msra.mxu0 %v20687_v15  ;;  %v7581_v15 = vand.u32 4294901760, %v6777_v49  ;;  %v23178_v17 = vand.u32 4294901760, %v21044_v29 }
 0x696   : > { %17667 = vmatprep.subr.bf16.mxu0 %v20711_v3 }
 0x697   : > { %v21042_v4 = vsub.f32 %v6777_v49, %v7581_v15  ;;  %v21106_v49 = vsub.f32 %v20939_v52, %v21065_v7  ;;  %v7719_v52 = vsub.f32 %v21057_v28, %v23177_v33 }
 0x699   : > { %17669 = vmatpush3.bf16.msra.mxu0 %v20711_v3  ;;  %v20966_v3 = vsub.f32 %v6124_v34, %v20955_v41  ;;  %v23179_v51 = vand.u32 4294901760, %v21042_v4  ;;  %v7712_v34 = vsub.f32 %v21044_v29, %v23178_v17 }
 0x69a   : > { %17671 = vmatprep.subr.bf16.mxu0 %v20719_v8 }
 0x69b   : > { %v23180_v24 = vand.u32 4294901760, %v20966_v3  ;;  %v7705_v12 = vsub.f32 %v21042_v4, %v23179_v51  ;;  %v21160_v51 = vsub.f32 %v21007_v22, %v7605_v25 }
 0x69d   : > { %17673 = vmatpush3.bf16.msra.mxu0 %v20719_v8  ;;  %v20976_v8 = vpack.c.bf16 %v7584_v48, %v7581_v15  ;;  %v7664_v5 = vsub.f32 %v20966_v3, %v23180_v24  ;;  %v21112_v15 = vsub.f32 %v6781_v9, %v7593_v47  ;;  %v21114_v48 = vsub.f32 %v6782_v42, %v7596_v40 }
 0x69e   : > { %17675 = vmatprep.subr.bf16.mxu0 %v20739_v38  ;;  %v21130_v9 = vsub.f32 %v6783_v13, %v7599_v39  ;;  %v21132_v42 = vsub.f32 %v6784_v26, %v7602_v59 }
 0x69f   : > { %v7665_v46 = vand.u32 4294901760, %v7664_v5  ;;  %v23182_v5 = vand.u32 4294901760, %v21106_v49  ;;  %v23181_v13 = vand.u32 4294901760, %v21112_v15  ;;  %v23183_v26 = vand.u32 4294901760, %v21114_v48 }
 0x6a0   : > { %v23185_v33 = vand.u32 4294901760, %v21130_v9  ;;  %v23184_v17 = vand.u32 4294901760, %v21132_v42 }
 0x6a1   : > { %17677 = vmatpush3.bf16.msra.mxu0 %v20739_v38  ;;  %v20987_v38 = vpack.c.bf16 %v7590_v61, %v7587_v6  ;;  %v7726_v61 = vsub.f32 %v21059_v27, %v23176_v60  ;;  %v7740_v22 = vsub.f32 %v21114_v48, %v23183_v26  ;;  %v21193_v26 = vsub.f32 %v21024_v19, %v7611_v16 }
 0x6a2   : > { %17679 = vmatprep.subr.bf16.mxu0 %v20764_v63 }
 0x6a5   : > { %17681 = vmatpush3.bf16.msra.mxu0 %v20764_v63  ;;  %v21002_v63 = vpack.c.bf16 %v7596_v40, %v7593_v47  ;;  %v7706_v47 = vand.u32 4294901760, %v7705_v12  ;;  %v7713_v40 = vand.u32 4294901760, %v7712_v34  ;;  %v7720_v12 = vand.u32 4294901760, %v7719_v52 }
 0x6a6   : > { %17683 = vmatprep.subr.bf16.mxu0 %v20976_v8  ;;  %v7727_v34 = vand.u32 4294901760, %v7726_v61  ;;  %v7674_v52 = vsub.f32 %v21106_v49, %v23182_v5 }
 0x6a8   : > { %15529 = vmatmul.mubr.f32.vlgmr.msra.gmra.mrb[24].mxu0 %v20382_v35  ;;  %v21012_v35 = vld [vmem:[%s23132_s8 + $0x48] sm:$0xff] }
 0x6a9   : > { %15531 = vmatprep.mubr.f32.mxu0 %v20413_v31  ;;  %17685 = vmatpush3.bf16.msra.mxu0 %v20976_v8  ;;  %v21017_v31 = vpack.c.bf16 %v7602_v59, %v7599_v39  ;;  %v7608_v18 = vand.u32 4294901760, %v21012_v35  ;;  %v23186_v39 = vand.u32 4294901760, %v21118_v45 }
 0x6aa   : > { %17687 = vmatprep.subr.bf16.mxu0 %v20987_v38 }
 0x6ab   : > { %v21051_v58 = vpack.c.bf16 %v7608_v18, %v7605_v25  ;;  %v21165_v24 = vsub.f32 %v21012_v35, %v7608_v18  ;;  %v7684_v35 = vsub.f32 %v21118_v45, %v23186_v39  ;;  %v17718_v25 = vpack.c.bf16 %v7727_v34, %v7720_v12 }
 0x6ac   : > { %15532 = vmatmul.mubr.f32.gmra.mrb[26].mxu0 %v20408_v21  ;;  %v21029_v21 = vld [vmem:[%s23132_s8 + $0x58] sm:$0xff]  ;;  %v7747_v18 = vsub.f32 %v21130_v9, %v23185_v33  ;;  %v7675_v34 = vand.u32 4294901760, %v7674_v52  ;;  %v7741_v39 = vand.u32 4294901760, %v7740_v22 }
 0x6ad   : > { %17689 = vmatpush3.bf16.msra.mxu0 %v20987_v38  ;;  %15566 = vmatprep.mubr.f32.mxu0 %v7665_v46  ;;  %v7614_v43 = vand.u32 4294901760, %v21029_v21  ;;  %v21144_v46 = vsub.f32 %v20945_v20, %v21109_v53  ;;  %v17714_v20 = vpack.c.bf16 %v7713_v40, %v7706_v47  ;;  %v7733_v47 = vsub.f32 %v21112_v15, %v23181_v13 }
 0x6ae   : > { %17691 = vmatprep.subr.bf16.mxu0 %v21002_v63  ;;  %v7754_v40 = vsub.f32 %v21132_v42, %v23184_v17  ;;  %v7760_v13 = vand.u32 4294901760, %v21160_v51  ;;  %v7767_v5 = vand.u32 4294901760, %v21165_v24  ;;  %v7685_v0 = vand.u32 4294901760, %v7684_v35 }
 0x6af   : > { %v21072_v37 = vpack.c.bf16 %v7614_v43, %v7611_v16  ;;  %v7693_v61 = vand.u32 4294901760, %v21144_v46  ;;  %v21198_v12 = vsub.f32 %v21029_v21, %v7614_v43  ;;  %v7734_v33 = vand.u32 4294901760, %v7733_v47 }
 0x6b0   : > { %v7748_v54 = vand.u32 4294901760, %v7747_v18  ;;  %v7755_v44 = vand.u32 4294901760, %v7754_v40  ;;  %v7761_v19 = vsub.f32 %v21160_v51, %v7760_v13  ;;  %v7768_v21 = vsub.f32 %v21165_v24, %v7767_v5 }
 0x6b1   : > { %17693 = vmatpush3.bf16.msra.mxu0 %v21002_v63  ;;  %v7694_v17 = vsub.f32 %v21144_v46, %v7693_v61  ;;  %v7774_v16 = vand.u32 4294901760, %v21193_v26  ;;  %v7781_v43 = vand.u32 4294901760, %v21198_v12  ;;  %v17722_v47 = vpack.c.bf16 %v7741_v39, %v7734_v33 }
 0x6b2   : > { %17695 = vmatprep.subr.bf16.mxu0 %v21017_v31  ;;  %v17726_v35 = vpack.c.bf16 %v7755_v44, %v7748_v54  ;;  %v7762_v18 = vand.u32 4294901760, %v7761_v19  ;;  %v7769_v40 = vand.u32 4294901760, %v7768_v21  ;;  %v23287_v44 = vand.u32 4294901760, %v21077_v14 }
 0x6b3   : > { %v7695_v52 = vand.u32 4294901760, %v7694_v17  ;;  %v7775_v17 = vsub.f32 %v21193_v26, %v7774_v16  ;;  %v23288_v54 = vand.u32 4294901760, %v21082_v30 }
 0x6b4   : > { %v21233_v33 = vsub.f32 %v21077_v14, %v23287_v44 }
 0x6b5   : > { %17697 = vmatpush3.bf16.msra.mxu0 %v21017_v31  ;;  %v21238_v39 = vsub.f32 %v21082_v30, %v23288_v54 }
 0x6b6   : > { %17699 = vmatprep.subr.bf16.mxu0 %v21051_v58  ;;  %v7802_v14 = vand.u32 4294901760, %v21233_v33 }
 0x6b9   : > { %17701 = vmatpush3.bf16.msra.mxu0 %v21051_v58 }
 0x6ba   : > { %17703 = vmatprep.subr.bf16.mxu0 %v21072_v37 }
 0x6bb   : > { %v21120_v36 = vpop.f32.mrb[20].mxu0 }
 0x6bc   : > { %v21122_v6 = vpop.f32.mrb[21].mxu0 }
 0x6bd   : > { %17705 = vmatpush3.bf16.msra.mxu0 %v21072_v37 }
 0x6be   : > { %17707 = vmatprep.subr.bf16.mxu0 %v21091_v50 }
 0x6bf   : > { %v21150_v59 = vpop.f32.mrb[22].mxu0 }
 0x6c0   : > { %v21152_v60 = vpop.f32.mrb[23].mxu0 }
 0x6c1   : > { %17709 = vmatpush3.bf16.msra.mxu0 %v21091_v50 }
 0x6c2   : > { %17711 = vmatprep.subr.bf16.mxu0 %v21139_v1 }
 0x6c5   : > { %17713 = vmatpush3.bf16.msra.mxu0 %v21139_v1 }
 0x6c6   : > { %17715 = vmatprep.subr.bf16.mxu0 %v17714_v20 }
 0x6c8   : > { %15567 = vmatmul.mubr.f32.vlgmr.msra.gmra.mrb[24].mxu0 %v7675_v34  ;;  %v7776_v34 = vand.u32 4294901760, %v7775_v17 }
 0x6c9   : > { %15569 = vmatprep.mubr.f32.mxu0 %v7685_v0  ;;  %17717 = vmatpush3.bf16.msra.mxu0 %v17714_v20  ;;  %v21214_v0 = vsub.f32 %v21035_v32, %v7617_v11  ;;  %v23286_v20 = vand.u32 4294901760, %v21040_v23  ;;  %v7782_v32 = vsub.f32 %v21198_v12, %v7781_v43 }
 0x6ca   : > { %17719 = vmatprep.subr.bf16.mxu0 %v17718_v25 }
 0x6cb   : > { %v21219_v22 = vsub.f32 %v21040_v23, %v23286_v20  ;;  %v7788_v11 = vand.u32 4294901760, %v21214_v0  ;;  %v7783_v19 = vand.u32 4294901760, %v7782_v32  ;;  %v7809_v20 = vand.u32 4294901760, %v21238_v39 }
 0x6cc   : > { %15570 = vmatmul.mubr.f32.gmra.mrb[26].mxu0 %v7695_v52 }
 0x6cd   : > { %17721 = vmatpush3.bf16.msra.mxu0 %v17718_v25  ;;  %15604 = vmatprep.mubr.f32.mxu0 %v20955_v41  ;;  %v7795_v23 = vand.u32 4294901760, %v21219_v22  ;;  %v17730_v25 = vpack.c.bf16 %v7769_v40, %v7762_v18  ;;  %v7789_v21 = vsub.f32 %v21214_v0, %v7788_v11  ;;  %v17734_v30 = vpack.c.bf16 %v7783_v19, %v7776_v34 }
 0x6ce   : > { %17723 = vmatprep.subr.bf16.mxu0 %v17722_v47  ;;  %v7803_v40 = vsub.f32 %v21233_v33, %v7802_v14  ;;  %v7810_v17 = vsub.f32 %v21238_v39, %v7809_v20  ;;  %v17746_v34 = vpack.c.bf16 %v21044_v29, %v21042_v4  ;;  %v17750_v19 = vpack.c.bf16 %v21059_v27, %v21057_v28 }
 0x6cf   : > { %v7796_v52 = vsub.f32 %v21219_v22, %v7795_v23 }
 0x6d0   : > { %v7804_v44 = vand.u32 4294901760, %v7803_v40  ;;  %v7811_v54 = vand.u32 4294901760, %v7810_v17  ;;  %v23289_v40 = vand.u32 4294901760, %v20966_v3  ;;  %v23291_v17 = vand.u32 4294901760, %v21044_v29 }
 0x6d1   : > { %17725 = vmatpush3.bf16.msra.mxu0 %v17722_v47  ;;  %v7790_v47 = vand.u32 4294901760, %v7789_v21  ;;  %v7797_v18 = vand.u32 4294901760, %v7796_v52  ;;  %v17758_v21 = vpack.c.bf16 %v21132_v42, %v21130_v9  ;;  %v17762_v52 = vpack.c.bf16 %v21165_v24, %v21160_v51  ;;  %v12919_v51 = vld [vmem:[%s23132_s8 + $0x110] sm:$0xff] }
 0x6d2   : > { %17727 = vmatprep.subr.bf16.mxu0 %v17726_v35  ;;  %v23297_v29 = vand.u32 4294901760, %v21114_v48  ;;  %v17838_v24 = vpack.c.bf16 %v7809_v20, %v7802_v14  ;;  %v21420_v14 = vld [vmem:[%s23132_s8 + $0x150] sm:$0xff]  ;;  %v21431_v20 = vld [vmem:[%s23132_s8 + $0x160] sm:$0xff] }
 0x6d3   : > { %v17738_v32 = vpack.c.bf16 %v7797_v18, %v7790_v47  ;;  %v17770_v47 = vpack.c.bf16 %v21219_v22, %v21214_v0  ;;  %v17774_v18 = vpack.c.bf16 %v21238_v39, %v21233_v33 }
 0x6d5   : > { %17729 = vmatpush3.bf16.msra.mxu0 %v17726_v35  ;;  %v17742_v35 = vpack.c.bf16 %v7811_v54, %v7804_v44  ;;  %v23292_v44 = vand.u32 4294901760, %v21057_v28  ;;  %v23293_v54 = vand.u32 4294901760, %v21059_v27  ;;  %v23298_v28 = vand.u32 4294901760, %v21130_v9  ;;  %v12920_v9 = vld [vmem:[%s23132_s8 + $0x118] sm:$0xff] }
 0x6d6   : > { %17731 = vmatprep.subr.bf16.mxu0 %v17730_v25  ;;  %v23299_v27 = vand.u32 4294901760, %v21132_v42  ;;  %v8374_v42 = vand.u32 4294901760, %v12919_v51 }
 0x6d9   : > { %17733 = vmatpush3.bf16.msra.mxu0 %v17730_v25  ;;  %v17754_v25 = vpack.c.bf16 %v21114_v48, %v21112_v15  ;;  %v17830_v48 = vpack.c.bf16 %v7781_v43, %v7774_v16  ;;  %v12923_v16 = vld [vmem:[%s23132_s8 + $0x130] sm:$0xff]  ;;  %v12924_v43 = vld [vmem:[%s23132_s8 + $0x138] sm:$0xff] }
 0x6da   : > { %17735 = vmatprep.subr.bf16.mxu0 %v17734_v30  ;;  %v8386_v0 = vand.u32 4294901760, %v12923_v16  ;;  %v8389_v22 = vand.u32 4294901760, %v12924_v43 }
 0x6dd   : > { %17737 = vmatpush3.bf16.msra.mxu0 %v17734_v30  ;;  %v17766_v30 = vpack.c.bf16 %v21198_v12, %v21193_v26 }
 0x6de   : > { %17739 = vmatprep.subr.bf16.mxu0 %v17738_v32 }
 0x6e1   : > { %17741 = vmatpush3.bf16.msra.mxu0 %v17738_v32 }
 0x6e2   : > { %17743 = vmatprep.subr.bf16.mxu0 %v17742_v35 }
 0x6e5   : > { %17745 = vmatpush3.bf16.msra.mxu0 %v17742_v35  ;;  %v17814_v35 = vpack.c.bf16 %v23293_v54, %v23292_v44 }
 0x6e6   : > { %17747 = vmatprep.subr.bf16.mxu0 %v17746_v34 }
 0x6e8   : > { %15605 = vmatmul.mubr.f32.vlgmr.msra.gmra.mrb[24].mxu0 %v21065_v7 }
 0x6e9   : > { %15607 = vmatprep.mubr.f32.mxu0 %v21085_v56  ;;  %17749 = vmatpush3.bf16.msra.mxu0 %v17746_v34  ;;  %v23294_v34 = vand.u32 4294901760, %v21106_v49 }
 0x6ea   : > { %17751 = vmatprep.subr.bf16.mxu0 %v17750_v19 }
 0x6ec   : > { %15608 = vmatmul.mubr.f32.gmra.mrb[26].mxu0 %v21109_v53 }
 0x6ed   : > { %17753 = vmatpush3.bf16.msra.mxu0 %v17750_v19  ;;  %15642 = vmatprep.mubr.f32.mxu0 %v20966_v3  ;;  %v23290_v3 = vand.u32 4294901760, %v21042_v4  ;;  %v23295_v19 = vand.u32 4294901760, %v21118_v45  ;;  %v23296_v4 = vand.u32 4294901760, %v21112_v15  ;;  %v17826_v15 = vpack.c.bf16 %v7767_v5, %v7760_v13  ;;  %v12922_v13 = vld [vmem:[%s23132_s8 + $0x128] sm:$0xff] }
 0x6ee   : > { %17755 = vmatprep.subr.bf16.mxu0 %v17754_v25  ;;  %v8377_v5 = vand.u32 4294901760, %v12920_v9 }
 0x6ef   : > { %v17810_v32 = vpack.c.bf16 %v23291_v17, %v23290_v3  ;;  %v21448_v3 = vand.u32 4294901760, %v21120_v36  ;;  %v8404_v17 = vand.u32 4294901760, %v21431_v20 }
 0x6f1   : > { %17757 = vmatpush3.bf16.msra.mxu0 %v17754_v25  ;;  %v17818_v25 = vpack.c.bf16 %v23297_v29, %v23296_v4  ;;  %v21472_v4 = vsub.f32 %v12919_v51, %v8374_v42  ;;  %v21474_v29 = vsub.f32 %v12920_v9, %v8377_v5  ;;  %v21513_v9 = vsub.f32 %v12923_v16, %v8386_v0 }
 0x6f2   : > { %17759 = vmatprep.subr.bf16.mxu0 %v17758_v21 }
 0x6f5   : > { %17761 = vmatpush3.bf16.msra.mxu0 %v17758_v21  ;;  %v21436_v21 = vld [vmem:[%s23132_s8 + $0x168] sm:$0xff] }
 0x6f6   : > { %17763 = vmatprep.subr.bf16.mxu0 %v17762_v52 }
 0x6f9   : > { %17765 = vmatpush3.bf16.msra.mxu0 %v17762_v52 }
 0x6fa   : > { %17767 = vmatprep.subr.bf16.mxu0 %v17766_v30 }
 0x6fd   : > { %17769 = vmatpush3.bf16.msra.mxu0 %v17766_v30 }
 0x6fe   : > { %17771 = vmatprep.subr.bf16.mxu0 %v17770_v47 }
 0x701   : > { %17773 = vmatpush3.bf16.msra.mxu0 %v17770_v47 }
 0x702   : > { %17775 = vmatprep.subr.bf16.mxu0 %v17774_v18 }
 0x705   : > { %17777 = vmatpush3.bf16.msra.mxu0 %v17774_v18  ;;  %v8398_v18 = vand.u32 4294901760, %v21420_v14 }
 0x706   : > { %17779 = vmatprep.subr.bf16.mxu0 %v20976_v8 }
 0x708   : > { %15643 = vmatmul.mubr.f32.vlgmr.msra.gmra.mrb[24].mxu0 %v21106_v49  ;;  %v17822_v49 = vpack.c.bf16 %v23299_v27, %v23298_v28  ;;  %v21481_v28 = vsub.f32 %v21120_v36, %v21448_v3  ;;  %v21484_v27 = vand.u32 4294901760, %v21150_v59 }
 0x709   : > { %15645 = vmatprep.mubr.f32.mxu0 %v21118_v45  ;;  %17781 = vmatpush3.bf16.msra.mxu0 %v20976_v8  ;;  %v17834_v45 = vpack.c.bf16 %v7795_v23, %v7788_v11  ;;  %v21403_v23 = vld [vmem:[%s23132_s8 + $0x140] sm:$0xff] }
 0x70a   : > { %17783 = vmatprep.subr.bf16.mxu0 %v20987_v38  ;;  %v8392_v33 = vand.u32 4294901760, %v21403_v23  ;;  %v23193_v51 = vand.u32 4294901760, %v21481_v28 }
 0x70c   : > { %15646 = vmatmul.mubr.f32.gmra.mrb[26].mxu0 %v21144_v46 }
 0x70d   : > { %17785 = vmatpush3.bf16.msra.mxu0 %v20987_v38  ;;  %15680 = vmatprep.mubr.f32.mxu0 %v23289_v40 }
 0x70e   : > { %17787 = vmatprep.subr.bf16.mxu0 %v21002_v63 }
 0x711   : > { %17789 = vmatpush3.bf16.msra.mxu0 %v21002_v63 }
 0x712   : > { %17791 = vmatprep.subr.bf16.mxu0 %v21017_v31 }
 0x715   : > { %17793 = vmatpush3.bf16.msra.mxu0 %v21017_v31 }
 0x716   : > { %17795 = vmatprep.subr.bf16.mxu0 %v21051_v58 }
 0x719   : > { %17797 = vmatpush3.bf16.msra.mxu0 %v21051_v58 }
 0x71a   : > { %17799 = vmatprep.subr.bf16.mxu0 %v21072_v37 }
 0x71d   : > { %17801 = vmatpush3.bf16.msra.mxu0 %v21072_v37 }
 0x71e   : > { %17803 = vmatprep.subr.bf16.mxu0 %v21091_v50 }
 0x721   : > { %17805 = vmatpush3.bf16.msra.mxu0 %v21091_v50 }
 0x722   : > { %17807 = vmatprep.subr.bf16.mxu0 %v21139_v1 }
 0x725   : > { %17809 = vmatpush3.bf16.msra.mxu0 %v21139_v1 }
 0x726   : > { %17811 = vmatprep.subr.bf16.mxu0 %v17810_v32 }
 0x728   : > { %15681 = vmatmul.mubr.f32.vlgmr.msra.gmra.mrb[24].mxu0 %v23294_v34  ;;  %v21465_v34 = vld [vmem:[%s23132_s8 + $0x170] sm:$0xff] }
 0x729   : > { %15683 = vmatprep.mubr.f32.mxu0 %v23295_v19  ;;  %17813 = vmatpush3.bf16.msra.mxu0 %v17810_v32  ;;  %v8407_v32 = vand.u32 4294901760, %v21436_v21  ;;  %v21470_v19 = vld [vmem:[%s23132_s8 + $0x178] sm:$0xff] }
 0x72a   : > { %17815 = vmatprep.subr.bf16.mxu0 %v17814_v35 }
 0x72c   : > { %15684 = vmatmul.mubr.f32.gmra.mrb[26].mxu0 %v7693_v61  ;;  %v8383_v61 = vand.u32 4294901760, %v12922_v13 }
 0x72d   : > { %17817 = vmatpush3.bf16.msra.mxu0 %v17814_v35  ;;  %15718 = vmatprep.mubr.f32.mxu0 %v20955_v41 }
 0x72e   : > { %17819 = vmatprep.subr.bf16.mxu0 %v17818_v25 }
 0x731   : > { %17821 = vmatpush3.bf16.msra.mxu0 %v17818_v25  ;;  %v21477_v25 = vand.u32 4294901760, %v21152_v60 }
 0x732   : > { %17823 = vmatprep.subr.bf16.mxu0 %v17822_v49 }
 0x735   : > { %17825 = vmatpush3.bf16.msra.mxu0 %v17822_v49  ;;  %v21490_v49 = vpack.c.bf16 %v8407_v32, %v8404_v17 }
 0x736   : > { %17827 = vmatprep.subr.bf16.mxu0 %v17826_v15 }
 0x739   : > { %17829 = vmatpush3.bf16.msra.mxu0 %v17826_v15  ;;  %v8410_v15 = vand.u32 4294901760, %v21465_v34 }
 0x73a   : > { %17831 = vmatprep.subr.bf16.mxu0 %v17830_v48 }
 0x73d   : > { %17833 = vmatpush3.bf16.msra.mxu0 %v17830_v48  ;;  %v8413_v48 = vand.u32 4294901760, %v21470_v19 }
 0x73e   : > { %17835 = vmatprep.subr.bf16.mxu0 %v17834_v45 }
 0x741   : > { %17837 = vmatpush3.bf16.msra.mxu0 %v17834_v45 }
 0x742   : > { %17839 = vmatprep.subr.bf16.mxu0 %v17838_v24 }
 0x745   : > { %17841 = vmatpush3.bf16.msra.mxu0 %v17838_v24  ;;  %v23191_v24 = vand.u32 4294901760, %v21472_v4 }
 0x746   : > { %17843 = vmatprep.subr.bf16.mxu0 %v20976_v8 }
 0x748   : > { %15719 = vmatmul.mubr.f32.vlgmr.msra.gmra.mrb[24].mxu0 %v21065_v7 }
 0x749   : > { %15721 = vmatprep.mubr.f32.mxu0 %v21085_v56  ;;  %17845 = vmatpush3.bf16.msra.mxu0 %v20976_v8  ;;  %v21350_v8 = vand.u32 4294901760, %v21122_v6 }
 0x74a   : > { %17847 = vmatprep.subr.bf16.mxu0 %v20987_v38 }
 0x74c   : > { %15722 = vmatmul.mubr.f32.gmra.mrb[26].mxu0 %v21109_v53 }
 0x74d   : > { %17849 = vmatpush3.bf16.msra.mxu0 %v20987_v38  ;;  %15756 = vmatprep.mubr.f32.mxu0 %v20955_v41  ;;  %v12917_v41 = vld [vmem:[%s23132_s8 + $0x100] sm:$0xff]  ;;  %v12918_v38 = vld [vmem:[%s23132_s8 + $0x108] sm:$0xff] }
 0x74e   : > { %17851 = vmatprep.subr.bf16.mxu0 %v21002_v63 }
 0x751   : > { %17853 = vmatpush3.bf16.msra.mxu0 %v21002_v63  ;;  %v8368_v63 = vand.u32 4294901760, %v12917_v41 }
 0x752   : > { %17855 = vmatprep.subr.bf16.mxu0 %v21017_v31 }
 0x753   : > { %v21438_v52 = vsub.f32 %v12917_v41, %v8368_v63  ;;  %v23190_v41 = vand.u32 4294901760, %v21474_v29 }
 0x755   : > { %17857 = vmatpush3.bf16.msra.mxu0 %v21017_v31  ;;  %v8371_v31 = vand.u32 4294901760, %v12918_v38  ;;  %v23194_v44 = vand.u32 4294901760, %v21438_v52 }
 0x756   : > { %17859 = vmatprep.subr.bf16.mxu0 %v21051_v58 }
 0x757   : > { %v21440_v30 = vsub.f32 %v12918_v38, %v8371_v31  ;;  %v8492_v36 = vsub.f32 %v21438_v52, %v23194_v44 }
 0x759   : > { %17861 = vmatpush3.bf16.msra.mxu0 %v21051_v58  ;;  %v21362_v58 = vsub.f32 %v21122_v6, %v21350_v8  ;;  %v12921_v6 = vld [vmem:[%s23132_s8 + $0x120] sm:$0xff]  ;;  %v23192_v54 = vand.u32 4294901760, %v21440_v30 }
 0x75a   : > { %17863 = vmatprep.subr.bf16.mxu0 %v21072_v37  ;;  %v8380_v26 = vand.u32 4294901760, %v12921_v6 }
 0x75b   : > { %v23200_v46 = vand.u32 4294901760, %v21362_v58  ;;  %v8499_v45 = vsub.f32 %v21440_v30, %v23192_v54 }
 0x75c   : > { %v21504_v38 = vsub.f32 %v12921_v6, %v8380_v26  ;;  %v21526_v6 = vpack.c.bf16 %v8413_v48, %v8410_v15 }
 0x75d   : > { %17865 = vmatpush3.bf16.msra.mxu0 %v21072_v37  ;;  %v21372_v37 = vpack.c.bf16 %v8371_v31, %v8368_v63  ;;  %v8451_v12 = vsub.f32 %v21362_v58, %v23200_v46  ;;  %v21506_v63 = vsub.f32 %v12922_v13, %v8383_v61  ;;  %v21510_v31 = vsub.f32 %v21152_v60, %v21477_v25 }
 0x75e   : > { %17867 = vmatprep.subr.bf16.mxu0 %v21091_v50  ;;  %v8493_v60 = vand.u32 4294901760, %v8492_v36  ;;  %v8500_v13 = vand.u32 4294901760, %v8499_v45  ;;  %v21546_v45 = vsub.f32 %v21403_v23, %v8392_v33 }
 0x75f   : > { %v8452_v11 = vand.u32 4294901760, %v8451_v12  ;;  %v23197_v12 = vand.u32 4294901760, %v21506_v63  ;;  %v23199_v16 = vand.u32 4294901760, %v21510_v31 }
 0x760   : > { %v17906_v36 = vpack.c.bf16 %v8500_v13, %v8493_v60  ;;  %v8547_v60 = vand.u32 4294901760, %v21546_v45 }
 0x761   : > { %17869 = vmatpush3.bf16.msra.mxu0 %v21091_v50  ;;  %v21383_v50 = vpack.c.bf16 %v8377_v5, %v8374_v42  ;;  %v21515_v42 = vsub.f32 %v12924_v43, %v8389_v22  ;;  %v21519_v5 = vsub.f32 %v21150_v59, %v21484_v27  ;;  %v8513_v59 = vsub.f32 %v21474_v29, %v23190_v41 }
 0x762   : > { %17871 = vmatprep.subr.bf16.mxu0 %v21139_v1  ;;  %v8461_v43 = vsub.f32 %v21481_v28, %v23193_v51  ;;  %v8527_v44 = vsub.f32 %v21506_v63, %v23197_v12  ;;  %v8471_v23 = vsub.f32 %v21510_v31, %v23199_v16 }
 0x763   : > { %v8514_v54 = vand.u32 4294901760, %v8513_v59 }
 0x764   : > { %v8528_v12 = vand.u32 4294901760, %v8527_v44 }
 0x765   : > { %17873 = vmatpush3.bf16.msra.mxu0 %v21139_v1  ;;  %v21398_v1 = vpack.c.bf16 %v8383_v61, %v8380_v26  ;;  %v8506_v26 = vsub.f32 %v21472_v4, %v23191_v24  ;;  %v23198_v61 = vand.u32 4294901760, %v21504_v38 }
 0x766   : > { %17875 = vmatprep.subr.bf16.mxu0 %v21372_v37 }
 0x767   : > { %v8507_v24 = vand.u32 4294901760, %v8506_v26  ;;  %v8520_v51 = vsub.f32 %v21504_v38, %v23198_v61  ;;  %v21573_v26 = vsub.f32 %v21420_v14, %v8398_v18  ;;  %v8472_v61 = vand.u32 4294901760, %v8471_v23 }
 0x768   : > { %15757 = vmatmul.mubr.f32.vlgmr.msra.gmra.mrb[24].mxu0 %v21065_v7  ;;  %v21408_v7 = vld [vmem:[%s23132_s8 + $0x148] sm:$0xff]  ;;  %v8548_v14 = vsub.f32 %v21546_v45, %v8547_v60 }
 0x769   : > { %15759 = vmatprep.mubr.f32.mxu0 %v21085_v56  ;;  %17877 = vmatpush3.bf16.msra.mxu0 %v21372_v37  ;;  %v21413_v56 = vpack.c.bf16 %v8389_v22, %v8386_v0  ;;  %v8395_v39 = vand.u32 4294901760, %v21408_v7  ;;  %v23196_v0 = vand.u32 4294901760, %v21513_v9  ;;  %v23195_v22 = vand.u32 4294901760, %v21515_v42 }
 0x76a   : > { %17879 = vmatprep.subr.bf16.mxu0 %v21383_v50 }
 0x76b   : > { %v21443_v47 = vpack.c.bf16 %v8395_v39, %v8392_v33  ;;  %v21549_v41 = vsub.f32 %v21408_v7, %v8395_v39  ;;  %v8462_v33 = vand.u32 4294901760, %v8461_v43  ;;  %v8534_v7 = vsub.f32 %v21513_v9, %v23196_v0 }
 0x76c   : > { %15760 = vmatmul.mubr.f32.gmra.mrb[26].mxu0 %v21109_v53  ;;  %v21425_v53 = vld [vmem:[%s23132_s8 + $0x158] sm:$0xff]  ;;  %v8541_v39 = vsub.f32 %v21515_v42, %v23195_v22  ;;  %v17910_v22 = vpack.c.bf16 %v8514_v54, %v8507_v24  ;;  %v8521_v0 = vand.u32 4294901760, %v8520_v51  ;;  %v21594_v24 = vsub.f32 %v21431_v20, %v8404_v17 }
 0x76d   : > { %17881 = vmatpush3.bf16.msra.mxu0 %v21383_v50  ;;  %15794 = vmatprep.mubr.f32.mxu0 %v8452_v11  ;;  %v8401_v40 = vand.u32 4294901760, %v21425_v53  ;;  %v8480_v11 = vand.u32 4294901760, %v21519_v5  ;;  %v8554_v13 = vand.u32 4294901760, %v21549_v41  ;;  %v8535_v16 = vand.u32 4294901760, %v8534_v7 }
 0x76e   : > { %17883 = vmatprep.subr.bf16.mxu0 %v21398_v1  ;;  %v8542_v46 = vand.u32 4294901760, %v8541_v39  ;;  %v17914_v44 = vpack.c.bf16 %v8528_v12, %v8521_v0  ;;  %v21599_v51 = vsub.f32 %v21436_v21, %v8407_v32  ;;  %v8575_v17 = vand.u32 4294901760, %v21594_v24 }
 0x76f   : > { %v21460_v35 = vpack.c.bf16 %v8401_v40, %v8398_v18  ;;  %v21578_v59 = vsub.f32 %v21425_v53, %v8401_v40  ;;  %v8481_v43 = vsub.f32 %v21519_v5, %v8480_v11  ;;  %v8555_v53 = vsub.f32 %v21549_v41, %v8554_v13 }
 0x770   : > { %v8561_v18 = vand.u32 4294901760, %v21573_v26  ;;  %v8582_v21 = vand.u32 4294901760, %v21599_v51  ;;  %v21618_v32 = vsub.f32 %v21470_v19, %v8413_v48 }
 0x771   : > { %17885 = vmatpush3.bf16.msra.mxu0 %v21398_v1  ;;  %v8568_v40 = vand.u32 4294901760, %v21578_v59  ;;  %v8482_v54 = vand.u32 4294901760, %v8481_v43  ;;  %v8556_v23 = vand.u32 4294901760, %v8555_v53 }
 0x772   : > { %17887 = vmatprep.subr.bf16.mxu0 %v21413_v56  ;;  %v8562_v12 = vsub.f32 %v21573_v26, %v8561_v18  ;;  %v8583_v7 = vsub.f32 %v21599_v51, %v8582_v21 }
 0x773   : > { %v8569_v20 = vsub.f32 %v21578_v59, %v8568_v40 }
 0x774   : > { %v8563_v0 = vand.u32 4294901760, %v8562_v12  ;;  %v8584_v39 = vand.u32 4294901760, %v8583_v7  ;;  %v17946_v12 = vpack.c.bf16 %v21506_v63, %v21504_v38  ;;  %v23300_v7 = vand.u32 4294901760, %v21362_v58 }
 0x775   : > { %17889 = vmatpush3.bf16.msra.mxu0 %v21413_v56 }
 0x776   : > { %17891 = vmatprep.subr.bf16.mxu0 %v21443_v47 }
 0x779   : > { %17893 = vmatpush3.bf16.msra.mxu0 %v21443_v47 }
 0x77a   : > { %17895 = vmatprep.subr.bf16.mxu0 %v21460_v35 }
 0x77d   : > { %17897 = vmatpush3.bf16.msra.mxu0 %v21460_v35 }
 0x77e   : > { %17899 = vmatprep.subr.bf16.mxu0 %v21490_v49 }
 0x781   : > { %17901 = vmatpush3.bf16.msra.mxu0 %v21490_v49 }
 0x782   : > { %17903 = vmatprep.subr.bf16.mxu0 %v21526_v6 }
 0x785   : > { %17905 = vmatpush3.bf16.msra.mxu0 %v21526_v6 }
 0x786   : > { %17907 = vmatprep.subr.bf16.mxu0 %v17906_v36 }
 0x788   : > { %15795 = vmatmul.mubr.f32.vlgmr.msra.gmra.mrb[24].mxu0 %v8462_v33  ;;  %v8576_v33 = vsub.f32 %v21594_v24, %v8575_v17 }
 0x789   : > { %15797 = vmatprep.mubr.f32.mxu0 %v8472_v61  ;;  %17909 = vmatpush3.bf16.msra.mxu0 %v17906_v36  ;;  %v17918_v61 = vpack.c.bf16 %v8542_v46, %v8535_v16  ;;  %v8549_v36 = vand.u32 4294901760, %v8548_v14  ;;  %v21613_v46 = vsub.f32 %v21465_v34, %v8410_v15  ;;  %v8596_v15 = vand.u32 4294901760, %v21618_v32 }
 0x78a   : > { %17911 = vmatprep.subr.bf16.mxu0 %v17910_v22  ;;  %v8577_v48 = vand.u32 4294901760, %v8576_v33 }
 0x78b   : > { %v17922_v16 = vpack.c.bf16 %v8556_v23, %v8549_v36  ;;  %v8589_v34 = vand.u32 4294901760, %v21613_v46  ;;  %v8597_v14 = vsub.f32 %v21618_v32, %v8596_v15  ;;  %v17938_v36 = vpack.c.bf16 %v21440_v30, %v21438_v52 }
 0x78c   : > { %15798 = vmatmul.mubr.f32.gmra.mrb[26].mxu0 %v8482_v54  ;;  %v17930_v53 = vpack.c.bf16 %v8584_v39, %v8577_v48  ;;  %v17942_v23 = vpack.c.bf16 %v21474_v29, %v21472_v4  ;;  %v17966_v33 = vpack.c.bf16 %v21618_v32, %v21613_v46  ;;  %v23303_v39 = vand.u32 4294901760, %v21472_v4 }
 0x78d   : > { %17913 = vmatpush3.bf16.msra.mxu0 %v17910_v22  ;;  %15832 = vmatprep.mubr.f32.mxu0 %v21350_v8  ;;  %v8570_v22 = vand.u32 4294901760, %v8569_v20  ;;  %v8590_v43 = vsub.f32 %v21613_v46, %v8589_v34  ;;  %v17950_v20 = vpack.c.bf16 %v21515_v42, %v21513_v9  ;;  %v23309_v4 = vand.u32 4294901760, %v21513_v9 }
 0x78e   : > { %17915 = vmatprep.subr.bf16.mxu0 %v17914_v44 }
 0x78f   : > { %v17926_v19 = vpack.c.bf16 %v8570_v22, %v8563_v0  ;;  %v8591_v54 = vand.u32 4294901760, %v8590_v43  ;;  %v17958_v0 = vpack.c.bf16 %v21578_v59, %v21573_v26  ;;  %v17962_v22 = vpack.c.bf16 %v21599_v51, %v21594_v24 }
 0x790   : > { %v23304_v43 = vand.u32 4294901760, %v21474_v29  ;;  %v23310_v29 = vand.u32 4294901760, %v21515_v42 }
 0x791   : > { %17917 = vmatpush3.bf16.msra.mxu0 %v17914_v44  ;;  %v8598_v44 = vand.u32 4294901760, %v8597_v14 }
 0x792   : > { %17919 = vmatprep.subr.bf16.mxu0 %v17918_v61  ;;  %v18006_v14 = vpack.c.bf16 %v23304_v43, %v23303_v39 }
 0x795   : > { %17921 = vmatpush3.bf16.msra.mxu0 %v17918_v61  ;;  %v17934_v61 = vpack.c.bf16 %v8598_v44, %v8591_v54  ;;  %v23306_v54 = vand.u32 4294901760, %v21510_v31 }
 0x796   : > { %17923 = vmatprep.subr.bf16.mxu0 %v17922_v16 }
 0x799   : > { %17925 = vmatpush3.bf16.msra.mxu0 %v17922_v16  ;;  %v17954_v16 = vpack.c.bf16 %v21549_v41, %v21546_v45  ;;  %v18030_v41 = vpack.c.bf16 %v8596_v15, %v8589_v34  ;;  %v12946_v15 = vld [vmem:[%s23134_s10 + $0xe0] sm:$0xff] }
 0x79a   : > { %17927 = vmatprep.subr.bf16.mxu0 %v17926_v19 }
 0x79d   : > { %17929 = vmatpush3.bf16.msra.mxu0 %v17926_v19  ;;  %v23302_v19 = vand.u32 4294901760, %v21440_v30  ;;  %v23308_v30 = vand.u32 4294901760, %v21506_v63  ;;  %v18022_v63 = vpack.c.bf16 %v8568_v40, %v8561_v18 }
 0x79e   : > { %17931 = vmatprep.subr.bf16.mxu0 %v17930_v53 }
 0x7a1   : > { %17933 = vmatpush3.bf16.msra.mxu0 %v17930_v53  ;;  %v23305_v53 = vand.u32 4294901760, %v21481_v28 }
 0x7a2   : > { %17935 = vmatprep.subr.bf16.mxu0 %v17934_v61 }
 0x7a5   : > { %17937 = vmatpush3.bf16.msra.mxu0 %v17934_v61  ;;  %v12947_v61 = vld [vmem:[%s23134_s10 + $0xe8] sm:$0xff] }
 0x7a6   : > { %17939 = vmatprep.subr.bf16.mxu0 %v17938_v36 }
 0x7a8   : > { %15833 = vmatmul.mubr.f32.vlgmr.msra.gmra.mrb[24].mxu0 %v21448_v3 }
 0x7a9   : > { %15835 = vmatprep.mubr.f32.mxu0 %v21477_v25  ;;  %17941 = vmatpush3.bf16.msra.mxu0 %v17938_v36  ;;  %v10454_v36 = vand.u32 4294901760, %v12946_v15 }
 0x7aa   : > { %17943 = vmatprep.subr.bf16.mxu0 %v17942_v23 }
 0x7ac   : > { %15836 = vmatmul.mubr.f32.gmra.mrb[26].mxu0 %v21484_v27 }
 0x7ad   : > { %17945 = vmatpush3.bf16.msra.mxu0 %v17942_v23  ;;  %15870 = vmatprep.mubr.f32.mxu0 %v21362_v58  ;;  %v23301_v58 = vand.u32 4294901760, %v21438_v52  ;;  %v23307_v52 = vand.u32 4294901760, %v21504_v38  ;;  %v18018_v38 = vpack.c.bf16 %v8554_v13, %v8547_v60  ;;  %v21776_v13 = vld [vmem:[%s23134_s10 + $0xb0] sm:$0xff]  ;;  %v10457_v23 = vand.u32 4294901760, %v12947_v61 }
 0x7ae   : > { %17947 = vmatprep.subr.bf16.mxu0 %v17946_v12  ;;  %v10436_v59 = vand.u32 4294901760, %v21776_v13 }
 0x7af   : > { %v18002_v48 = vpack.c.bf16 %v23302_v19, %v23301_v58  ;;  %v18010_v44 = vpack.c.bf16 %v23308_v30, %v23307_v52 }
 0x7b1   : > { %17949 = vmatpush3.bf16.msra.mxu0 %v17946_v12  ;;  %v21833_v12 = vpack.c.bf16 %v10457_v23, %v10454_v36 }
 0x7b2   : > { %17951 = vmatprep.subr.bf16.mxu0 %v17950_v20 }
 0x7b5   : > { %17953 = vmatpush3.bf16.msra.mxu0 %v17950_v20 }
 0x7b6   : > { %17955 = vmatprep.subr.bf16.mxu0 %v17954_v16 }
 0x7b9   : > { %17957 = vmatpush3.bf16.msra.mxu0 %v17954_v16 }
 0x7ba   : > { %17959 = vmatprep.subr.bf16.mxu0 %v17958_v0 }
 0x7bd   : > { %17961 = vmatpush3.bf16.msra.mxu0 %v17958_v0  ;;  %v12948_v0 = vld [vmem:[%s23134_s10 + $0xf0] sm:$0xff] }
 0x7be   : > { %17963 = vmatprep.subr.bf16.mxu0 %v17962_v22 }
 0x7c1   : > { %17965 = vmatpush3.bf16.msra.mxu0 %v17962_v22  ;;  %v12949_v22 = vld [vmem:[%s23134_s10 + $0xf8] sm:$0xff] }
 0x7c2   : > { %17967 = vmatprep.subr.bf16.mxu0 %v17966_v33 }
 0x7c5   : > { %17969 = vmatpush3.bf16.msra.mxu0 %v17966_v33  ;;  %v10460_v33 = vand.u32 4294901760, %v12948_v0 }
 0x7c6   : > { %17971 = vmatprep.subr.bf16.mxu0 %v21372_v37 }
 0x7c8   : > { %15871 = vmatmul.mubr.f32.vlgmr.msra.gmra.mrb[24].mxu0 %v21481_v28  ;;  %v18014_v28 = vpack.c.bf16 %v23310_v29, %v23309_v4 }
 0x7c9   : > { %15873 = vmatprep.mubr.f32.mxu0 %v21510_v31  ;;  %17973 = vmatpush3.bf16.msra.mxu0 %v21372_v37  ;;  %v18026_v31 = vpack.c.bf16 %v8582_v21, %v8575_v17  ;;  %v12944_v17 = vld [vmem:[%s23134_s10 + $0xd0] sm:$0xff]  ;;  %v12945_v21 = vld [vmem:[%s23134_s10 + $0xd8] sm:$0xff] }
 0x7ca   : > { %17975 = vmatprep.subr.bf16.mxu0 %v21383_v50  ;;  %v10448_v46 = vand.u32 4294901760, %v12944_v17  ;;  %v10451_v32 = vand.u32 4294901760, %v12945_v21 }
 0x7cc   : > { %15874 = vmatmul.mubr.f32.gmra.mrb[26].mxu0 %v21519_v5  ;;  %v21756_v5 = vld [vmem:[%s23134_s10 + $0xa0] sm:$0xff]  ;;  %v21823_v34 = vpack.c.bf16 %v10451_v32, %v10448_v46 }
 0x7cd   : > { %17977 = vmatpush3.bf16.msra.mxu0 %v21383_v50  ;;  %15908 = vmatprep.mubr.f32.mxu0 %v23300_v7  ;;  %v10430_v45 = vand.u32 4294901760, %v21756_v5  ;;  %v10463_v7 = vand.u32 4294901760, %v12949_v22 }
 0x7ce   : > { %17979 = vmatprep.subr.bf16.mxu0 %v21398_v1 }
 0x7d1   : > { %17981 = vmatpush3.bf16.msra.mxu0 %v21398_v1 }
 0x7d2   : > { %17983 = vmatprep.subr.bf16.mxu0 %v21413_v56 }
 0x7d5   : > { %17985 = vmatpush3.bf16.msra.mxu0 %v21413_v56 }
 0x7d6   : > { %17987 = vmatprep.subr.bf16.mxu0 %v21443_v47 }
 0x7d9   : > { %17989 = vmatpush3.bf16.msra.mxu0 %v21443_v47 }
 0x7da   : > { %17991 = vmatprep.subr.bf16.mxu0 %v21460_v35 }
 0x7dd   : > { %17993 = vmatpush3.bf16.msra.mxu0 %v21460_v35 }
 0x7de   : > { %17995 = vmatprep.subr.bf16.mxu0 %v21490_v49 }
 0x7e1   : > { %17997 = vmatpush3.bf16.msra.mxu0 %v21490_v49 }
 0x7e2   : > { %17999 = vmatprep.subr.bf16.mxu0 %v21526_v6 }
 0x7e5   : > { %18001 = vmatpush3.bf16.msra.mxu0 %v21526_v6 }
 0x7e6   : > { %18003 = vmatprep.subr.bf16.mxu0 %v18002_v48 }
 0x7e8   : > { %15909 = vmatmul.mubr.f32.vlgmr.msra.gmra.mrb[24].mxu0 %v23305_v53 }
 0x7e9   : > { %15911 = vmatprep.mubr.f32.mxu0 %v23306_v54  ;;  %18005 = vmatpush3.bf16.msra.mxu0 %v18002_v48  ;;  %v21849_v48 = vpack.c.bf16 %v10463_v7, %v10460_v33 }
 0x7ea   : > { %18007 = vmatprep.subr.bf16.mxu0 %v18006_v14 }
 0x7ec   : > { %15912 = vmatmul.mubr.f32.gmra.mrb[26].mxu0 %v8480_v11  ;;  %v21761_v11 = vld [vmem:[%s23134_s10 + $0xa8] sm:$0xff] }
 0x7ed   : > { %18009 = vmatpush3.bf16.msra.mxu0 %v18006_v14  ;;  %15946 = vmatprep.mubr.f32.mxu0 %v21350_v8  ;;  %v10433_v60 = vand.u32 4294901760, %v21761_v11 }
 0x7ee   : > { %18011 = vmatprep.subr.bf16.mxu0 %v18010_v44 }
 0x7ef   : > { %v21791_v26 = vpack.c.bf16 %v10433_v60, %v10430_v45 }
 0x7f1   : > { %18013 = vmatpush3.bf16.msra.mxu0 %v18010_v44 }
 0x7f2   : > { %18015 = vmatprep.subr.bf16.mxu0 %v18014_v28 }
 0x7f5   : > { %18017 = vmatpush3.bf16.msra.mxu0 %v18014_v28  ;;  %v21871_v28 = vsub.f32 %v12944_v17, %v10448_v46 }
 0x7f6   : > { %18019 = vmatprep.subr.bf16.mxu0 %v18018_v38 }
 0x7f7   : > { %23311 = vst [vmem:[#allocation32_spill] sm:$0xff] %v21871_v28 }
 0x7f9   : > { %18021 = vmatpush3.bf16.msra.mxu0 %v18018_v38  ;;  %v21873_v38 = vsub.f32 %v12945_v21, %v10451_v32 }
 0x7fa   : > { %18023 = vmatprep.subr.bf16.mxu0 %v18022_v63 }
 0x7fb   : > { %23312 = vst [vmem:[#allocation33_spill] sm:$0xff] %v21873_v38 }
 0x7fd   : > { %18025 = vmatpush3.bf16.msra.mxu0 %v18022_v63 }
 0x7fe   : > { %18027 = vmatprep.subr.bf16.mxu0 %v18026_v31 }
 0x801   : > { %18029 = vmatpush3.bf16.msra.mxu0 %v18026_v31 }
 0x802   : > { %18031 = vmatprep.subr.bf16.mxu0 %v18030_v41 }
 0x805   : > { %18033 = vmatpush3.bf16.msra.mxu0 %v18030_v41  ;;  %v23206_v41 = vand.u32 4294901760, %v21871_v28 }
 0x806   : > { %18035 = vmatprep.subr.bf16.mxu0 %v21372_v37 }
 0x808   : > { %15947 = vmatmul.mubr.f32.vlgmr.msra.gmra.mrb[24].mxu0 %v21448_v3 }
 0x809   : > { %15949 = vmatprep.mubr.f32.mxu0 %v21477_v25  ;;  %18037 = vmatpush3.bf16.msra.mxu0 %v21372_v37  ;;  %v12934_v37 = vld [vmem:[%s23134_s10 + $0x80] sm:$0xff] }
 0x80a   : > { %18039 = vmatprep.subr.bf16.mxu0 %v21383_v50 }
 0x80c   : > { %15950 = vmatmul.mubr.f32.gmra.mrb[26].mxu0 %v21484_v27 }
 0x80d   : > { %18041 = vmatpush3.bf16.msra.mxu0 %v21383_v50  ;;  %15984 = vmatprep.mubr.f32.mxu0 %v21350_v8  ;;  %v12935_v8 = vld [vmem:[%s23134_s10 + $0x88] sm:$0xff]  ;;  %v10418_v50 = vand.u32 4294901760, %v12934_v37 }
 0x80e   : > { %18043 = vmatprep.subr.bf16.mxu0 %v21398_v1 }
 0x80f   : > { %v21835_v20 = vsub.f32 %v12934_v37, %v10418_v50  ;;  %v23205_v37 = vand.u32 4294901760, %v21873_v38 }
 0x811   : > { %18045 = vmatpush3.bf16.msra.mxu0 %v21398_v1  ;;  %v10421_v1 = vand.u32 4294901760, %v12935_v8  ;;  %v23213_v58 = vand.u32 4294901760, %v21835_v20 }
 0x812   : > { %18047 = vmatprep.subr.bf16.mxu0 %v21413_v56 }
 0x813   : > { %v21749_v9 = vpack.c.bf16 %v10421_v1, %v10418_v50  ;;  %v21837_v16 = vsub.f32 %v12935_v8, %v10421_v1  ;;  %v10542_v39 = vsub.f32 %v21835_v20, %v23213_v58  ;;  %v10612_v50 = vsub.f32 %v21871_v28, %v23206_v41 }
 0x814   : > { %v10619_v1 = vsub.f32 %v21873_v38, %v23205_v37 }
 0x815   : > { %18049 = vmatpush3.bf16.msra.mxu0 %v21413_v56  ;;  %v21740_v56 = vld [vmem:[%s23134_s10 + $0x90] sm:$0xff]  ;;  %v23212_v19 = vand.u32 4294901760, %v21837_v16  ;;  %v10543_v14 = vand.u32 4294901760, %v10542_v39 }
 0x816   : > { %18051 = vmatprep.subr.bf16.mxu0 %v21443_v47  ;;  %v10620_v17 = vand.u32 4294901760, %v10619_v1 }
 0x817   : > { %v10549_v43 = vsub.f32 %v21837_v16, %v23212_v19 }
 0x819   : > { %18053 = vmatpush3.bf16.msra.mxu0 %v21443_v47  ;;  %v21745_v47 = vld [vmem:[%s23134_s10 + $0x98] sm:$0xff]  ;;  %v10550_v53 = vand.u32 4294901760, %v10549_v43 }
 0x81a   : > { %18055 = vmatprep.subr.bf16.mxu0 %v21460_v35  ;;  %v10427_v42 = vand.u32 4294901760, %v21745_v47 }
 0x81b   : > { %v21859_v54 = vpack.c.bf16 %v10550_v53, %v10543_v14 }
 0x81d   : > { %18057 = vmatpush3.bf16.msra.mxu0 %v21460_v35  ;;  %v10424_v35 = vand.u32 4294901760, %v21740_v56 }
 0x81e   : > { %18059 = vmatprep.subr.bf16.mxu0 %v21490_v49 }
 0x821   : > { %18061 = vmatpush3.bf16.msra.mxu0 %v21490_v49  ;;  %v21769_v49 = vpack.c.bf16 %v10427_v42, %v10424_v35 }
 0x822   : > { %18063 = vmatprep.subr.bf16.mxu0 %v21526_v6 }
 0x825   : > { %18065 = vmatpush3.bf16.msra.mxu0 %v21526_v6  ;;  %v21781_v6 = vld [vmem:[%s23134_s10 + $0xb8] sm:$0xff] }
 0x826   : > { %18163 = vmatprep.subr.bf16.mxu0 %v21749_v9  ;;  %v10439_v18 = vand.u32 4294901760, %v21781_v6 }
 0x828   : > { %15985 = vmatmul.mubr.f32.vlgmr.msra.gmra.mrb[24].mxu0 %v21448_v3  ;;  %v21802_v3 = vpack.c.bf16 %v10439_v18, %v10436_v59 }
 0x829   : > { %15987 = vmatprep.mubr.f32.mxu0 %v21477_v25  ;;  %18165 = vmatpush3.bf16.msra.mxu0 %v21749_v9  ;;  %v12942_v25 = vld [vmem:[%s23134_s10 + $0xc0] sm:$0xff] }
 0x82a   : > { %18167 = vmatprep.subr.bf16.mxu0 %v21769_v49  ;;  %v10442_v40 = vand.u32 4294901760, %v12942_v25 }
 0x82c   : > { %15988 = vmatmul.mubr.f32.gmra.mrb[26].mxu0 %v21484_v27  ;;  %v12943_v27 = vld [vmem:[%s23134_s10 + $0xc8] sm:$0xff]  ;;  %v21862_v52 = vsub.f32 %v12942_v25, %v10442_v40  ;;  %v21886_v25 = vsub.f32 %v12946_v15, %v10454_v36  ;;  %v21904_v36 = vsub.f32 %v12949_v22, %v10463_v7  ;;  %v21920_v7 = vpack.c.bf16 %v21837_v16, %v21835_v20 }
 0x82d   : > { %18169 = vmatpush3.bf16.msra.mxu0 %v21769_v49  ;;  %v10445_v24 = vand.u32 4294901760, %v12943_v27 }
 0x82e   : > { %18171 = vmatprep.subr.bf16.mxu0 %v21791_v26  ;;  %v23208_v44 = vand.u32 4294901760, %v21862_v52  ;;  %23313 = vst [vmem:[#allocation34_spill] sm:$0xff] %v21886_v25  ;;  %v23204_v21 = vand.u32 4294901760, %v21886_v25  ;;  %23316 = vst [vmem:[#allocation37_spill] sm:$0xff] %v21904_v36  ;;  %v23201_v53 = vand.u32 4294901760, %v21904_v36 }
 0x82f   : > { %v21813_v51 = vpack.c.bf16 %v10445_v24, %v10442_v40  ;;  %v21864_v30 = vsub.f32 %v12943_v27, %v10445_v24  ;;  %v21888_v27 = vsub.f32 %v12947_v61, %v10457_v23  ;;  %v10613_v24 = vand.u32 4294901760, %v10612_v50 }
 0x830   : > { %v10598_v29 = vsub.f32 %v21862_v52, %v23208_v44  ;;  %v10626_v39 = vsub.f32 %v21886_v25, %v23204_v21  ;;  %v21902_v61 = vsub.f32 %v12948_v0, %v10460_v33  ;;  %v21928_v50 = vpack.c.bf16 %v21873_v38, %v21871_v28 }
 0x831   : > { %18173 = vmatpush3.bf16.msra.mxu0 %v21791_v26  ;;  %v23207_v4 = vand.u32 4294901760, %v21864_v30  ;;  %23314 = vst [vmem:[#allocation35_spill] sm:$0xff] %v21888_v27  ;;  %v23203_v46 = vand.u32 4294901760, %v21888_v27  ;;  %v21894_v32 = vpack.c.bf16 %v10620_v17, %v10613_v24  ;;  %v21932_v1 = vpack.c.bf16 %v21888_v27, %v21886_v25 }
 0x832   : > { %18175 = vmatprep.subr.bf16.mxu0 %v21802_v3  ;;  %v10599_v31 = vand.u32 4294901760, %v10598_v29  ;;  %23315 = vst [vmem:[#allocation36_spill] sm:$0xff] %v21902_v61  ;;  %v10627_v23 = vand.u32 4294901760, %v10626_v39  ;;  %v23202_v14 = vand.u32 4294901760, %v21902_v61  ;;  %v21936_v24 = vpack.c.bf16 %v21904_v36, %v21902_v61  ;;  %v12933_v39 = vld [vmem:[%s23133_s9] ss:$0 sm:$0xff] }
 0x833   : > { %v10605_v63 = vsub.f32 %v21864_v30, %v23207_v4  ;;  %v10633_v15 = vsub.f32 %v21888_v27, %v23203_v46  ;;  %v21941_v17 = vsub.f32 %v21740_v56, %v10424_v35  ;;  %v21956_v56 = vsub.f32 %v21756_v5, %v10430_v45 }
 0x835   : > { %18177 = vmatpush3.bf16.msra.mxu0 %v21802_v3  ;;  %v10606_v8 = vand.u32 4294901760, %v10605_v63  ;;  %v10634_v43 = vand.u32 4294901760, %v10633_v15  ;;  %v10640_v63 = vsub.f32 %v21902_v61, %v23202_v14  ;;  %v21949_v15 = vsub.f32 %v21745_v47, %v10427_v42 }
 0x836   : > { %18179 = vmatprep.subr.bf16.mxu0 %v21813_v51  ;;  %v21961_v47 = vsub.f32 %v21761_v11, %v10433_v60 }
 0x837   : > { %v21890_v40 = vpack.c.bf16 %v10606_v8, %v10599_v31  ;;  %v21908_v29 = vpack.c.bf16 %v10634_v43, %v10627_v23  ;;  %v10647_v31 = vsub.f32 %v21904_v36, %v23201_v53  ;;  %v10641_v0 = vand.u32 4294901760, %v10640_v63 }
 0x838   : > { %v21924_v8 = vpack.c.bf16 %v21864_v30, %v21862_v52 }
 0x839   : > { %18181 = vmatpush3.bf16.msra.mxu0 %v21813_v51  ;;  %v10648_v33 = vand.u32 4294901760, %v10647_v31  ;;  %v23211_v31 = vand.u32 4294901760, %v21941_v17 }
 0x83a   : > { %18183 = vmatprep.subr.bf16.mxu0 %v21823_v34 }
 0x83b   : > { %v21916_v22 = vpack.c.bf16 %v10648_v33, %v10641_v0  ;;  %v23209_v33 = vand.u32 4294901760, %v21949_v15 }
 0x83d   : > { %18185 = vmatpush3.bf16.msra.mxu0 %v21823_v34  ;;  %v10563_v45 = vsub.f32 %v21949_v15, %v23209_v33 }
 0x83e   : > { %18187 = vmatprep.subr.bf16.mxu0 %v21833_v12 }
 0x841   : > { %18189 = vmatpush3.bf16.msra.mxu0 %v21833_v12 }
 0x842   : > { %18191 = vmatprep.subr.bf16.mxu0 %v21849_v48 }
 0x845   : > { %18193 = vmatpush3.bf16.msra.mxu0 %v21849_v48 }
 0x846   : > { %18195 = vmatprep.subr.bf16.mxu0 %v21859_v54 }
 0x8fb   : > { %v15986_v23 = vpop.f32.mrb[24].mxu0 }
 0x8fc   : > { %v9149_v43 = vadd.f32 %v15986_v23, %v12933_v39  ;;  %v9115_v63 = vpop.f32.mrb[25].mxu0 }
 0x8fd   : > { %v9148_v0 = vadd.f32 %v12933_v39, %v9115_v63  ;;  %v10556_v63 = vsub.f32 %v21941_v17, %v23211_v31 }
 0x8fe   : > { %v9153_v35 = vmax.f32 %v9149_v43, 0.0  ;;  %v23210_v43 = vand.u32 4294901760, %v21956_v56 }
 0x8ff   : > { %v9152_v53 = vmax.f32 %v9148_v0, 0.0  ;;  %v15989_v14 = vpop.f32.mrb[26].mxu0  ;;  %v21985_v0 = vsub.f32 %v21781_v6, %v10439_v18  ;;  %v10564_v18 = vand.u32 4294901760, %v10563_v45 }
 0x900   : > { %v21963_v42 = vand.u32 4294901760, %v9153_v35  ;;  %v9151_v23 = vadd.f32 %v15989_v14, %v12933_v39  ;;  %v9127_v46 = vpop.f32.mrb[27].mxu0  ;;  %v21980_v14 = vsub.f32 %v21776_v13, %v10436_v59  ;;  %v10557_v59 = vand.u32 4294901760, %v10556_v63 }
 0x901   : > { %v21968_v21 = vand.u32 4294901760, %v9152_v53  ;;  %v9150_v5 = vadd.f32 %v12933_v39, %v9127_v46 }
 0x902   : > { %v21975_v11 = vsub.f32 %v9153_v35, %v21963_v42  ;;  %v9155_v60 = vmax.f32 %v9151_v23, 0.0  ;;  %v23215_v23 = vand.u32 4294901760, %v21961_v47  ;;  %v23317_v36 = vand.u32 4294901760, %v21980_v14 }
 0x903   : > { %v21989_v46 = vpack.c.bf16 %v21963_v42, %v21968_v21  ;;  %v21992_v39 = vsub.f32 %v9152_v53, %v21968_v21  ;;  %v9154_v35 = vmax.f32 %v9150_v5, 0.0  ;;  %v10570_v53 = vsub.f32 %v21956_v56, %v23210_v43 }
 0x904   : > { %v21996_v37 = vand.u32 4294901760, %v21975_v11  ;;  %v21998_v13 = vand.u32 4294901760, %v9155_v60  ;;  %v10577_v43 = vsub.f32 %v21961_v47, %v23215_v23  ;;  %v10584_v23 = vsub.f32 %v21980_v14, %v23317_v36 }
 0x905   : > { %v22000_v41 = vand.u32 4294901760, %v9154_v35  ;;  %18067 = vmatprep.subr.bf16.mxu1 %v21989_v46  ;;  %v22004_v6 = vand.u32 4294901760, %v21992_v39  ;;  %v10571_v25 = vand.u32 4294901760, %v10570_v53  ;;  %v23328_v53 = vld [vmem:[#allocation15_spill] sm:$0xff] }
 0x906   : > { %v22010_v5 = vsub.f32 %v9155_v60, %v21998_v13  ;;  %18069 = vmatpush3.bf16.msra.mxu1 %v21989_v46  ;;  %v9276_v63 = vsub.f32 %v21975_v11, %v21996_v37  ;;  %v10578_v38 = vand.u32 4294901760, %v10577_v43  ;;  %v10585_v36 = vand.u32 4294901760, %v10584_v23  ;;  %v23326_v43 = vld [vmem:[#allocation12_spill] sm:$0xff]  ;;  %v23327_v23 = vld [vmem:[#allocation14_spill] sm:$0xff] }
 0x907   : > { %v22019_v33 = vpack.c.bf16 %v21998_v13, %v22000_v41  ;;  %v22022_v45 = vsub.f32 %v9154_v35, %v22000_v41  ;;  %v9269_v60 = vsub.f32 %v21992_v39, %v22004_v6  ;;  %v18198_v35 = vpack.c.bf16 %v10564_v18, %v10557_v59 }
 0x908   : > { %v9277_v31 = vand.u32 4294901760, %v9276_v63  ;;  %v22030_v19 = vand.u32 4294901760, %v22010_v5  ;;  %v23318_v63 = vand.u32 4294901760, %v21985_v0  ;;  %v18202_v28 = vpack.c.bf16 %v10578_v38, %v10571_v25  ;;  %v23322_v38 = vld [vmem:[#allocation9_spill] sm:$0xff]  ;;  %v23323_v25 = vld [vmem:[#allocation11_spill] sm:$0xff] }
 0x909   : > { %18071 = vmatprep.subr.bf16.mxu1 %v22019_v33  ;;  %v9270_v58 = vand.u32 4294901760, %v9269_v60  ;;  %v22034_v44 = vand.u32 4294901760, %v22022_v45 }
 0x90a   : > { %18073 = vmatpush3.bf16.msra.mxu1 %v22019_v33  ;;  %v9290_v4 = vsub.f32 %v22010_v5, %v22030_v19  ;;  %v10591_v61 = vsub.f32 %v21985_v0, %v23318_v63 }
 0x90b   : > { %v22045_v27 = vpack.c.bf16 %v9277_v31, %v9270_v58  ;;  %16190 = vmatprep.mubr.f32.mxu0 %v9270_v58  ;;  %v9283_v60 = vsub.f32 %v22022_v45, %v22034_v44 }
 0x90c   : > { %16191 = vmatmul.mubr.f32.vlgmr.msra.gmra.mrb[28].mxu0 %v9277_v31  ;;  %v9291_v59 = vand.u32 4294901760, %v9290_v4  ;;  %v10592_v63 = vand.u32 4294901760, %v10591_v61  ;;  %v23320_v4 = vld [vmem:[#allocation10_spill] sm:$0xff]  ;;  %v23324_v61 = vld [vmem:[#allocation13_spill] sm:$0xff]  ;;  %v22089_v31 = vpack.c.bf16 %v21996_v37, %v22004_v6 }
 0x90d   : > { %18197 = vmatpush3.bf16.msra.mxu0 %v21859_v54  ;;  %15999 = vmatmul.mubr.f32.vlgmr.msra.gmra.mrb[10].mxu1 %v20447_v62  ;;  %v9284_v18 = vand.u32 4294901760, %v9283_v60  ;;  %v22061_v62 = vpack.c.bf16 %v21975_v11, %v21992_v39  ;;  %v23333_v60 = vld [vmem:[#allocation16_spill] sm:$0xff] }
 0x90e   : > { %18075 = vmatprep.subr.bf16.mxu1 %v22045_v27  ;;  %18199 = vmatprep.subr.bf16.mxu0 %v18198_v35  ;;  %v18206_v54 = vpack.c.bf16 %v10592_v63, %v10585_v36  ;;  %v23341_v36 = vld [vmem:[#allocation22_spill] sm:$0xff]  ;;  %v23344_v63 = vld [vmem:[#allocation27_spill] sm:$0xff] }
 0x90f   : > { %18077 = vmatpush3.bf16.msra.mxu1 %v22045_v27  ;;  %16193 = vmatprep.mubr.f32.mxu0 %v9284_v18  ;;  %v22053_v58 = vpack.c.bf16 %v9291_v59, %v9284_v18  ;;  %v23339_v18 = vld [vmem:[#allocation23_spill] sm:$0xff] }
 0x910   : > { %16001 = vmatprep.mubr.f32.mxu1 %v20454_v2  ;;  %16194 = vmatmul.mubr.f32.gmra.mrb[30].mxu0 %v9291_v59  ;;  %v22069_v2 = vpack.c.bf16 %v22010_v5, %v22022_v45  ;;  %v23337_v59 = vld [vmem:[#allocation18_spill] sm:$0xff] }
 0x911   : > { %18201 = vmatpush3.bf16.msra.mxu0 %v18198_v35  ;;  %16002 = vmatmul.mubr.f32.gmra.mrb[12].mxu1 %v20468_v55  ;;  %v23319_v55 = vld [vmem:[#allocation8_spill] sm:$0xff]  ;;  %v23332_v35 = vld [vmem:[#allocation31_spill] sm:$0xff] }
 0x912   : > { %18079 = vmatprep.subr.bf16.mxu1 %v22053_v58  ;;  %16228 = vmatprep.mubr.f32.mxu0 %v21968_v21 }
 0x913   : > { %18081 = vmatpush3.bf16.msra.mxu1 %v22053_v58  ;;  %18203 = vmatprep.subr.bf16.mxu0 %v18202_v28 }
 0x914   : > { %18083 = vmatprep.subr.bf16.mxu1 %v22061_v62  ;;  %16012 = vmatprep.mubr.f32.mxu1 %v20345_v57 }
 0x915   : > { %18205 = vmatpush3.bf16.msra.mxu0 %v18202_v28  ;;  %v23321_v28 = vld [vmem:[#allocation6_spill] sm:$0xff] }
 0x916   : > { %16013 = vmatmul.mubr.f32.vlgmr.msra.gmra.mrb[10].mxu1 %v20369_v10  ;;  %18207 = vmatprep.subr.bf16.mxu0 %v18206_v54 }
 0x917   : > { %18085 = vmatpush3.bf16.msra.mxu1 %v22061_v62  ;;  %16015 = vmatprep.mubr.f32.mxu1 %v23319_v55 }
 0x918   : > { %18087 = vmatprep.subr.bf16.mxu1 %v22069_v2 }
 0x919   : > { %18209 = vmatpush3.bf16.msra.mxu0 %v18206_v54  ;;  %v23349_v54 = vand.u32 4294901760, %v21956_v56 }
 0x91a   : > { %16016 = vmatmul.mubr.f32.gmra.mrb[12].mxu1 %v23320_v4  ;;  %18211 = vmatprep.subr.bf16.mxu0 %v21890_v40 }
 0x91b   : > { %18089 = vmatpush3.bf16.msra.mxu1 %v22069_v2  ;;  %16026 = vmatprep.mubr.f32.mxu1 %v23321_v28 }
 0x91c   : > { %18091 = vmatprep.subr.bf16.mxu1 %v21989_v46 }
 0x91d   : > { %18213 = vmatpush3.bf16.msra.mxu0 %v21890_v40  ;;  %v23325_v40 = vld [vmem:[#allocation7_spill] sm:$0xff] }
 0x91e   : > { %16027 = vmatmul.mubr.f32.vlgmr.msra.gmra.mrb[10].mxu1 %v23322_v38  ;;  %18215 = vmatprep.subr.bf16.mxu0 %v21894_v32 }
 0x91f   : > { %18093 = vmatpush3.bf16.msra.mxu1 %v21989_v46  ;;  %16029 = vmatprep.mubr.f32.mxu1 %v23323_v25 }
 0x920   : > { %18095 = vmatprep.subr.bf16.mxu1 %v22019_v33 }
 0x921   : > { %18217 = vmatpush3.bf16.msra.mxu0 %v21894_v32  ;;  %v22099_v32 = vpack.c.bf16 %v22030_v19, %v22034_v44 }
 0x922   : > { %16030 = vmatmul.mubr.f32.gmra.mrb[12].mxu1 %v23324_v61  ;;  %18219 = vmatprep.subr.bf16.mxu0 %v21908_v29 }
 0x923   : > { %18097 = vmatpush3.bf16.msra.mxu1 %v22019_v33  ;;  %16040 = vmatprep.mubr.f32.mxu1 %v23325_v40 }
 0x924   : > { %18099 = vmatprep.subr.bf16.mxu1 %v22089_v31 }
 0x925   : > { %18221 = vmatpush3.bf16.msra.mxu0 %v21908_v29  ;;  %v18230_v29 = vpack.c.bf16 %v21949_v15, %v21941_v17 }
 0x926   : > { %16041 = vmatmul.mubr.f32.vlgmr.msra.gmra.mrb[10].mxu1 %v23326_v43  ;;  %18223 = vmatprep.subr.bf16.mxu0 %v21916_v22  ;;  %v23365_v43 = vld [vmem:[#allocation37_spill] sm:$0xff] }
 0x927   : > { %18101 = vmatpush3.bf16.msra.mxu1 %v22089_v31  ;;  %16043 = vmatprep.mubr.f32.mxu1 %v23327_v23 }
 0x928   : > { %18103 = vmatprep.subr.bf16.mxu1 %v22099_v32 }
 0x929   : > { %18225 = vmatpush3.bf16.msra.mxu0 %v21916_v22  ;;  %v18234_v22 = vpack.c.bf16 %v21961_v47, %v21956_v56  ;;  %v23354_v56 = vand.u32 4294901760, %v21864_v30  ;;  %v22248_v30 = vld [vmem:[%s23134_s10 + $0x58] sm:$0xff] }
 0x92a   : > { %16044 = vmatmul.mubr.f32.gmra.mrb[12].mxu1 %v23328_v53  ;;  %18227 = vmatprep.subr.bf16.mxu0 %v21920_v7 }
 0x92b   : > { %18105 = vmatpush3.bf16.msra.mxu1 %v22099_v32  ;;  %16054 = vmatprep.mubr.f32.mxu1 %v20345_v57 }
 0x92c   : > { %18107 = vmatprep.subr.bf16.mxu1 %v21989_v46  ;;  %16229 = vmatmul.mubr.f32.vlgmr.msra.gmra.mrb[28].mxu0 %v21963_v42 }
 0x92d   : > { %16231 = vmatprep.mubr.f32.mxu0 %v22000_v41  ;;  %18229 = vmatpush3.bf16.msra.mxu0 %v21920_v7  ;;  %v18238_v7 = vpack.c.bf16 %v21985_v0, %v21980_v14 }
 0x92e   : > { %16055 = vmatmul.mubr.f32.vlgmr.msra.gmra.mrb[10].mxu1 %v20369_v10  ;;  %18231 = vmatprep.subr.bf16.mxu0 %v18230_v29 }
 0x92f   : > { %18109 = vmatpush3.bf16.msra.mxu1 %v21989_v46  ;;  %16057 = vmatprep.mubr.f32.mxu1 %v23319_v55 }
 0x930   : > { %18111 = vmatprep.subr.bf16.mxu1 %v22019_v33  ;;  %16232 = vmatmul.mubr.f32.gmra.mrb[30].mxu0 %v21998_v13 }
 0x931   : > { %18233 = vmatpush3.bf16.msra.mxu0 %v18230_v29  ;;  %16266 = vmatprep.mubr.f32.mxu0 %v21992_v39  ;;  %v23331_v39 = vld [vmem:[#allocation30_spill] sm:$0xff]  ;;  %v11221_v29 = vand.u32 4294901760, %v22248_v30 }
 0x932   : > { %16058 = vmatmul.mubr.f32.gmra.mrb[12].mxu1 %v23320_v4  ;;  %18235 = vmatprep.subr.bf16.mxu0 %v18234_v22 }
 0x933   : > { %18113 = vmatpush3.bf16.msra.mxu1 %v22019_v33  ;;  %16068 = vmatprep.mubr.f32.mxu1 %v20345_v57  ;;  %v23329_v57 = vld [vmem:[#allocation28_spill] sm:$0xff] }
 0x934   : > { %18115 = vmatprep.subr.bf16.mxu1 %v21989_v46 }
 0x935   : > { %18237 = vmatpush3.bf16.msra.mxu0 %v18234_v22  ;;  %v22259_v22 = vld [vmem:[%s23134_s10 + $0x60] sm:$0xff] }
 0x936   : > { %16069 = vmatmul.mubr.f32.vlgmr.msra.gmra.mrb[10].mxu1 %v20369_v10  ;;  %18239 = vmatprep.subr.bf16.mxu0 %v18238_v7  ;;  %v23330_v10 = vld [vmem:[#allocation29_spill] sm:$0xff] }
 0x937   : > { %18117 = vmatpush3.bf16.msra.mxu1 %v21989_v46  ;;  %16071 = vmatprep.mubr.f32.mxu1 %v23319_v55  ;;  %v23357_v55 = vld [vmem:[#allocation33_spill] sm:$0xff] }
 0x938   : > { %18119 = vmatprep.subr.bf16.mxu1 %v22019_v33 }
 0x939   : > { %18241 = vmatpush3.bf16.msra.mxu0 %v18238_v7  ;;  %v22264_v7 = vld [vmem:[%s23134_s10 + $0x68] sm:$0xff] }
 0x93a   : > { %16072 = vmatmul.mubr.f32.gmra.mrb[12].mxu1 %v23320_v4  ;;  %18243 = vmatprep.subr.bf16.mxu0 %v21924_v8  ;;  %v23358_v4 = vand.u32 4294901760, %v23357_v55 }
 0x93b   : > { %18121 = vmatpush3.bf16.msra.mxu1 %v22019_v33  ;;  %16082 = vmatprep.mubr.f32.mxu1 %v23329_v57 }
 0x93c   : > { %18123 = vmatprep.subr.bf16.mxu1 %v22045_v27 }
 0x93d   : > { %18245 = vmatpush3.bf16.msra.mxu0 %v21924_v8  ;;  %v23334_v8 = vld [vmem:[#allocation17_spill] sm:$0xff] }
 0x93e   : > { %16083 = vmatmul.mubr.f32.vlgmr.msra.gmra.mrb[14].mxu1 %v23330_v10  ;;  %18247 = vmatprep.subr.bf16.mxu0 %v21928_v50  ;;  %v22274_v10 = vsub.f32 %v22248_v30, %v11221_v29 }
 0x93f   : > { %18125 = vmatpush3.bf16.msra.mxu1 %v22045_v27  ;;  %16085 = vmatprep.mubr.f32.mxu1 %v23331_v39  ;;  %v23335_v27 = vld [vmem:[#allocation19_spill] sm:$0xff]  ;;  %v11224_v39 = vand.u32 4294901760, %v22259_v22 }
 0x940   : > { %18127 = vmatprep.subr.bf16.mxu1 %v22053_v58 }
 0x941   : > { %18249 = vmatpush3.bf16.msra.mxu0 %v21928_v50  ;;  %v23336_v50 = vld [vmem:[#allocation21_spill] sm:$0xff] }
 0x942   : > { %16086 = vmatmul.mubr.f32.gmra.mrb[16].mxu1 %v23332_v35  ;;  %18251 = vmatprep.subr.bf16.mxu0 %v21932_v1  ;;  %v22280_v35 = vld [vmem:[%s23134_s10 + $0x70] sm:$0xff] }
 0x943   : > { %18129 = vmatpush3.bf16.msra.mxu1 %v22053_v58  ;;  %16096 = vmatprep.mubr.f32.mxu1 %v23333_v60  ;;  %v23348_v58 = vand.u32 4294901760, %v21949_v15  ;;  %v23352_v15 = vand.u32 4294901760, %v21985_v0  ;;  %v23361_v0 = vld [vmem:[#allocation35_spill] sm:$0xff] }
 0x944   : > { %18131 = vmatprep.subr.bf16.mxu1 %v22061_v62  ;;  %v23362_v25 = vand.u32 4294901760, %v23361_v0 }
 0x945   : > { %18253 = vmatpush3.bf16.msra.mxu0 %v21932_v1  ;;  %v23338_v1 = vld [vmem:[#allocation20_spill] sm:$0xff] }
 0x946   : > { %16097 = vmatmul.mubr.f32.vlgmr.msra.gmra.mrb[14].mxu1 %v23334_v8  ;;  %18255 = vmatprep.subr.bf16.mxu0 %v21936_v24 }
 0x947   : > { %18133 = vmatpush3.bf16.msra.mxu1 %v22061_v62  ;;  %16099 = vmatprep.mubr.f32.mxu1 %v23335_v27 }
 0x948   : > { %18135 = vmatprep.subr.bf16.mxu1 %v22069_v2 }
 0x949   : > { %18257 = vmatpush3.bf16.msra.mxu0 %v21936_v24  ;;  %v23340_v24 = vld [vmem:[#allocation25_spill] sm:$0xff] }
 0x94a   : > { %16100 = vmatmul.mubr.f32.gmra.mrb[16].mxu1 %v23336_v50 }
 0x94b   : > { %18137 = vmatpush3.bf16.msra.mxu1 %v22069_v2  ;;  %16110 = vmatprep.mubr.f32.mxu1 %v23337_v59 }
 0x94c   : > { %18139 = vmatprep.subr.bf16.mxu1 %v21989_v46  ;;  %16267 = vmatmul.mubr.f32.vlgmr.msra.gmra.mrb[28].mxu0 %v21975_v11  ;;  %v23342_v11 = vld [vmem:[#allocation24_spill] sm:$0xff] }
 0x94d   : > { %16269 = vmatprep.mubr.f32.mxu0 %v22022_v45  ;;  %v23343_v45 = vld [vmem:[#allocation26_spill] sm:$0xff] }
 0x94e   : > { %16111 = vmatmul.mubr.f32.vlgmr.msra.gmra.mrb[14].mxu1 %v23338_v1 }
 0x94f   : > { %18141 = vmatpush3.bf16.msra.mxu1 %v21989_v46  ;;  %16113 = vmatprep.mubr.f32.mxu1 %v23339_v18  ;;  %v22300_v18 = vsub.f32 %v22259_v22, %v11224_v39 }
 0x950   : > { %18143 = vmatprep.subr.bf16.mxu1 %v22019_v33  ;;  %16270 = vmatmul.mubr.f32.gmra.mrb[30].mxu0 %v22010_v5  ;;  %v23347_v5 = vand.u32 4294901760, %v21941_v17  ;;  %v23351_v17 = vand.u32 4294901760, %v21980_v14  ;;  %v23359_v14 = vld [vmem:[#allocation34_spill] sm:$0xff] }
 0x951   : > { %v23360_v38 = vand.u32 4294901760, %v23359_v14 }
 0x952   : > { %16114 = vmatmul.mubr.f32.gmra.mrb[16].mxu1 %v23340_v24  ;;  %v18294_v62 = vpack.c.bf16 %v23348_v58, %v23347_v5  ;;  %v11230_v24 = vand.u32 4294901760, %v22280_v35 }
 0x953   : > { %18145 = vmatpush3.bf16.msra.mxu1 %v22019_v33  ;;  %16124 = vmatprep.mubr.f32.mxu1 %v23341_v36  ;;  %v18314_v61 = vpack.c.bf16 %v23362_v25, %v23360_v38  ;;  %v10389_v25 = vld [vmem:[%s23134_s10 + $0x28] sm:$0xff] }
 0x954   : > { %18147 = vmatprep.subr.bf16.mxu1 %v22089_v31  ;;  %v22323_v58 = vsub.f32 %v22280_v35, %v11230_v24 }
 0x956   : > { %16125 = vmatmul.mubr.f32.vlgmr.msra.gmra.mrb[14].mxu1 %v23342_v11 }
 0x957   : > { %18149 = vmatpush3.bf16.msra.mxu1 %v22089_v31  ;;  %16127 = vmatprep.mubr.f32.mxu1 %v23343_v45  ;;  %v23363_v31 = vld [vmem:[#allocation36_spill] sm:$0xff] }
 0x958   : > { %18151 = vmatprep.subr.bf16.mxu1 %v22099_v32  ;;  %v23364_v40 = vand.u32 4294901760, %v23363_v31  ;;  %v11203_v31 = vand.u32 4294901760, %v10389_v25 }
 0x95a   : > { %16128 = vmatmul.mubr.f32.gmra.mrb[16].mxu1 %v23344_v63 }
 0x95b   : > { %18153 = vmatpush3.bf16.msra.mxu1 %v22099_v32  ;;  %16138 = vmatprep.mubr.f32.mxu1 %v23333_v60  ;;  %v23366_v32 = vand.u32 4294901760, %v23365_v43  ;;  %v10391_v43 = vld [vmem:[%s23134_s10 + $0x38] sm:$0xff] }
 0x95c   : > { %18155 = vmatprep.subr.bf16.mxu1 %v21989_v46 }
 0x95d   : > { %v18318_v23 = vpack.c.bf16 %v23366_v32, %v23364_v40  ;;  %v10390_v40 = vld [vmem:[%s23134_s10 + $0x30] sm:$0xff] }
 0x95e   : > { %16139 = vmatmul.mubr.f32.vlgmr.msra.gmra.mrb[14].mxu1 %v23334_v8 }
 0x95f   : > { %18157 = vmatpush3.bf16.msra.mxu1 %v21989_v46  ;;  %16141 = vmatprep.mubr.f32.mxu1 %v23335_v27  ;;  %v23346_v46 = vand.u32 4294901760, %v21837_v16 }
 0x960   : > { %18159 = vmatprep.subr.bf16.mxu1 %v22019_v33 }
 0x962   : > { %16142 = vmatmul.mubr.f32.gmra.mrb[16].mxu1 %v23336_v50 }
 0x963   : > { %18161 = vmatpush3.bf16.msra.mxu1 %v22019_v33  ;;  %16152 = vmatprep.mubr.f32.mxu1 %v23333_v60  ;;  %v23345_v33 = vand.u32 4294901760, %v21835_v20  ;;  %v23350_v20 = vand.u32 4294901760, %v21961_v47  ;;  %v23355_v47 = vld [vmem:[#allocation32_spill] sm:$0xff] }
 0x964   : > { %18259 = vmatprep.subr.bf16.mxu1 %v21749_v9 }
 0x965   : > { %v18298_v16 = vpack.c.bf16 %v23350_v20, %v23349_v54  ;;  %v23222_v20 = vand.u32 4294901760, %v22323_v58 }
 0x966   : > { %16153 = vmatmul.mubr.f32.vlgmr.msra.gmra.mrb[14].mxu1 %v23334_v8  ;;  %v23225_v8 = vand.u32 4294901760, %v22274_v10 }
 0x967   : > { %18261 = vmatpush3.bf16.msra.mxu1 %v21749_v9  ;;  %16155 = vmatprep.mubr.f32.mxu1 %v23335_v27  ;;  %v11227_v27 = vand.u32 4294901760, %v22264_v7 }
 0x968   : > { %18263 = vmatprep.subr.bf16.mxu1 %v21769_v49  ;;  %v11389_v1 = vsub.f32 %v22274_v10, %v23225_v8 }
 0x969   : > { %v22306_v36 = vsub.f32 %v22264_v7, %v11227_v27 }
 0x96a   : > { %16156 = vmatmul.mubr.f32.gmra.mrb[16].mxu1 %v23336_v50  ;;  %v22288_v50 = vld [vmem:[%s23134_s10 + $0x78] sm:$0xff]  ;;  %v11390_v63 = vand.u32 4294901760, %v11389_v1  ;;  %v22410_v1 = vld [vmem:[%s23134_s10 + $0x40] sm:$0xff] }
 0x96b   : > { %18265 = vmatpush3.bf16.msra.mxu1 %v21769_v49  ;;  %16304 = vmatprep.mubr.f32.mxu1 %v22004_v6  ;;  %v18290_v6 = vpack.c.bf16 %v23346_v46, %v23345_v33  ;;  %v11233_v11 = vand.u32 4294901760, %v22288_v50  ;;  %v23224_v33 = vand.u32 4294901760, %v22300_v18  ;;  %v23223_v46 = vand.u32 4294901760, %v22306_v36 }
 0x96c   : > { %18267 = vmatprep.subr.bf16.mxu1 %v21791_v26 }
 0x96d   : > { %v11396_v5 = vsub.f32 %v22300_v18, %v23224_v33 }
 0x96f   : > { %18269 = vmatpush3.bf16.msra.mxu1 %v21791_v26  ;;  %v11397_v54 = vand.u32 4294901760, %v11396_v5 }
 0x970   : > { %18271 = vmatprep.subr.bf16.mxu1 %v21802_v3 }
 0x973   : > { %18273 = vmatpush3.bf16.msra.mxu1 %v21802_v3 }
 0x974   : > { %18275 = vmatprep.subr.bf16.mxu1 %v21813_v51 }
 0x977   : > { %18277 = vmatpush3.bf16.msra.mxu1 %v21813_v51 }
 0x978   : > { %18279 = vmatprep.subr.bf16.mxu1 %v21823_v34 }
 0x97b   : > { %18281 = vmatpush3.bf16.msra.mxu1 %v21823_v34 }
 0x97c   : > { %18283 = vmatprep.subr.bf16.mxu1 %v21833_v12 }
 0x97f   : > { %18285 = vmatpush3.bf16.msra.mxu1 %v21833_v12 }
 0x980   : > { %18287 = vmatprep.subr.bf16.mxu1 %v21849_v48 }
 0x983   : > { %18289 = vmatpush3.bf16.msra.mxu1 %v21849_v48 }
 0x984   : > { %18291 = vmatprep.subr.bf16.mxu1 %v18290_v6 }
 0x986   : > { %16305 = vmatmul.mubr.f32.vlgmr.msra.gmra.mrb[18].mxu1 %v21996_v37  ;;  %v18302_v37 = vpack.c.bf16 %v23352_v15, %v23351_v17  ;;  %v11410_v15 = vsub.f32 %v22323_v58, %v23222_v20 }
 0x987   : > { %16307 = vmatprep.mubr.f32.mxu1 %v22034_v44  ;;  %18293 = vmatpush3.bf16.msra.mxu1 %v18290_v6  ;;  %v23353_v44 = vand.u32 4294901760, %v21862_v52  ;;  %v22243_v52 = vld [vmem:[%s23134_s10 + $0x50] sm:$0xff] }
 0x988   : > { %18295 = vmatprep.subr.bf16.mxu1 %v18294_v62  ;;  %v11218_v53 = vand.u32 4294901760, %v22243_v52 }
 0x989   : > { %v18306_v2 = vpack.c.bf16 %v23354_v56, %v23353_v44  ;;  %v10384_v44 = vld [vmem:[%s23134_s10] sm:$0xff]  ;;  %v11411_v56 = vand.u32 4294901760, %v11410_v15 }
 0x98a   : > { %16308 = vmatmul.mubr.f32.gmra.mrb[20].mxu1 %v22030_v19  ;;  %v23356_v19 = vand.u32 4294901760, %v23355_v47  ;;  %v22269_v57 = vsub.f32 %v22243_v52, %v11218_v53  ;;  %v11188_v47 = vand.u32 4294901760, %v10384_v44 }
 0x98b   : > { %18297 = vmatpush3.bf16.msra.mxu1 %v18294_v62  ;;  %16342 = vmatprep.mubr.f32.mxu1 %v21968_v21  ;;  %v22328_v62 = vsub.f32 %v22288_v50, %v11233_v11 }
 0x98c   : > { %18299 = vmatprep.subr.bf16.mxu1 %v18298_v16  ;;  %v18310_v28 = vpack.c.bf16 %v23358_v4, %v23356_v19  ;;  %v23226_v60 = vand.u32 4294901760, %v22269_v57  ;;  %v22357_v4 = vsub.f32 %v10384_v44, %v11188_v47 }
 0x98e   : > { %v11382_v59 = vsub.f32 %v22269_v57, %v23226_v60 }
 0x98f   : > { %18301 = vmatpush3.bf16.msra.mxu1 %v18298_v16  ;;  %v23221_v16 = vand.u32 4294901760, %v22328_v62 }
 0x990   : > { %18303 = vmatprep.subr.bf16.mxu1 %v18302_v37  ;;  %v11383_v45 = vand.u32 4294901760, %v11382_v59  ;;  %v11209_v59 = vand.u32 4294901760, %v10391_v43 }
 0x992   : > { %v22315_v6 = vpack.c.bf16 %v11390_v63, %v11383_v45  ;;  %v11212_v63 = vand.u32 4294901760, %v22410_v1 }
 0x993   : > { %18305 = vmatpush3.bf16.msra.mxu1 %v18302_v37  ;;  %v11417_v37 = vsub.f32 %v22328_v62, %v23221_v16 }
 0x994   : > { %18307 = vmatprep.subr.bf16.mxu1 %v18306_v2  ;;  %v22524_v16 = vsub.f32 %v22410_v1, %v11212_v63 }
 0x997   : > { %18309 = vmatpush3.bf16.msra.mxu1 %v18306_v2  ;;  %v11418_v2 = vand.u32 4294901760, %v11417_v37  ;;  %v22452_v37 = vpack.c.bf16 %v11227_v27, %v11224_v39 }
 0x998   : > { %18311 = vmatprep.subr.bf16.mxu1 %v18310_v28 }
 0x999   : > { %v22355_v55 = vpack.c.bf16 %v11418_v2, %v11411_v56 }
 0x99b   : > { %18313 = vmatpush3.bf16.msra.mxu1 %v18310_v28 }
 0x99c   : > { %18315 = vmatprep.subr.bf16.mxu1 %v18314_v61 }
 0x99f   : > { %18317 = vmatpush3.bf16.msra.mxu1 %v18314_v61 }
 0x9a0   : > { %18319 = vmatprep.subr.bf16.mxu1 %v18318_v23 }
 0x9a3   : > { %18321 = vmatpush3.bf16.msra.mxu1 %v18318_v23  ;;  %v11206_v23 = vand.u32 4294901760, %v10390_v40 }
 0x9a4   : > { %18323 = vmatprep.subr.bf16.mxu1 %v21749_v9 }
 0x9a5   : > { %v22424_v45 = vpack.c.bf16 %v11209_v59, %v11206_v23 }
 0x9a6   : > { %16343 = vmatmul.mubr.f32.vlgmr.msra.gmra.mrb[18].mxu1 %v21963_v42 }
 0x9a7   : > { %16345 = vmatprep.mubr.f32.mxu1 %v22000_v41  ;;  %18325 = vmatpush3.bf16.msra.mxu1 %v21749_v9  ;;  %v11403_v9 = vsub.f32 %v22306_v36, %v23223_v46 }
 0x9a8   : > { %18327 = vmatprep.subr.bf16.mxu1 %v21769_v49 }
 0x9a9   : > { %v11404_v17 = vand.u32 4294901760, %v11403_v9  ;;  %v22431_v9 = vpack.c.bf16 %v22328_v62, %v22323_v58 }
 0x9aa   : > { %16346 = vmatmul.mubr.f32.gmra.mrb[20].mxu1 %v21998_v13 }
 0x9ab   : > { %18329 = vmatpush3.bf16.msra.mxu1 %v21769_v49  ;;  %16380 = vmatprep.mubr.f32.mxu1 %v21968_v21  ;;  %v10385_v49 = vld [vmem:[%s23134_s10 + $0x8] sm:$0xff]  ;;  %v22351_v21 = vpack.c.bf16 %v11404_v17, %v11397_v54  ;;  %v22442_v54 = vpack.c.bf16 %v11221_v29, %v11218_v53  ;;  %v11311_v17 = vand.u32 4294901760, %v22357_v4  ;;  %v22466_v53 = vpack.c.bf16 %v11233_v11, %v11230_v24 }
 0x9ac   : > { %18331 = vmatprep.subr.bf16.mxu1 %v21791_v26  ;;  %v11191_v19 = vand.u32 4294901760, %v10385_v49  ;;  %v22479_v11 = vsub.f32 %v10389_v25, %v11203_v31 }
 0x9ad   : > { %v11312_v52 = vsub.f32 %v22357_v4, %v11311_v17 }
 0x9ae   : > { %v22359_v28 = vsub.f32 %v10385_v49, %v11191_v19  ;;  %v22379_v38 = vpack.c.bf16 %v11191_v19, %v11188_v47 }
 0x9af   : > { %18333 = vmatpush3.bf16.msra.mxu1 %v21791_v26  ;;  %v10386_v26 = vld [vmem:[%s23134_s10 + $0x10] sm:$0xff]  ;;  %v11313_v29 = vand.u32 4294901760, %v11312_v52 }
 0x9b0   : > { %18335 = vmatprep.subr.bf16.mxu1 %v21802_v3  ;;  %v22365_v14 = vpack.c.bf16 %v22359_v28, %v22357_v4  ;;  %v11318_v15 = vand.u32 4294901760, %v22359_v28 }
 0x9b2   : > { %v11319_v30 = vsub.f32 %v22359_v28, %v11318_v15  ;;  %v23369_v28 = vand.u32 4294901760, %v22479_v11 }
 0x9b3   : > { %18337 = vmatpush3.bf16.msra.mxu1 %v21802_v3  ;;  %v10387_v3 = vld [vmem:[%s23134_s10 + $0x18] sm:$0xff] }
 0x9b4   : > { %18339 = vmatprep.subr.bf16.mxu1 %v21813_v51  ;;  %v11197_v0 = vand.u32 4294901760, %v10387_v3  ;;  %v11320_v22 = vand.u32 4294901760, %v11319_v30 }
 0x9b6   : > { %v18386_v7 = vpack.c.bf16 %v11320_v22, %v11313_v29  ;;  %v22473_v27 = vsub.f32 %v10387_v3, %v11197_v0 }
 0x9b7   : > { %18341 = vmatpush3.bf16.msra.mxu1 %v21813_v51  ;;  %v11194_v51 = vand.u32 4294901760, %v10386_v26 }
 0x9b8   : > { %18343 = vmatprep.subr.bf16.mxu1 %v21823_v34  ;;  %v11332_v50 = vand.u32 4294901760, %v22473_v27 }
 0x9b9   : > { %v22389_v61 = vpack.c.bf16 %v11197_v0, %v11194_v51  ;;  %v22471_v39 = vsub.f32 %v10386_v26, %v11194_v51  ;;  %v23227_v26 = vand.u32 4294901760, %v22479_v11  ;;  %v22493_v51 = vsub.f32 %v10390_v40, %v11206_v23 }
 0x9ba   : > { %v11333_v56 = vsub.f32 %v22473_v27, %v11332_v50  ;;  %v22495_v0 = vsub.f32 %v10391_v43, %v11209_v59 }
 0x9bb   : > { %18345 = vmatpush3.bf16.msra.mxu1 %v21823_v34  ;;  %v10388_v34 = vld [vmem:[%s23134_s10 + $0x20] sm:$0xff]  ;;  %v11325_v35 = vand.u32 4294901760, %v22471_v39  ;;  %v11347_v43 = vsub.f32 %v22479_v11, %v23227_v26 }
 0x9bc   : > { %18347 = vmatprep.subr.bf16.mxu1 %v21833_v12  ;;  %v11334_v52 = vand.u32 4294901760, %v11333_v56 }
 0x9bd   : > { %v11326_v49 = vsub.f32 %v22471_v39, %v11325_v35 }
 0x9bf   : > { %18349 = vmatpush3.bf16.msra.mxu1 %v21833_v12  ;;  %v11200_v12 = vand.u32 4294901760, %v10388_v34 }
 0x9c0   : > { %18351 = vmatprep.subr.bf16.mxu1 %v21849_v48 }
 0x9c1   : > { %v22405_v32 = vpack.c.bf16 %v11203_v31, %v11200_v12  ;;  %v22477_v24 = vsub.f32 %v10388_v34, %v11200_v12  ;;  %v11327_v31 = vand.u32 4294901760, %v11326_v49  ;;  %v23230_v49 = vand.u32 4294901760, %v22495_v0 }
 0x9c3   : > { %18353 = vmatpush3.bf16.msra.mxu1 %v21849_v48  ;;  %v22402_v48 = vpack.c.bf16 %v22274_v10, %v22269_v57  ;;  %v23228_v19 = vand.u32 4294901760, %v22477_v24  ;;  %v18390_v60 = vpack.c.bf16 %v11334_v52, %v11327_v31  ;;  %v11367_v31 = vand.u32 4294901760, %v22524_v16 }
 0x9c4   : > { %18355 = vmatprep.subr.bf16.mxu1 %v22379_v38  ;;  %v23368_v4 = vand.u32 4294901760, %v22477_v24 }
 0x9c5   : > { %v11340_v40 = vsub.f32 %v22477_v24, %v23228_v19  ;;  %v11348_v19 = vand.u32 4294901760, %v11347_v43 }
 0x9c6   : > { %16381 = vmatmul.mubr.f32.vlgmr.msra.gmra.mrb[18].mxu1 %v21963_v42  ;;  %v22421_v42 = vpack.c.bf16 %v22306_v36, %v22300_v18 }
 0x9c7   : > { %16383 = vmatprep.mubr.f32.mxu1 %v22000_v41  ;;  %18357 = vmatpush3.bf16.msra.mxu1 %v22379_v38  ;;  %v22415_v41 = vld [vmem:[%s23134_s10 + $0x48] sm:$0xff]  ;;  %v11341_v26 = vand.u32 4294901760, %v11340_v40 }
 0x9c8   : > { %18359 = vmatprep.subr.bf16.mxu1 %v22389_v61  ;;  %v11215_v5 = vand.u32 4294901760, %v22415_v41 }
 0x9c9   : > { %v18394_v40 = vpack.c.bf16 %v11348_v19, %v11341_v26 }
 0x9ca   : > { %16384 = vmatmul.mubr.f32.gmra.mrb[20].mxu1 %v21998_v13  ;;  %v22434_v13 = vpack.c.bf16 %v11215_v5, %v11212_v63  ;;  %v22527_v20 = vsub.f32 %v22415_v41, %v11215_v5  ;;  %v11361_v41 = vsub.f32 %v22495_v0, %v23230_v49 }
 0x9cb   : > { %18361 = vmatpush3.bf16.msra.mxu1 %v22389_v61 }
 0x9cc   : > { %18363 = vmatprep.subr.bf16.mxu1 %v22405_v32  ;;  %v11374_v52 = vand.u32 4294901760, %v22527_v20  ;;  %v11362_v49 = vand.u32 4294901760, %v11361_v41 }
 0x9cf   : > { %18365 = vmatpush3.bf16.msra.mxu1 %v22405_v32 }
 0x9d0   : > { %18367 = vmatprep.subr.bf16.mxu1 %v22424_v45 }
 0x9d3   : > { %18369 = vmatpush3.bf16.msra.mxu1 %v22424_v45 }
 0x9d4   : > { %18371 = vmatprep.subr.bf16.mxu1 %v22434_v13 }
 0x9d7   : > { %18373 = vmatpush3.bf16.msra.mxu1 %v22434_v13 }
 0x9d8   : > { %18375 = vmatprep.subr.bf16.mxu1 %v22442_v54 }
 0x9db   : > { %18377 = vmatpush3.bf16.msra.mxu1 %v22442_v54 }
 0x9dc   : > { %18379 = vmatprep.subr.bf16.mxu1 %v22452_v37 }
 0x9df   : > { %18381 = vmatpush3.bf16.msra.mxu1 %v22452_v37 }
 0x9e0   : > { %18383 = vmatprep.subr.bf16.mxu1 %v22466_v53 }
 0x9e3   : > { %18385 = vmatpush3.bf16.msra.mxu1 %v22466_v53 }
 0x9e4   : > { %18387 = vmatprep.subr.bf16.mxu1 %v18386_v7 }
 0xa09   : > { %v16070_v44 = vpop.f32.mrb[10].mxu1 }
 0xa0a   : > { %v22487_v2 = vand.u32 4294901760, %v16070_v44  ;;  %v9748_v47 = vpop.f32.mrb[11].mxu1 }
 0xa0b   : > { %v22491_v3 = vand.u32 4294901760, %v9748_v47 }
 0xa0c   : > { %v22498_v34 = vsub.f32 %v16070_v44, %v22487_v2  ;;  %v23231_v44 = vand.u32 4294901760, %v22493_v51 }
 0xa0d   : > { %v22501_v25 = vsub.f32 %v9748_v47, %v22491_v3  ;;  %v16073_v12 = vpop.f32.mrb[12].mxu1 }
 0xa0e   : > { %v23229_v30 = vand.u32 4294901760, %v22498_v34  ;;  %v22504_v29 = vand.u32 4294901760, %v16073_v12  ;;  %v9760_v22 = vpop.f32.mrb[13].mxu1  ;;  %v11354_v1 = vsub.f32 %v22493_v51, %v23231_v44  ;;  %v11368_v44 = vsub.f32 %v22524_v16, %v11367_v31 }
 0xa0f   : > { %v11270_v23 = vand.u32 4294901760, %v22501_v25  ;;  %v22513_v59 = vand.u32 4294901760, %v9760_v22 }
 0xa10   : > { %v11281_v56 = vsub.f32 %v22498_v34, %v23229_v30  ;;  %v22521_v47 = vsub.f32 %v16073_v12, %v22504_v29  ;;  %v11355_v43 = vand.u32 4294901760, %v11354_v1  ;;  %v11369_v19 = vand.u32 4294901760, %v11368_v44 }
 0xa11   : > { %v22530_v46 = vsub.f32 %v9760_v22, %v22513_v59  ;;  %v11271_v33 = vsub.f32 %v22501_v25, %v11270_v23  ;;  %v18430_v44 = vpack.c.bf16 %v22495_v0, %v22493_v51 }
 0xa12   : > { %v11300_v8 = vand.u32 4294901760, %v22521_v47  ;;  %v11282_v63 = vand.u32 4294901760, %v11281_v56 }
 0xa13   : > { %v11290_v12 = vand.u32 4294901760, %v22530_v46  ;;  %v11272_v30 = vand.u32 4294901760, %v11271_v33 }
 0xa14   : > { %v11301_v5 = vsub.f32 %v22521_v47, %v11300_v8 }
 0xa15   : > { %16418 = vmatprep.mubr.f32.mxu1 %v11272_v30  ;;  %v11291_v33 = vsub.f32 %v22530_v46, %v11290_v12  ;;  %v11375_v30 = vsub.f32 %v22527_v20, %v11374_v52 }
 0xa16   : > { %16419 = vmatmul.mubr.f32.vlgmr.msra.gmra.mrb[18].mxu1 %v11282_v63  ;;  %v11302_v56 = vand.u32 4294901760, %v11301_v5 }
 0xa17   : > { %18389 = vmatpush3.bf16.msra.mxu1 %v18386_v7  ;;  %v11292_v22 = vand.u32 4294901760, %v11291_v33  ;;  %v18398_v7 = vpack.c.bf16 %v11362_v49, %v11355_v43  ;;  %v11376_v26 = vand.u32 4294901760, %v11375_v30 }
 0xa18   : > { %18391 = vmatprep.subr.bf16.mxu1 %v18390_v60 }
 0xa19   : > { %16421 = vmatprep.mubr.f32.mxu1 %v11292_v22  ;;  %v18402_v63 = vpack.c.bf16 %v11376_v26, %v11369_v19  ;;  %v18434_v22 = vpack.c.bf16 %v22527_v20, %v22524_v16  ;;  %v23376_v16 = vand.u32 4294901760, %v22323_v58  ;;  %v23377_v20 = vand.u32 4294901760, %v22328_v62  ;;  %v22746_v19 = vld [vmem:[%s23134_s10 + $0x150] sm:$0xff]  ;;  %v22757_v26 = vld [vmem:[%s23134_s10 + $0x160] sm:$0xff] }
 0xa1a   : > { %16422 = vmatmul.mubr.f32.gmra.mrb[20].mxu1 %v11302_v56  ;;  %v22729_v56 = vld [vmem:[%s23134_s10 + $0x140] sm:$0xff] }
 0xa1b   : > { %18393 = vmatpush3.bf16.msra.mxu1 %v18390_v60  ;;  %16456 = vmatprep.mubr.f32.mxu1 %v22491_v3  ;;  %v18422_v60 = vpack.c.bf16 %v22473_v27, %v22471_v39  ;;  %v23371_v39 = vand.u32 4294901760, %v22495_v0  ;;  %v18498_v27 = vpack.c.bf16 %v11374_v52, %v11367_v31  ;;  %v18510_v0 = vpack.c.bf16 %v23377_v20, %v23376_v16  ;;  %v12957_v31 = vld [vmem:[%s23134_s10 + $0x138] sm:$0xff] }
 0xa1c   : > { %18395 = vmatprep.subr.bf16.mxu1 %v18394_v40  ;;  %v11999_v30 = vand.u32 4294901760, %v22729_v56 }
 0xa1f   : > { %18397 = vmatpush3.bf16.msra.mxu1 %v18394_v40  ;;  %v22558_v1 = vpop.f32.mrb[28].mxu0  ;;  %v11996_v40 = vand.u32 4294901760, %v12957_v31 }
 0xa20   : > { %v22560_v41 = vpop.f32.mrb[29].mxu0  ;;  %18399 = vmatprep.subr.bf16.mxu1 %v18398_v7 }
 0xa23   : > { %18401 = vmatpush3.bf16.msra.mxu1 %v18398_v7  ;;  %v22562_v5 = vpop.f32.mrb[30].mxu0 }
 0xa24   : > { %v22564_v33 = vpop.f32.mrb[31].mxu0  ;;  %18403 = vmatprep.subr.bf16.mxu1 %v18402_v63 }
 0xa27   : > { %18405 = vmatpush3.bf16.msra.mxu1 %v18402_v63  ;;  %v22762_v63 = vld [vmem:[%s23134_s10 + $0x168] sm:$0xff] }
 0xa28   : > { %18407 = vmatprep.subr.bf16.mxu1 %v22315_v6 }
 0xa2b   : > { %18409 = vmatpush3.bf16.msra.mxu1 %v22315_v6  ;;  %v18426_v6 = vpack.c.bf16 %v22479_v11, %v22477_v24  ;;  %v23374_v24 = vand.u32 4294901760, %v22300_v18  ;;  %v23375_v11 = vand.u32 4294901760, %v22306_v36  ;;  %v12951_v18 = vld [vmem:[%s23134_s10 + $0x108] sm:$0xff] }
 0xa2c   : > { %18411 = vmatprep.subr.bf16.mxu1 %v22351_v21  ;;  %v11978_v58 = vand.u32 4294901760, %v12951_v18 }
 0xa2f   : > { %18413 = vmatpush3.bf16.msra.mxu1 %v22351_v21 }
 0xa30   : > { %18415 = vmatprep.subr.bf16.mxu1 %v22355_v55 }
 0xa33   : > { %18417 = vmatpush3.bf16.msra.mxu1 %v22355_v55 }
 0xa34   : > { %18419 = vmatprep.subr.bf16.mxu1 %v22365_v14 }
 0xa36   : > { %16457 = vmatmul.mubr.f32.vlgmr.msra.gmra.mrb[18].mxu1 %v22487_v2 }
 0xa37   : > { %16459 = vmatprep.mubr.f32.mxu1 %v22513_v59  ;;  %18421 = vmatpush3.bf16.msra.mxu1 %v22365_v14 }
 0xa38   : > { %18423 = vmatprep.subr.bf16.mxu1 %v18422_v60 }
 0xa39   : > { %v22580_v21 = vpop.f32.mrb[14].mxu1 }
 0xa3a   : > { %16460 = vmatmul.mubr.f32.gmra.mrb[20].mxu1 %v22504_v29  ;;  %v22583_v55 = vpop.f32.mrb[15].mxu1 }
 0xa3b   : > { %18425 = vmatpush3.bf16.msra.mxu1 %v18422_v60  ;;  %16494 = vmatprep.mubr.f32.mxu1 %v22501_v25 }
 0xa3c   : > { %18427 = vmatprep.subr.bf16.mxu1 %v18426_v6 }
 0xa3d   : > { %v22588_v49 = vpop.f32.mrb[16].mxu1 }
 0xa3e   : > { %v22590_v14 = vpop.f32.mrb[17].mxu1 }
 0xa3f   : > { %18429 = vmatpush3.bf16.msra.mxu1 %v18426_v6  ;;  %v22766_v6 = vsub.f32 %v12951_v18, %v11978_v58 }
 0xa40   : > { %18431 = vmatprep.subr.bf16.mxu1 %v18430_v44 }
 0xa43   : > { %18433 = vmatpush3.bf16.msra.mxu1 %v18430_v44  ;;  %v12005_v44 = vand.u32 4294901760, %v22746_v19 }
 0xa44   : > { %18435 = vmatprep.subr.bf16.mxu1 %v18434_v22 }
 0xa47   : > { %18437 = vmatpush3.bf16.msra.mxu1 %v18434_v22 }
 0xa48   : > { %18439 = vmatprep.subr.bf16.mxu1 %v22402_v48 }
 0xa4b   : > { %18441 = vmatpush3.bf16.msra.mxu1 %v22402_v48  ;;  %v18482_v48 = vpack.c.bf16 %v11318_v15, %v11311_v17  ;;  %v18490_v17 = vpack.c.bf16 %v23369_v28, %v23368_v4  ;;  %v23370_v15 = vand.u32 4294901760, %v22493_v51  ;;  %v18506_v51 = vpack.c.bf16 %v23375_v11, %v23374_v24 }
 0xa4c   : > { %18443 = vmatprep.subr.bf16.mxu1 %v22421_v42  ;;  %v23235_v28 = vand.u32 4294901760, %v22766_v6 }
 0xa4e   : > { %v12106_v16 = vsub.f32 %v22766_v6, %v23235_v28 }
 0xa4f   : > { %18445 = vmatpush3.bf16.msra.mxu1 %v22421_v42  ;;  %v18486_v42 = vpack.c.bf16 %v11332_v50, %v11325_v35  ;;  %v23373_v35 = vand.u32 4294901760, %v22274_v10  ;;  %v12950_v10 = vld [vmem:[%s23134_s10 + $0x100] sm:$0xff] }
 0xa50   : > { %18447 = vmatprep.subr.bf16.mxu1 %v22431_v9  ;;  %v11975_v36 = vand.u32 4294901760, %v12950_v10 }
 0xa52   : > { %v22764_v60 = vsub.f32 %v12950_v10, %v11975_v36 }
 0xa53   : > { %18449 = vmatpush3.bf16.msra.mxu1 %v22431_v9  ;;  %v23367_v9 = vand.u32 4294901760, %v22498_v34 }
 0xa54   : > { %18451 = vmatprep.subr.bf16.mxu1 %v22379_v38  ;;  %v23241_v4 = vand.u32 4294901760, %v22764_v60 }
 0xa56   : > { %16495 = vmatmul.mubr.f32.vlgmr.msra.gmra.mrb[18].mxu1 %v22498_v34  ;;  %v12955_v34 = vld [vmem:[%s23134_s10 + $0x128] sm:$0xff] }
 0xa57   : > { %16497 = vmatprep.mubr.f32.mxu1 %v22530_v46  ;;  %18453 = vmatpush3.bf16.msra.mxu1 %v22379_v38  ;;  %v18494_v46 = vpack.c.bf16 %v23371_v39, %v23370_v15  ;;  %v22791_v15 = vld [vmem:[%s23134_s10 + $0x170] sm:$0xff]  ;;  %v22796_v39 = vld [vmem:[%s23134_s10 + $0x178] sm:$0xff] }
 0xa58   : > { %18455 = vmatprep.subr.bf16.mxu1 %v22389_v61  ;;  %v12017_v11 = vand.u32 4294901760, %v22791_v15 }
 0xa5a   : > { %16498 = vmatmul.mubr.f32.gmra.mrb[20].mxu1 %v22521_v47 }
 0xa5b   : > { %18457 = vmatpush3.bf16.msra.mxu1 %v22389_v61  ;;  %16532 = vmatprep.mubr.f32.mxu1 %v11270_v23  ;;  %v11990_v23 = vand.u32 4294901760, %v12955_v34 }
 0xa5c   : > { %18459 = vmatprep.subr.bf16.mxu1 %v22405_v32 }
 0xa5d   : > { %v22832_v18 = vsub.f32 %v12955_v34, %v11990_v23 }
 0xa5f   : > { %18461 = vmatpush3.bf16.msra.mxu1 %v22405_v32 }
 0xa60   : > { %18463 = vmatprep.subr.bf16.mxu1 %v22424_v45 }
 0xa63   : > { %18465 = vmatpush3.bf16.msra.mxu1 %v22424_v45 }
 0xa64   : > { %18467 = vmatprep.subr.bf16.mxu1 %v22434_v13 }
 0xa67   : > { %18469 = vmatpush3.bf16.msra.mxu1 %v22434_v13 }
 0xa68   : > { %18471 = vmatprep.subr.bf16.mxu1 %v22442_v54 }
 0xa6b   : > { %18473 = vmatpush3.bf16.msra.mxu1 %v22442_v54 }
 0xa6c   : > { %18475 = vmatprep.subr.bf16.mxu1 %v22452_v37 }
 0xa6f   : > { %18477 = vmatpush3.bf16.msra.mxu1 %v22452_v37 }
 0xa70   : > { %18479 = vmatprep.subr.bf16.mxu1 %v22466_v53 }
 0xa73   : > { %18481 = vmatpush3.bf16.msra.mxu1 %v22466_v53 }
 0xa74   : > { %18483 = vmatprep.subr.bf16.mxu1 %v18482_v48 }
 0xa76   : > { %16533 = vmatmul.mubr.f32.vlgmr.msra.gmra.mrb[18].mxu1 %v23367_v9  ;;  %v12014_v9 = vand.u32 4294901760, %v22762_v63 }
 0xa77   : > { %16535 = vmatprep.mubr.f32.mxu1 %v11290_v12  ;;  %18485 = vmatpush3.bf16.msra.mxu1 %v18482_v48  ;;  %v12956_v12 = vld [vmem:[%s23134_s10 + $0x130] sm:$0xff]  ;;  %v22774_v48 = vand.u32 4294901760, %v22580_v21 }
 0xa78   : > { %18487 = vmatprep.subr.bf16.mxu1 %v18486_v42  ;;  %v11993_v52 = vand.u32 4294901760, %v12956_v12 }
 0xa7a   : > { %16536 = vmatmul.mubr.f32.gmra.mrb[20].mxu1 %v11300_v8  ;;  %v23372_v8 = vand.u32 4294901760, %v22269_v57  ;;  %v22676_v57 = vand.u32 4294901760, %v22583_v55 }
 0xa7b   : > { %18489 = vmatpush3.bf16.msra.mxu1 %v18486_v42  ;;  %16570 = vmatprep.mubr.f32.mxu1 %v22491_v3  ;;  %v12011_v42 = vand.u32 4294901760, %v22757_v26 }
 0xa7c   : > { %18491 = vmatprep.subr.bf16.mxu1 %v18490_v17  ;;  %v18502_v50 = vpack.c.bf16 %v23373_v35, %v23372_v8  ;;  %v22688_v62 = vsub.f32 %v22583_v55, %v22676_v57  ;;  %v22803_v8 = vand.u32 4294901760, %v22590_v14  ;;  %v22807_v35 = vsub.f32 %v22580_v21, %v22774_v48 }
 0xa7d   : > { %v22816_v24 = vpack.c.bf16 %v12014_v9, %v12011_v42  ;;  %v12099_v21 = vsub.f32 %v22764_v60, %v23241_v4 }
 0xa7f   : > { %18493 = vmatpush3.bf16.msra.mxu1 %v18490_v17 }
 0xa80   : > { %18495 = vmatprep.subr.bf16.mxu1 %v18494_v46 }
 0xa83   : > { %18497 = vmatpush3.bf16.msra.mxu1 %v18494_v46 }
 0xa84   : > { %18499 = vmatprep.subr.bf16.mxu1 %v18498_v27 }
 0xa87   : > { %18501 = vmatpush3.bf16.msra.mxu1 %v18498_v27 }
 0xa88   : > { %18503 = vmatprep.subr.bf16.mxu1 %v18502_v50 }
 0xa8b   : > { %18505 = vmatpush3.bf16.msra.mxu1 %v18502_v50  ;;  %v22810_v50 = vand.u32 4294901760, %v22588_v49 }
 0xa8c   : > { %18507 = vmatprep.subr.bf16.mxu1 %v18506_v51 }
 0xa8f   : > { %18509 = vmatpush3.bf16.msra.mxu1 %v18506_v51  ;;  %v12020_v51 = vand.u32 4294901760, %v22796_v39 }
 0xa90   : > { %18511 = vmatprep.subr.bf16.mxu1 %v18510_v0 }
 0xa93   : > { %18513 = vmatpush3.bf16.msra.mxu1 %v18510_v0 }
 0xa94   : > { %18515 = vmatprep.subr.bf16.mxu1 %v22379_v38 }
 0xa96   : > { %16571 = vmatmul.mubr.f32.vlgmr.msra.gmra.mrb[18].mxu1 %v22487_v2 }
 0xa97   : > { %16573 = vmatprep.mubr.f32.mxu1 %v22513_v59  ;;  %18517 = vmatpush3.bf16.msra.mxu1 %v22379_v38  ;;  %v12952_v38 = vld [vmem:[%s23134_s10 + $0x110] sm:$0xff] }
 0xa98   : > { %18519 = vmatprep.subr.bf16.mxu1 %v22389_v61 }
 0xa9a   : > { %16574 = vmatmul.mubr.f32.gmra.mrb[20].mxu1 %v22504_v29 }
 0xa9b   : > { %18521 = vmatpush3.bf16.msra.mxu1 %v22389_v61  ;;  %16608 = vmatprep.mubr.f32.mxu1 %v22491_v3  ;;  %v12953_v61 = vld [vmem:[%s23134_s10 + $0x118] sm:$0xff]  ;;  %v12954_v3 = vld [vmem:[%s23134_s10 + $0x120] sm:$0xff] }
 0xa9c   : > { %18523 = vmatprep.subr.bf16.mxu1 %v22405_v32  ;;  %v11987_v25 = vand.u32 4294901760, %v12954_v3 }
 0xa9e   : > { %v22830_v10 = vsub.f32 %v12954_v3, %v11987_v25  ;;  %v12107_v3 = vand.u32 4294901760, %v12106_v16 }
 0xa9f   : > { %18525 = vmatpush3.bf16.msra.mxu1 %v22405_v32  ;;  %v22698_v32 = vpack.c.bf16 %v11978_v58, %v11975_v36  ;;  %v22836_v36 = vsub.f32 %v22590_v14, %v22803_v8  ;;  %v23234_v58 = vand.u32 4294901760, %v22807_v35  ;;  %v12100_v14 = vand.u32 4294901760, %v12099_v21 }
 0xaa0   : > { %18527 = vmatprep.subr.bf16.mxu1 %v22424_v45  ;;  %v22872_v21 = vsub.f32 %v22729_v56, %v11999_v30 }
 0xaa3   : > { %18529 = vmatpush3.bf16.msra.mxu1 %v22424_v45  ;;  %v11981_v45 = vand.u32 4294901760, %v12952_v38 }
 0xaa4   : > { %18531 = vmatprep.subr.bf16.mxu1 %v22434_v13 }
 0xaa5   : > { %v22798_v46 = vsub.f32 %v12952_v38, %v11981_v45  ;;  %v22839_v38 = vsub.f32 %v12956_v12, %v11993_v52  ;;  %v12068_v12 = vsub.f32 %v22807_v35, %v23234_v58 }
 0xaa7   : > { %18533 = vmatpush3.bf16.msra.mxu1 %v22434_v13  ;;  %v11984_v13 = vand.u32 4294901760, %v12953_v61  ;;  %v23233_v20 = vand.u32 4294901760, %v22798_v46 }
 0xaa8   : > { %18535 = vmatprep.subr.bf16.mxu1 %v22442_v54 }
 0xaa9   : > { %v22800_v27 = vsub.f32 %v12953_v61, %v11984_v13  ;;  %v22841_v61 = vsub.f32 %v12957_v31, %v11996_v40  ;;  %v12113_v34 = vsub.f32 %v22798_v46, %v23233_v20  ;;  %v23237_v31 = vand.u32 4294901760, %v22839_v38 }
 0xaab   : > { %18537 = vmatpush3.bf16.msra.mxu1 %v22442_v54  ;;  %v12057_v54 = vand.u32 4294901760, %v22688_v62  ;;  %v23232_v0 = vand.u32 4294901760, %v22800_v27 }
 0xaac   : > { %18539 = vmatprep.subr.bf16.mxu1 %v22452_v37 }
 0xaad   : > { %v12058_v47 = vsub.f32 %v22688_v62, %v12057_v54 }
 0xaaf   : > { %18541 = vmatpush3.bf16.msra.mxu1 %v22452_v37  ;;  %v22709_v37 = vpack.c.bf16 %v11984_v13, %v11981_v45  ;;  %v12059_v43 = vand.u32 4294901760, %v12058_v47  ;;  %v22845_v45 = vsub.f32 %v22588_v49, %v22810_v50  ;;  %v22852_v13 = vpack.c.bf16 %v12020_v51, %v12017_v11 }
 0xab0   : > { %18543 = vmatprep.subr.bf16.mxu1 %v22466_v53  ;;  %v12120_v49 = vsub.f32 %v22800_v27, %v23232_v0  ;;  %v23240_v47 = vand.u32 4294901760, %v22836_v36  ;;  %v12114_v0 = vand.u32 4294901760, %v12113_v34  ;;  %v22899_v34 = vsub.f32 %v22746_v19, %v12005_v44 }
 0xab2   : > { %v12121_v20 = vand.u32 4294901760, %v12120_v49  ;;  %v12078_v56 = vsub.f32 %v22836_v36, %v23240_v47 }
 0xab3   : > { %18545 = vmatpush3.bf16.msra.mxu1 %v22466_v53  ;;  %v22724_v53 = vpack.c.bf16 %v11990_v23, %v11987_v25  ;;  %v23239_v25 = vand.u32 4294901760, %v22830_v10  ;;  %v23238_v23 = vand.u32 4294901760, %v22832_v18 }
 0xab4   : > { %18547 = vmatprep.subr.bf16.mxu1 %v22698_v32 }
 0xab5   : > { %v12127_v58 = vsub.f32 %v22830_v10, %v23239_v25  ;;  %v12134_v28 = vsub.f32 %v22832_v18, %v23238_v23  ;;  %v12079_v25 = vand.u32 4294901760, %v12078_v56 }
 0xab6   : > { %16609 = vmatmul.mubr.f32.vlgmr.msra.gmra.mrb[18].mxu1 %v22487_v2  ;;  %v22734_v2 = vld [vmem:[%s23134_s10 + $0x148] sm:$0xff] }
 0xab7   : > { %16611 = vmatprep.mubr.f32.mxu1 %v22513_v59  ;;  %18549 = vmatpush3.bf16.msra.mxu1 %v22698_v32  ;;  %v22739_v59 = vpack.c.bf16 %v11996_v40, %v11993_v52  ;;  %v12002_v7 = vand.u32 4294901760, %v22734_v2  ;;  %v23236_v52 = vand.u32 4294901760, %v22841_v61  ;;  %v12087_v40 = vand.u32 4294901760, %v22845_v45 }
 0xab8   : > { %18551 = vmatprep.subr.bf16.mxu1 %v22709_v37  ;;  %v12135_v23 = vand.u32 4294901760, %v12134_v28 }
 0xab9   : > { %v22769_v55 = vpack.c.bf16 %v12002_v7, %v11999_v30  ;;  %v22875_v16 = vsub.f32 %v22734_v2, %v12002_v7  ;;  %v12069_v30 = vand.u32 4294901760, %v12068_v12  ;;  %v12141_v2 = vsub.f32 %v22839_v38, %v23237_v31 }
 0xaba   : > { %16612 = vmatmul.mubr.f32.gmra.mrb[20].mxu1 %v22504_v29  ;;  %v22751_v29 = vld [vmem:[%s23134_s10 + $0x158] sm:$0xff]  ;;  %v12148_v7 = vsub.f32 %v22841_v61, %v23236_v52  ;;  %v12088_v12 = vsub.f32 %v22845_v45, %v12087_v40  ;;  %v18582_v52 = vpack.c.bf16 %v12121_v20, %v12114_v0  ;;  %v12128_v31 = vand.u32 4294901760, %v12127_v58 }
 0xabb   : > { %18553 = vmatpush3.bf16.msra.mxu1 %v22709_v37  ;;  %16646 = vmatprep.mubr.f32.mxu1 %v12059_v43  ;;  %v12008_v22 = vand.u32 4294901760, %v22751_v29  ;;  %v18578_v43 = vpack.c.bf16 %v12107_v3, %v12100_v14  ;;  %v12154_v14 = vand.u32 4294901760, %v22872_v21  ;;  %v12161_v3 = vand.u32 4294901760, %v22875_v16 }
 0xabc   : > { %18555 = vmatprep.subr.bf16.mxu1 %v22724_v53  ;;  %v12142_v47 = vand.u32 4294901760, %v12141_v2  ;;  %v12149_v4 = vand.u32 4294901760, %v12148_v7  ;;  %v12089_v20 = vand.u32 4294901760, %v12088_v12  ;;  %v18586_v28 = vpack.c.bf16 %v12135_v23, %v12128_v31 }
 0xabd   : > { %v22786_v17 = vpack.c.bf16 %v12008_v22, %v12005_v44  ;;  %v22904_v49 = vsub.f32 %v22751_v29, %v12008_v22  ;;  %v12155_v19 = vsub.f32 %v22872_v21, %v12154_v14  ;;  %v12162_v29 = vsub.f32 %v22875_v16, %v12161_v3 }
 0xabe   : > { %v12168_v44 = vand.u32 4294901760, %v22899_v34  ;;  %v22920_v0 = vsub.f32 %v22757_v26, %v12011_v42  ;;  %v22925_v58 = vsub.f32 %v22762_v63, %v12014_v9  ;;  %v22939_v9 = vsub.f32 %v22791_v15, %v12017_v11 }
 0xabf   : > { %18557 = vmatpush3.bf16.msra.mxu1 %v22724_v53  ;;  %v12175_v22 = vand.u32 4294901760, %v22904_v49  ;;  %v12163_v56 = vand.u32 4294901760, %v12162_v29 }
 0xac0   : > { %18559 = vmatprep.subr.bf16.mxu1 %v22739_v59  ;;  %v12169_v23 = vsub.f32 %v22899_v34, %v12168_v44  ;;  %v12182_v42 = vand.u32 4294901760, %v22920_v0  ;;  %v12189_v63 = vand.u32 4294901760, %v22925_v58  ;;  %v12196_v15 = vand.u32 4294901760, %v22939_v9 }
 0xac1   : > { %v12176_v26 = vsub.f32 %v22904_v49, %v12175_v22 }
 0xac2   : > { %v12170_v31 = vand.u32 4294901760, %v12169_v23  ;;  %v12190_v2 = vsub.f32 %v22925_v58, %v12189_v63  ;;  %v12197_v12 = vsub.f32 %v22939_v9, %v12196_v15  ;;  %v18618_v23 = vpack.c.bf16 %v22832_v18, %v22830_v10 }
 0xac3   : > { %18561 = vmatpush3.bf16.msra.mxu1 %v22739_v59 }
 0xac4   : > { %18563 = vmatprep.subr.bf16.mxu1 %v22769_v55  ;;  %v12191_v7 = vand.u32 4294901760, %v12190_v2 }
 0xac7   : > { %18565 = vmatpush3.bf16.msra.mxu1 %v22769_v55 }
 0xac8   : > { %18567 = vmatprep.subr.bf16.mxu1 %v22786_v17 }
 0xacb   : > { %18569 = vmatpush3.bf16.msra.mxu1 %v22786_v17 }
 0xacc   : > { %18571 = vmatprep.subr.bf16.mxu1 %v22816_v24 }
 0xacf   : > { %18573 = vmatpush3.bf16.msra.mxu1 %v22816_v24 }
 0xad0   : > { %18575 = vmatprep.subr.bf16.mxu1 %v22852_v13 }
 0xad3   : > { %18577 = vmatpush3.bf16.msra.mxu1 %v22852_v13 }
 0xad4   : > { %18579 = vmatprep.subr.bf16.mxu1 %v18578_v43 }
 0xad6   : > { %16647 = vmatmul.mubr.f32.vlgmr.msra.gmra.mrb[18].mxu1 %v12069_v30  ;;  %v12183_v30 = vsub.f32 %v22920_v0, %v12182_v42 }
 0xad7   : > { %16649 = vmatprep.mubr.f32.mxu1 %v12079_v25  ;;  %18581 = vmatpush3.bf16.msra.mxu1 %v18578_v43  ;;  %v18590_v25 = vpack.c.bf16 %v12149_v4, %v12142_v47  ;;  %v12156_v43 = vand.u32 4294901760, %v12155_v19  ;;  %v22944_v4 = vsub.f32 %v22796_v39, %v12020_v51 }
 0xad8   : > { %18583 = vmatprep.subr.bf16.mxu1 %v18582_v52  ;;  %v12184_v51 = vand.u32 4294901760, %v12183_v30 }
 0xad9   : > { %v18594_v47 = vpack.c.bf16 %v12163_v56, %v12156_v43  ;;  %v12203_v11 = vand.u32 4294901760, %v22944_v4  ;;  %v18610_v43 = vpack.c.bf16 %v22766_v6, %v22764_v60  ;;  %v18614_v56 = vpack.c.bf16 %v22800_v27, %v22798_v46 }
 0xada   : > { %16650 = vmatmul.mubr.f32.gmra.mrb[20].mxu1 %v12089_v20  ;;  %v18602_v29 = vpack.c.bf16 %v12191_v7, %v12184_v51  ;;  %v12198_v20 = vand.u32 4294901760, %v12197_v12  ;;  %v18638_v30 = vpack.c.bf16 %v22944_v4, %v22939_v9  ;;  %v23381_v51 = vand.u32 4294901760, %v22800_v27 }
 0xadb   : > { %18585 = vmatpush3.bf16.msra.mxu1 %v18582_v52  ;;  %16684 = vmatprep.mubr.f32.mxu1 %v22676_v57  ;;  %v12177_v52 = vand.u32 4294901760, %v12176_v26  ;;  %v12204_v19 = vsub.f32 %v22944_v4, %v12203_v11  ;;  %v18622_v26 = vpack.c.bf16 %v22841_v61, %v22839_v38  ;;  %v23382_v12 = vand.u32 4294901760, %v22807_v35 }
 0xadc   : > { %18587 = vmatprep.subr.bf16.mxu1 %v18586_v28  ;;  %v23387_v27 = vand.u32 4294901760, %v22841_v61 }
 0xadd   : > { %v18598_v39 = vpack.c.bf16 %v12177_v52, %v12170_v31  ;;  %v18630_v31 = vpack.c.bf16 %v22904_v49, %v22899_v34  ;;  %v18634_v52 = vpack.c.bf16 %v22925_v58, %v22920_v0 }
 0xadf   : > { %18589 = vmatpush3.bf16.msra.mxu1 %v18586_v28  ;;  %v12205_v28 = vand.u32 4294901760, %v12204_v19  ;;  %v23383_v19 = vand.u32 4294901760, %v22836_v36 }
 0xae0   : > { %18591 = vmatprep.subr.bf16.mxu1 %v18590_v25 }
 0xae3   : > { %18593 = vmatpush3.bf16.msra.mxu1 %v18590_v25  ;;  %v18606_v25 = vpack.c.bf16 %v12205_v28, %v12198_v20 }
 0xae4   : > { %18595 = vmatprep.subr.bf16.mxu1 %v18594_v47 }
 0xae7   : > { %18597 = vmatpush3.bf16.msra.mxu1 %v18594_v47  ;;  %v18626_v47 = vpack.c.bf16 %v22875_v16, %v22872_v21 }
 0xae8   : > { %18599 = vmatprep.subr.bf16.mxu1 %v18598_v39 }
 0xaeb   : > { %18601 = vmatpush3.bf16.msra.mxu1 %v18598_v39  ;;  %v23380_v39 = vand.u32 4294901760, %v22798_v46  ;;  %v23386_v46 = vand.u32 4294901760, %v22839_v38  ;;  %v18702_v38 = vpack.c.bf16 %v12203_v11, %v12196_v15 }
 0xaec   : > { %18603 = vmatprep.subr.bf16.mxu1 %v18602_v29 }
 0xaed   : > { %v18678_v7 = vpack.c.bf16 %v23381_v51, %v23380_v39 }
 0xaef   : > { %18605 = vmatpush3.bf16.msra.mxu1 %v18602_v29 }
 0xaf0   : > { %18607 = vmatprep.subr.bf16.mxu1 %v18606_v25 }
 0xaf3   : > { %18609 = vmatpush3.bf16.msra.mxu1 %v18606_v25 }
 0xaf4   : > { %18611 = vmatprep.subr.bf16.mxu1 %v18610_v43 }
 0xaf6   : > { %16685 = vmatmul.mubr.f32.vlgmr.msra.gmra.mrb[18].mxu1 %v22774_v48 }
 0xaf7   : > { %16687 = vmatprep.mubr.f32.mxu1 %v22803_v8  ;;  %18613 = vmatpush3.bf16.msra.mxu1 %v18610_v43 }
 0xaf8   : > { %18615 = vmatprep.subr.bf16.mxu1 %v18614_v56 }
 0xafa   : > { %16688 = vmatmul.mubr.f32.gmra.mrb[20].mxu1 %v22810_v50 }
 0xafb   : > { %18617 = vmatpush3.bf16.msra.mxu1 %v18614_v56  ;;  %16722 = vmatprep.mubr.f32.mxu1 %v22688_v62  ;;  %v23378_v62 = vand.u32 4294901760, %v22764_v60  ;;  %v23384_v60 = vand.u32 4294901760, %v22830_v10  ;;  %v18690_v10 = vpack.c.bf16 %v12161_v3, %v12154_v14 }
 0xafc   : > { %18619 = vmatprep.subr.bf16.mxu1 %v18618_v23 }
 0xaff   : > { %18621 = vmatpush3.bf16.msra.mxu1 %v18618_v23 }
 0xb00   : > { %18623 = vmatprep.subr.bf16.mxu1 %v18622_v26 }
 0xb03   : > { %18625 = vmatpush3.bf16.msra.mxu1 %v18622_v26 }
 0xb04   : > { %18627 = vmatprep.subr.bf16.mxu1 %v18626_v47 }
 0xb07   : > { %18629 = vmatpush3.bf16.msra.mxu1 %v18626_v47 }
 0xb08   : > { %18631 = vmatprep.subr.bf16.mxu1 %v18630_v31 }
 0xb0b   : > { %18633 = vmatpush3.bf16.msra.mxu1 %v18630_v31 }
 0xb0c   : > { %18635 = vmatprep.subr.bf16.mxu1 %v18634_v52 }
 0xb0f   : > { %18637 = vmatpush3.bf16.msra.mxu1 %v18634_v52 }
 0xb10   : > { %18639 = vmatprep.subr.bf16.mxu1 %v18638_v30 }
 0xb13   : > { %18641 = vmatpush3.bf16.msra.mxu1 %v18638_v30 }
 0xb14   : > { %18643 = vmatprep.subr.bf16.mxu1 %v22698_v32 }
 0xb16   : > { %16723 = vmatmul.mubr.f32.vlgmr.msra.gmra.mrb[18].mxu1 %v22807_v35  ;;  %v18686_v35 = vpack.c.bf16 %v23387_v27, %v23386_v46 }
 0xb17   : > { %16725 = vmatprep.mubr.f32.mxu1 %v22836_v36  ;;  %18645 = vmatpush3.bf16.msra.mxu1 %v22698_v32  ;;  %v18698_v36 = vpack.c.bf16 %v12189_v63, %v12182_v42 }
 0xb18   : > { %18647 = vmatprep.subr.bf16.mxu1 %v22709_v37 }
 0xb1a   : > { %16726 = vmatmul.mubr.f32.gmra.mrb[20].mxu1 %v22845_v45 }
 0xb1b   : > { %18649 = vmatpush3.bf16.msra.mxu1 %v22709_v37  ;;  %16760 = vmatprep.mubr.f32.mxu1 %v12057_v54  ;;  %v23379_v54 = vand.u32 4294901760, %v22766_v6  ;;  %v23385_v6 = vand.u32 4294901760, %v22832_v18  ;;  %v18694_v18 = vpack.c.bf16 %v12175_v22, %v12168_v44 }
 0xb1c   : > { %18651 = vmatprep.subr.bf16.mxu1 %v22724_v53 }
 0xb1d   : > { %v18674_v2 = vpack.c.bf16 %v23379_v54, %v23378_v62  ;;  %v18682_v29 = vpack.c.bf16 %v23385_v6, %v23384_v60 }
 0xb1f   : > { %18653 = vmatpush3.bf16.msra.mxu1 %v22724_v53 }
 0xb20   : > { %18655 = vmatprep.subr.bf16.mxu1 %v22739_v59 }
 0xb23   : > { %18657 = vmatpush3.bf16.msra.mxu1 %v22739_v59 }
 0xb24   : > { %18659 = vmatprep.subr.bf16.mxu1 %v22769_v55 }
 0xb27   : > { %18661 = vmatpush3.bf16.msra.mxu1 %v22769_v55 }
 0xb28   : > { %18663 = vmatprep.subr.bf16.mxu1 %v22786_v17 }
 0xb2b   : > { %18665 = vmatpush3.bf16.msra.mxu1 %v22786_v17 }
 0xb2c   : > { %18667 = vmatprep.subr.bf16.mxu1 %v22816_v24 }
 0xb2f   : > { %18669 = vmatpush3.bf16.msra.mxu1 %v22816_v24 }
 0xb30   : > { %18671 = vmatprep.subr.bf16.mxu1 %v22852_v13 }
 0xb33   : > { %18673 = vmatpush3.bf16.msra.mxu1 %v22852_v13 }
 0xb34   : > { %18675 = vmatprep.subr.bf16.mxu1 %v18674_v2 }
 0xb36   : > { %16761 = vmatmul.mubr.f32.vlgmr.msra.gmra.mrb[18].mxu1 %v23382_v12 }
 0xb37   : > { %16763 = vmatprep.mubr.f32.mxu1 %v23383_v19  ;;  %18677 = vmatpush3.bf16.msra.mxu1 %v18674_v2 }
 0xb38   : > { %18679 = vmatprep.subr.bf16.mxu1 %v18678_v7 }
 0xb3a   : > { %16764 = vmatmul.mubr.f32.gmra.mrb[20].mxu1 %v12087_v40 }
 0xb3b   : > { %18681 = vmatpush3.bf16.msra.mxu1 %v18678_v7  ;;  %16798 = vmatprep.mubr.f32.mxu1 %v22676_v57 }
 0xb3c   : > { %18683 = vmatprep.subr.bf16.mxu1 %v18682_v29 }
 0xb3f   : > { %18685 = vmatpush3.bf16.msra.mxu1 %v18682_v29 }
 0xb40   : > { %18687 = vmatprep.subr.bf16.mxu1 %v18686_v35 }
 0xb43   : > { %18689 = vmatpush3.bf16.msra.mxu1 %v18686_v35 }
 0xb44   : > { %18691 = vmatprep.subr.bf16.mxu1 %v18690_v10 }
 0xb47   : > { %18693 = vmatpush3.bf16.msra.mxu1 %v18690_v10 }
 0xb48   : > { %18695 = vmatprep.subr.bf16.mxu1 %v18694_v18 }
 0xb4b   : > { %18697 = vmatpush3.bf16.msra.mxu1 %v18694_v18 }
 0xb4c   : > { %18699 = vmatprep.subr.bf16.mxu1 %v18698_v36 }
 0xb4f   : > { %18701 = vmatpush3.bf16.msra.mxu1 %v18698_v36 }
 0xb50   : > { %18703 = vmatprep.subr.bf16.mxu1 %v18702_v38 }
 0xb53   : > { %18705 = vmatpush3.bf16.msra.mxu1 %v18702_v38 }
 0xb54   : > { %18707 = vmatprep.subr.bf16.mxu1 %v22698_v32 }
 0xb56   : > { %16799 = vmatmul.mubr.f32.vlgmr.msra.gmra.mrb[18].mxu1 %v22774_v48 }
 0xb57   : > { %16801 = vmatprep.mubr.f32.mxu1 %v22803_v8  ;;  %18709 = vmatpush3.bf16.msra.mxu1 %v22698_v32  ;;  %v12966_v32 = vld [vmem:[%s23135_s11] ss:$0 sm:$0xff] }
 0xb58   : > { %18711 = vmatprep.subr.bf16.mxu1 %v22709_v37 }
 0xb5a   : > { %16802 = vmatmul.mubr.f32.gmra.mrb[20].mxu1 %v22810_v50 }
 0xb5b   : > { %18713 = vmatpush3.bf16.msra.mxu1 %v22709_v37  ;;  %16836 = vmatprep.mubr.f32.mxu1 %v22676_v57 }
 0xb5c   : > { %18715 = vmatprep.subr.bf16.mxu1 %v22724_v53 }
 0xb5f   : > { %18717 = vmatpush3.bf16.msra.mxu1 %v22724_v53 }
 0xb60   : > { %18719 = vmatprep.subr.bf16.mxu1 %v22739_v59 }
 0xb63   : > { %18721 = vmatpush3.bf16.msra.mxu1 %v22739_v59 }
 0xb64   : > { %18723 = vmatprep.subr.bf16.mxu1 %v22769_v55 }
 0xb67   : > { %18725 = vmatpush3.bf16.msra.mxu1 %v22769_v55 }
 0xb68   : > { %18727 = vmatprep.subr.bf16.mxu1 %v22786_v17 }
 0xb6b   : > { %18729 = vmatpush3.bf16.msra.mxu1 %v22786_v17 }
 0xb6c   : > { %18731 = vmatprep.subr.bf16.mxu1 %v22816_v24 }
 0xb6f   : > { %18733 = vmatpush3.bf16.msra.mxu1 %v22816_v24 }
 0xb70   : > { %18735 = vmatprep.subr.bf16.mxu1 %v22852_v13 }
 0xb73   : > { %18737 = vmatpush3.bf16.msra.mxu1 %v22852_v13 }
 0xb76   : > { %16837 = vmatmul.mubr.f32.vlgmr.msra.gmra.mrb[18].mxu1 %v22774_v48 }
 0xb77   : > { %16839 = vmatprep.mubr.f32.mxu1 %v22803_v8 }
 0xb7a   : > { %16840 = vmatmul.mubr.f32.gmra.mrb[20].mxu1 %v22810_v50 }
 0xc49   : > { %v16838_v57 = vpop.f32.mrb[18].mxu1 }
 0xc4a   : > { %v18746_v37 = vadd.f32 %v16838_v57, %v22558_v1  ;;  %v12722_v53 = vpop.f32.mrb[19].mxu1 }
 0xc4b   : > { %v18747_v59 = vadd.f32 %v12722_v53, %v22560_v41 }
 0xc4c   : > { %v12756_v55 = vadd.f32 %v18746_v37, %v12966_v32 }
 0xc4d   : > { %v12755_v17 = vadd.f32 %v18747_v59, %v12966_v32  ;;  %v16841_v24 = vpop.f32.mrb[20].mxu1 }
 0xc4e   : > { %v12968_v61 = vmul.f32 -1.442695, %v12756_v55  ;;  %v18748_v48 = vadd.f32 %v16841_v24, %v22562_v5  ;;  %v12734_v45 = vpop.f32.mrb[21].mxu1 }
 0xc4f   : > { %v12967_v8 = vmul.f32 -1.442695, %v12755_v17  ;;  %v18749_v50 = vadd.f32 %v12734_v45, %v22564_v33 }
 0xc50   : > { %19149 = vpow2.f32 %v12968_v61  ;;  %v12758_v13 = vadd.f32 %v18748_v48, %v12966_v32 }
 0xc51   : > { %19151 = vpow2.f32 %v12967_v8  ;;  %v12757_v40 = vadd.f32 %v18749_v50, %v12966_v32 }
 0xc52   : > { %v12970_v21 = vmul.f32 -1.442695, %v12758_v13 }
 0xc53   : > { %v12969_v1 = vmul.f32 -1.442695, %v12757_v40 }
 0xc54   : > { %19153 = vpow2.f32 %v12970_v21 }
 0xc55   : > { %19155 = vpow2.f32 %v12969_v1 }
 0xc5a   : > { %v19150_v41 = vpop.eup %19149 }
 0xc5b   : > { %v19152_v16 = vpop.eup %19151  ;;  %v12772_v14 = vadd.f32 1.0, %v19150_v41 }
 0xc5c   : > { %v12771_v3 = vadd.f32 1.0, %v19152_v16 }
 0xc5d   : > { %19157 = vrcp.f32 %v12772_v14 }
 0xc5e   : > { %v19154_v5 = vpop.eup %19153  ;;  %19159 = vrcp.f32 %v12771_v3 }
 0xc5f   : > { %v19156_v34 = vpop.eup %19155  ;;  %v12774_v49 = vadd.f32 1.0, %v19154_v5 }
 0xc60   : > { %v12773_v33 = vadd.f32 1.0, %v19156_v34 }
 0xc61   : > { %19161 = vrcp.f32 %v12774_v49 }
 0xc62   : > { %19163 = vrcp.f32 %v12773_v33 }
 0xc67   : > { %v19158_v44 = vpop.eup %19157 }
 0xc68   : > { %v19160_v22 = vpop.eup %19159  ;;  %12784 = vst.msk [vmem:[%s406_s19 + $0x8] sm:$0xff] %vm5519_vm2, %v19158_v44 }
 0xc69   : > { %12783 = vst.msk [vmem:[%s406_s19] sm:$0xff] %vm5519_vm2, %v19160_v22 }
 0xc6b   : > { %v19162_v0 = vpop.eup %19161 }
 0xc6c   : > { %v19164_v58 = vpop.eup %19163  ;;  %12786 = vst.msk [vmem:[%s406_s19 + $0x18] sm:$0xff] %vm5519_vm2, %v19162_v0 }
 0xc6d   : > { %12785 = vst.msk [vmem:[%s406_s19 + $0x10] sm:$0xff] %vm5519_vm2, %v19164_v58 }
 0xc6e   : > { %19178 = shalt.err (!%p19175_p3)
}
 0xc6f   : > { %s19179_s16 = scalar_lea.hbm %s23077_s30, 512  ;;  %s19183_s28 = scalar_lea.hbm %s23136_s12, 1024 }
 0xc70   : > { %p19180_p4 = scmp.ne.s32.totalorder %s23077_s30, %s19179_s16  ;;  %p19184_p9 = scmp.lt.u32.totalorder %s23077_s30, %s23136_s12 }
 0xc71   : > { %p19185_p10 = scmp.lt.u32.totalorder %s19183_s28, %s19179_s16  ;;  %p19187_p12 = scmp.lt.u32.totalorder %s19179_s16, %s23077_s30 }
 0xc72   : > { %p19181_p7 = pnand %p19180_p4, %p19335_p5 }
 0xc73   : > { %p19186_p11 = por %p19185_p10, %p19184_p9 }
 0xc74   : > { %p19182_p8 = pneg %p19181_p7 }
 0xc75   : > { %p19188_p13 = por %p19187_p12, %p19186_p11 }
 0xc77   : > { %p19189_p0 = pnand %p19188_p13, %p19182_p8 }
 0xc79   : > { %19192 = shalt.err (!%p19189_p0)
}
 0xc7a   : > { %s19230_s29 = smov 128   ;;  %s19231_s18 = smov 8  }
 0xc7b   : > { %19104 = dma.vmem_to_hbm [thread:$0]  (%p19335_p5), %s23079_s20, 512, %s23077_s30, %s23083_s25, %s19230_s29, %s19230_s29, %s19231_s18  }
 0xc7c PF: > { %p19110_p1 = scmp.ge.s32.totalorder %s19227_s24, 2  ;;  %s12816_s19 = sand.u32 1, %s19215_s21  }
 0xc7d   : > { %s12817_s16 = scalar_lea.sflag [#allocation3], %s12816_s19 }
 0xc7e   : > { %p19107_p2 = pnand %p19110_p1, %p19339_p6 }
 0xc80   : > { %19210 = dma.done.wait (!%p19107_p2), %s12817_s16, 512  }
 0xc81   : > { %19212 = vsyncadd (!%p19107_p2), %s12817_s16, 4294966784  ;;  %s23388_s26 = sld [smem:[#allocation5_spill]]  ;;  %p22_p3 = scmp.ge.s32.totalorder %s19322_s27, 4  }
 0xc82   : > { %s23389_s21 = smov %s19219_s22  ;;  %s23390_s22 = smov %s19223_s23 }
 0xc83   : > { %s23392_s24 = smov %s19322_s27  ;;  %24 = sbr.rel (!%p22_p3) target bundleno = 3 (0x3), region = 112 }
 0xc87   : > { %s23391_s23 = smov %s23388_s26 }
 0xc8a   :  { %12822 = vsyncpa [#allocation3], 1 }
 0xc8b   :  { %12824 = vsyncpa [#allocation3 + $0x1], 1 }

</bundles_post_ra>
